<compile_context>
chip_gen: v5e
topology: v5e:2x2
jax: 0.10.0
libtpu: 0.0.40
codegen_flags: <defaults>
</compile_context>

<pallas_src>
import jax
import jax.numpy as jnp
from jax.experimental import pallas as pl
from jax.experimental.pallas import tpu as pltpu

# hyperparameters (module-level constants in the original MoE/moe.py)
n_embed = 32
block_size = 8
n_head = 4
head_size = n_embed // n_head
num_experts = 4
top_k = 2
n_layer = 2
vocab_size = 64
LN_EPS = 1e-5
V_PAD = 128        # lm_head output padded to a full lane group


# ---------------------------------------------------------------------------
# in-kernel helpers (trace-time; operate on values, not refs)
# ---------------------------------------------------------------------------
def _layernorm(x, gamma, beta):
    mu = jnp.mean(x, axis=-1, keepdims=True)
    var = jnp.mean((x - mu) ** 2, axis=-1, keepdims=True)
    return (x - mu) * jax.lax.rsqrt(var + LN_EPS) * gamma + beta


def _softmax(x):
    m = jnp.max(x, axis=-1, keepdims=True)
    e = jnp.exp(x - m)
    # approx reciprocal goes to the (otherwise idle) EUP slot instead of VPU divide
    return e * pl.reciprocal(jnp.sum(e, axis=-1, keepdims=True), approx=True)


# ---------------------------------------------------------------------------
# fused forward kernel for ONE sequence: embeddings-in -> padded logits-out
# ---------------------------------------------------------------------------
def _make_kernel(T):
    C = n_embed
    E = num_experts
    H = 4 * n_embed            # expert hidden width
    EH = E * H
    hs = head_size
    scale = 1.0 / (hs ** 0.5)

    def kernel(x_ref, noise_ref, expand_ref,
               g1_ref, b1_ref, wqkv_ref, wp_ref, bp_ref,
               g2_ref, b2_ref, w1rn_ref, b1rn_ref, w2_ref, b2m_ref,
               gf_ref, bf_ref, wl_ref, bl_ref,
               o_ref):
        x = x_ref[...]                                   # (T, C) f32, one sequence
        neg_inf = jnp.float32(-jnp.inf)

        # constants hoisted out of the layer loop
        r = jax.lax.broadcasted_iota(jnp.int32, (T, T), 0)
        c = jax.lax.broadcasted_iota(jnp.int32, (T, T), 1)
        causal = r >= c                                  # per-sequence causal mask
        col_e = jax.lax.broadcasted_iota(jnp.int32, (T, E), 1)
        expand = expand_ref[...]                         # (E, E*H) one-hot expansion

        for l in range(n_layer):                         # static layer loop
            # ---------------- attention sub-block: x += MHA(LN1(x)) --------
            xn = _layernorm(x, g1_ref[l], b1_ref[l])
            qkv = jnp.dot(xn.astype(jnp.bfloat16), wqkv_ref[l],
                          preferred_element_type=jnp.float32)        # (T, 3C)
            qkv_b = qkv.astype(jnp.bfloat16)
            wp_l = wp_ref[l]                                          # (C, C) bf16
            sa = jnp.zeros((T, C), jnp.float32)
            for h in range(n_head):                      # static head loop
                q = qkv_b[:, h * hs:(h + 1) * hs]
                k = qkv_b[:, C + h * hs: C + (h + 1) * hs]
                v = qkv_b[:, 2 * C + h * hs: 2 * C + (h + 1) * hs]
                s = jax.lax.dot_general(
                    q, k, (((1,), (1,)), ((), ())),
                    preferred_element_type=jnp.float32) * scale       # (T, T)
                s = jnp.where(causal, s, neg_inf)
                p = _softmax(s)
                o_h = jnp.dot(p.astype(jnp.bfloat16), v,
                              preferred_element_type=jnp.float32)     # (T, hs)
                # accumulate output projection per head (no concat needed):
                # concat(o) @ wp == sum_h o_h @ wp[h*hs:(h+1)*hs, :]
                sa = sa + jnp.dot(o_h.astype(jnp.bfloat16),
                                  wp_l[h * hs:(h + 1) * hs, :],
                                  preferred_element_type=jnp.float32)
            x = x + sa + bp_ref[l]

            # ---------------- MoE sub-block: x += SparseMoE(LN2(x)) --------
            xn = _layernorm(x, g2_ref[l], b2_ref[l])

            # fused [experts-up | router | noise-linear] matmul (shared LHS xn)
            up = jnp.dot(xn.astype(jnp.bfloat16), w1rn_ref[l],
                         preferred_element_type=jnp.float32) + b1rn_ref[l]
            hme = jnp.maximum(up[:, :EH], 0.0)                         # (T, E*H) ReLU
            logits = up[:, EH:EH + E]                                  # router logits
            nlog = up[:, EH + E:]                                      # noise logits
            # F.softplus (beta=1, threshold=20)
            sp = jnp.where(nlog > 20.0, nlog,
                           jnp.log(1.0 + jnp.exp(jnp.minimum(nlog, 20.0))))
            noisy = logits + noise_ref[l] * sp                         # (T, E)

            # top-k selection (static unroll; lowest index wins ties)
            remaining = noisy
            mask = jnp.zeros((T, E), dtype=jnp.bool_)
            for _ in range(top_k):
                m = jnp.max(remaining, axis=-1, keepdims=True)
                sel = remaining == m
                first_col = jnp.min(jnp.where(sel, col_e, E),
                                    axis=-1, keepdims=True)
                first = sel & (col_e == first_col)
                mask = mask | first
                remaining = jnp.where(first, neg_inf, remaining)
            gate = _softmax(jnp.where(mask, noisy, neg_inf))   # exactly 0 off top-k

            # gate broadcast across expert lane-slices via one-hot matmul (MXU,
            # exact in f32), then fused expert down-projection.
            ge = jnp.dot(gate, expand, preferred_element_type=jnp.float32)  # (T, E*H)
            y = jnp.dot((hme * ge).astype(jnp.bfloat16), w2_ref[l],
                        preferred_element_type=jnp.float32)
            y = y + jnp.dot(gate, b2m_ref[l],            # gate-weighted expert biases
                            preferred_element_type=jnp.float32)
            x = x + y

        # ---------------- final LN + lm_head (128-lane padded) -------------
        xn = _layernorm(x, gf_ref[...], bf_ref[...])
        o_ref[...] = jnp.dot(xn.astype(jnp.bfloat16), wl_ref[...],
                             preferred_element_type=jnp.float32) + bl_ref[...]

    return kernel


# ---------------------------------------------------------------------------
# deterministic parameter init (weights stored pre-fused / layer-stacked)
# matmul weights stored bf16; LN params & biases stay f32.
# ---------------------------------------------------------------------------
def init_params(key):
    keys = iter(jax.random.split(key, 16))

    def nrm(shape, scale=0.02, dtype=jnp.float32):
        return (scale * jax.random.normal(next(keys), shape,
                                          dtype=jnp.float32)).astype(dtype)

    C, E, H, L = n_embed, num_experts, 4 * n_embed, n_layer
    EH = E * H
    wlm = jnp.zeros((C, V_PAD), jnp.float32).at[:, :vocab_size].set(
        0.02 * jax.random.normal(next(keys), (C, vocab_size), dtype=jnp.float32))

    params = {
        "tok_emb": nrm((vocab_size, C)),
        "pos_emb": nrm((block_size, C)),
        # per-layer params stacked on a leading layer axis
        "ln1_g": jnp.ones((L, 1, C), jnp.float32),
        "ln1_b": jnp.zeros((L, 1, C), jnp.float32),
        "wqkv": nrm((L, C, 3 * C), dtype=jnp.bfloat16),      # fused Q|K|V (no bias)
        "wp": nrm((L, C, C), dtype=jnp.bfloat16),            # attention out proj
        "bp": jnp.zeros((L, 1, C), jnp.float32),
        "ln2_g": jnp.ones((L, 1, C), jnp.float32),
        "ln2_b": jnp.zeros((L, 1, C), jnp.float32),
        # fused [experts' first linear (E*H) | router (E) | noise linear (E)]
        "w1rn": nrm((L, C, EH + 2 * E), dtype=jnp.bfloat16),
        "b1rn": jnp.zeros((L, 1, EH + 2 * E), jnp.float32),
        "w2s": nrm((L, EH, C), dtype=jnp.bfloat16),          # experts' 2nd linear, K-stacked
        "b2m": jnp.zeros((L, E, C), jnp.float32),            # experts' 2nd bias, per expert
        # final LN + lm_head (padded to 128 lanes)
        "lnf_g": jnp.ones((1, C), jnp.float32),
        "lnf_b": jnp.zeros((1, C), jnp.float32),
        "wlm": wlm.astype(jnp.bfloat16),
        "blm": jnp.zeros((1, V_PAD), jnp.float32),
    }
    return params


# ---------------------------------------------------------------------------
# forward glue: embedding gathers + one gridded pallas_call (grid over batch)
# ---------------------------------------------------------------------------
def forward(params, idx, noise_key):
    B, T = idx.shape
    C = n_embed
    E = num_experts
    H = 4 * n_embed
    EH = E * H

    # embedding lookups are glue (gather); everything else runs in the kernel
    tok = params["tok_emb"][idx]                          # (B, T, C)
    pos = params["pos_emb"][:T]                           # (T, C)
    x = (tok + pos).astype(jnp.float32)                   # (B, T, C)
    # per-sequence, per-layer router noise, pre-drawn in one call
    noise = jax.random.normal(noise_key, (B, n_layer, T, E), dtype=jnp.float32)
    # constant one-hot expansion matrix for the gate broadcast (E, E*H)
    expand = (jax.lax.broadcasted_iota(jnp.int32, (E, EH), 1) // H
              == jax.lax.broadcasted_iota(jnp.int32, (E, EH), 0)
              ).astype(jnp.float32)

    args = (x, noise, expand,
            params["ln1_g"], params["ln1_b"], params["wqkv"],
            params["wp"], params["bp"],
            params["ln2_g"], params["ln2_b"], params["w1rn"], params["b1rn"],
            params["w2s"], params["b2m"],
            params["lnf_g"], params["lnf_b"], params["wlm"], params["blm"])

    def bcast(shape):
        nd = len(shape)
        return pl.BlockSpec(shape, lambda b: (0,) * nd)   # broadcast to every grid step

    in_specs = [
        pl.BlockSpec((None, T, C), lambda b: (b, 0, 0)),            # x: one sequence / step
        pl.BlockSpec((None, n_layer, T, E), lambda b: (b, 0, 0, 0)),  # router noise
        bcast((E, EH)),                                             # gate expansion
        bcast((n_layer, 1, C)), bcast((n_layer, 1, C)),             # ln1
        bcast((n_layer, C, 3 * C)), bcast((n_layer, C, C)),         # wqkv, wp
        bcast((n_layer, 1, C)),                                     # bp
        bcast((n_layer, 1, C)), bcast((n_layer, 1, C)),             # ln2
        bcast((n_layer, C, EH + 2 * E)), bcast((n_layer, 1, EH + 2 * E)),
        bcast((n_layer, EH, C)), bcast((n_layer, E, C)),
        bcast((1, C)), bcast((1, C)),                               # final LN
        bcast((C, V_PAD)), bcast((1, V_PAD)),                       # lm_head
    ]
    out_spec = pl.BlockSpec((None, T, V_PAD), lambda b: (b, 0, 0))

    # explicit VMEM budget + cost estimate
    in_bytes = sum(int(a.size) * a.dtype.itemsize for a in args)
    out_bytes = B * T * V_PAD * 4
    vmem_limit = int(2 * (in_bytes + out_bytes)) + (8 << 20)   # double-buffer + headroom

    flops = B * (n_layer * (
        2 * T * C * 3 * C                                   # fused qkv
        + n_head * (4 * T * T * head_size + 2 * T * head_size * C)  # scores, pv, out-proj
        + 2 * T * C * (EH + 2 * E)                          # experts-up + router + noise
        + 2 * T * E * EH                                    # gate expansion
        + 2 * T * EH * C                                    # experts-down
        + 2 * T * E * C)                                    # gated expert biases
        + 2 * T * C * V_PAD)                                # lm_head
    transcendentals = B * n_layer * (n_head * T * T + 3 * T * E)

    logits = pl.pallas_call(
        _make_kernel(T),
        grid=(B,),
        out_shape=jax.ShapeDtypeStruct((B, T, V_PAD), jnp.float32),
        in_specs=in_specs,
        out_specs=out_spec,
        compiler_params=pltpu.CompilerParams(
            dimension_semantics=("parallel",),      # both TensorCores on v7x
            vmem_limit_bytes=vmem_limit),
        cost_estimate=pl.CostEstimate(
            flops=flops, transcendentals=transcendentals,
            bytes_accessed=in_bytes + out_bytes),
    )(*args)
    return logits[:, :, :vocab_size]                         # drop lane padding


if __name__ == "__main__":
    root = jax.random.PRNGKey(0)
    k_param, k_idx, k_noise = jax.random.split(root, 3)

    params = init_params(k_param)
    B, T = 2, block_size
    idx = jax.random.randint(k_idx, (B, T), 0, vocab_size, dtype=jnp.int32)

    logits = forward(params, idx, k_noise)
    logits = jax.block_until_ready(logits)
    assert logits.shape == (B, T, vocab_size)
    assert bool(jnp.all(jnp.isfinite(logits)))
    print("KERNEL_OK")
</pallas_src>

<mosaic_0001>
module attributes {stable_mosaic.version = 11 : i64} {
  func.func @kernel(%arg0: i32, %arg1: memref<1x8x32xf32, #tpu.memory_space<vmem>>, %arg2: memref<1x2x8x4xf32, #tpu.memory_space<vmem>>, %arg3: memref<4x512xf32, #tpu.memory_space<vmem>>, %arg4: memref<2x1x32xf32, #tpu.memory_space<vmem>>, %arg5: memref<2x1x32xf32, #tpu.memory_space<vmem>>, %arg6: memref<2x32x96xbf16, #tpu.memory_space<vmem>>, %arg7: memref<2x32x32xbf16, #tpu.memory_space<vmem>>, %arg8: memref<2x1x32xf32, #tpu.memory_space<vmem>>, %arg9: memref<2x1x32xf32, #tpu.memory_space<vmem>>, %arg10: memref<2x1x32xf32, #tpu.memory_space<vmem>>, %arg11: memref<2x32x520xbf16, #tpu.memory_space<vmem>>, %arg12: memref<2x1x520xf32, #tpu.memory_space<vmem>>, %arg13: memref<2x512x32xbf16, #tpu.memory_space<vmem>>, %arg14: memref<2x4x32xf32, #tpu.memory_space<vmem>>, %arg15: memref<1x32xf32, #tpu.memory_space<vmem>>, %arg16: memref<1x32xf32, #tpu.memory_space<vmem>>, %arg17: memref<32x128xbf16, #tpu.memory_space<vmem>>, %arg18: memref<1x128xf32, #tpu.memory_space<vmem>>, %arg19: memref<1x8x128xf32, #tpu.memory_space<vmem>>) attributes {dimension_semantics = [#tpu.dimension_semantics<parallel>], iteration_bounds = array<i64: 2>, scalar_prefetch = 0 : i64, scratch_operands = 0 : i64, tpu.core_type = #tpu.core_type<tc>, window_params = [{transform_indices = @transform_0, window_bounds = array<i64: 1, 8, 32>}, {transform_indices = @transform_1, window_bounds = array<i64: 1, 2, 8, 4>}, {pipeline_mode = #tpu.pipeline_mode<synchronous>, transform_indices = @transform_2, window_bounds = array<i64: 4, 512>}, {pipeline_mode = #tpu.pipeline_mode<synchronous>, transform_indices = @transform_3, window_bounds = array<i64: 2, 1, 32>}, {pipeline_mode = #tpu.pipeline_mode<synchronous>, transform_indices = @transform_4, window_bounds = array<i64: 2, 1, 32>}, {pipeline_mode = #tpu.pipeline_mode<synchronous>, transform_indices = @transform_5, window_bounds = array<i64: 2, 32, 96>}, {pipeline_mode = #tpu.pipeline_mode<synchronous>, transform_indices = @transform_6, window_bounds = array<i64: 2, 32, 32>}, {pipeline_mode = #tpu.pipeline_mode<synchronous>, transform_indices = @transform_7, window_bounds = array<i64: 2, 1, 32>}, {pipeline_mode = #tpu.pipeline_mode<synchronous>, transform_indices = @transform_8, window_bounds = array<i64: 2, 1, 32>}, {pipeline_mode = #tpu.pipeline_mode<synchronous>, transform_indices = @transform_9, window_bounds = array<i64: 2, 1, 32>}, {pipeline_mode = #tpu.pipeline_mode<synchronous>, transform_indices = @transform_10, window_bounds = array<i64: 2, 32, 520>}, {pipeline_mode = #tpu.pipeline_mode<synchronous>, transform_indices = @transform_11, window_bounds = array<i64: 2, 1, 520>}, {pipeline_mode = #tpu.pipeline_mode<synchronous>, transform_indices = @transform_12, window_bounds = array<i64: 2, 512, 32>}, {pipeline_mode = #tpu.pipeline_mode<synchronous>, transform_indices = @transform_13, window_bounds = array<i64: 2, 4, 32>}, {pipeline_mode = #tpu.pipeline_mode<synchronous>, transform_indices = @transform_14, window_bounds = array<i64: 1, 32>}, {pipeline_mode = #tpu.pipeline_mode<synchronous>, transform_indices = @transform_15, window_bounds = array<i64: 1, 32>}, {pipeline_mode = #tpu.pipeline_mode<synchronous>, transform_indices = @transform_16, window_bounds = array<i64: 32, 128>}, {pipeline_mode = #tpu.pipeline_mode<synchronous>, transform_indices = @transform_17, window_bounds = array<i64: 1, 128>}, {transform_indices = @transform_18, window_bounds = array<i64: 1, 8, 128>}]} {
    %c0 = arith.constant 0 : index
    %c0_0 = arith.constant 0 : index
    %c0_1 = arith.constant 0 : index
    %0 = vector.load %arg1[%c0, %c0_0, %c0_1] : memref<1x8x32xf32, #tpu.memory_space<vmem>>, vector<1x8x32xf32>
    %1 = vector.shape_cast %0 : vector<1x8x32xf32> to vector<8x32xf32>
    %2 = tpu.iota {dimensions = array<i32: 0>} : vector<8x8xi32>
    %3 = tpu.iota {dimensions = array<i32: 1>} : vector<8x8xi32>
    %4 = arith.cmpi sge, %2, %3 : vector<8x8xi32>
    %5 = tpu.iota {dimensions = array<i32: 1>} : vector<8x4xi32>
    %c0_2 = arith.constant 0 : index
    %c0_3 = arith.constant 0 : index
    %6 = vector.load %arg3[%c0_2, %c0_3] : memref<4x512xf32, #tpu.memory_space<vmem>>, vector<4x512xf32>
    %c0_4 = arith.constant 0 : index
    %c0_5 = arith.constant 0 : index
    %c0_6 = arith.constant 0 : index
    %7 = vector.load %arg4[%c0_4, %c0_5, %c0_6] : memref<2x1x32xf32, #tpu.memory_space<vmem>>, vector<1x1x32xf32>
    %8 = vector.shape_cast %7 : vector<1x1x32xf32> to vector<1x32xf32>
    %c0_7 = arith.constant 0 : index
    %c0_8 = arith.constant 0 : index
    %c0_9 = arith.constant 0 : index
    %9 = vector.load %arg5[%c0_7, %c0_8, %c0_9] : memref<2x1x32xf32, #tpu.memory_space<vmem>>, vector<1x1x32xf32>
    %10 = vector.shape_cast %9 : vector<1x1x32xf32> to vector<1x32xf32>
    %cst = arith.constant dense<0.000000e+00> : vector<8xf32>
    %11 = vector.multi_reduction <add>, %1, %cst [1] : vector<8x32xf32> to vector<8xf32>
    %12 = vector.shape_cast %11 : vector<8xf32> to vector<8x1xf32>
    %cst_10 = arith.constant 3.200000e+01 : f32
    %13 = vector.broadcast %cst_10 : f32 to vector<8x1xf32>
    %14 = arith.divf %12, %13 : vector<8x1xf32>
    %15 = vector.broadcast %14 : vector<8x1xf32> to vector<8x32xf32>
    %16 = arith.subf %1, %15 : vector<8x32xf32>
    %17 = arith.mulf %16, %16 : vector<8x32xf32>
    %cst_11 = arith.constant dense<0.000000e+00> : vector<8xf32>
    %18 = vector.multi_reduction <add>, %17, %cst_11 [1] : vector<8x32xf32> to vector<8xf32>
    %19 = vector.shape_cast %18 : vector<8xf32> to vector<8x1xf32>
    %cst_12 = arith.constant 3.200000e+01 : f32
    %20 = vector.broadcast %cst_12 : f32 to vector<8x1xf32>
    %21 = arith.divf %19, %20 : vector<8x1xf32>
    %22 = vector.broadcast %14 : vector<8x1xf32> to vector<8x32xf32>
    %23 = arith.subf %1, %22 : vector<8x32xf32>
    %cst_13 = arith.constant 9.99999974E-6 : f32
    %24 = vector.broadcast %cst_13 : f32 to vector<8x1xf32>
    %25 = arith.addf %21, %24 : vector<8x1xf32>
    %26 = math.rsqrt %25 : vector<8x1xf32>
    %27 = vector.broadcast %26 : vector<8x1xf32> to vector<8x32xf32>
    %28 = arith.mulf %23, %27 : vector<8x32xf32>
    %29 = vector.broadcast %8 : vector<1x32xf32> to vector<8x32xf32>
    %30 = arith.mulf %28, %29 : vector<8x32xf32>
    %31 = vector.broadcast %10 : vector<1x32xf32> to vector<8x32xf32>
    %32 = arith.addf %30, %31 : vector<8x32xf32>
    %33 = arith.truncf %32 : vector<8x32xf32> to vector<8x32xbf16>
    %c0_14 = arith.constant 0 : index
    %c0_15 = arith.constant 0 : index
    %c0_16 = arith.constant 0 : index
    %34 = vector.load %arg6[%c0_14, %c0_15, %c0_16] : memref<2x32x96xbf16, #tpu.memory_space<vmem>>, vector<1x32x96xbf16>
    %35 = vector.shape_cast %34 : vector<1x32x96xbf16> to vector<32x96xbf16>
    %cst_17 = arith.constant dense<0.000000e+00> : vector<8x96xf32>
    %36 = tpu.matmul %33, %35, %cst_17 {dimension_numbers = #tpu.dot_dimension_numbers<[1], [0], [0], [1], [0, 0, 1, 1], [], []>} : vector<8x32xbf16>, vector<32x96xbf16>, vector<8x96xf32> -> vector<8x96xf32>
    %37 = arith.truncf %36 : vector<8x96xf32> to vector<8x96xbf16>
    %c0_18 = arith.constant 0 : index
    %c0_19 = arith.constant 0 : index
    %c0_20 = arith.constant 0 : index
    %38 = vector.load %arg7[%c0_18, %c0_19, %c0_20] : memref<2x32x32xbf16, #tpu.memory_space<vmem>>, vector<1x32x32xbf16>
    %39 = vector.shape_cast %38 : vector<1x32x32xbf16> to vector<32x32xbf16>
    %cst_21 = arith.constant 0.000000e+00 : f32
    %40 = vector.broadcast %cst_21 : f32 to vector<8x32xf32>
    %41 = vector.extract_strided_slice %37 {offsets = [0, 0], sizes = [8, 8], strides = [1, 1]} : vector<8x96xbf16> to vector<8x8xbf16>
    %42 = vector.extract_strided_slice %37 {offsets = [0, 32], sizes = [8, 8], strides = [1, 1]} : vector<8x96xbf16> to vector<8x8xbf16>
    %43 = vector.extract_strided_slice %37 {offsets = [0, 64], sizes = [8, 8], strides = [1, 1]} : vector<8x96xbf16> to vector<8x8xbf16>
    %cst_22 = arith.constant dense<0.000000e+00> : vector<8x8xf32>
    %44 = tpu.matmul %41, %42, %cst_22 {dimension_numbers = #tpu.dot_dimension_numbers<[1], [1], [0], [0], [0, 0, 1, 0], [], []>} : vector<8x8xbf16>, vector<8x8xbf16>, vector<8x8xf32> -> vector<8x8xf32>
    %cst_23 = arith.constant 0.353553385 : f32
    %45 = vector.broadcast %cst_23 : f32 to vector<8x8xf32>
    %46 = arith.mulf %44, %45 : vector<8x8xf32>
    %cst_24 = arith.constant 0xFF800000 : f32
    %47 = vector.broadcast %cst_24 : f32 to vector<8x8xf32>
    %48 = arith.select %4, %46, %47 : vector<8x8xi1>, vector<8x8xf32>
    %cst_25 = arith.constant dense<0xFF800000> : vector<8xf32>
    %49 = vector.multi_reduction <maximumf>, %48, %cst_25 [1] : vector<8x8xf32> to vector<8xf32>
    %50 = vector.shape_cast %49 : vector<8xf32> to vector<8x1xf32>
    %51 = vector.broadcast %50 : vector<8x1xf32> to vector<8x8xf32>
    %52 = arith.subf %48, %51 : vector<8x8xf32>
    %53 = math.exp %52 : vector<8x8xf32>
    %cst_26 = arith.constant dense<0.000000e+00> : vector<8xf32>
    %54 = vector.multi_reduction <add>, %53, %cst_26 [1] : vector<8x8xf32> to vector<8xf32>
    %55 = vector.shape_cast %54 : vector<8xf32> to vector<8x1xf32>
    %56 = tpu.reciprocal %55 {approx = true} : vector<8x1xf32> -> vector<8x1xf32>
    %57 = vector.broadcast %56 : vector<8x1xf32> to vector<8x8xf32>
    %58 = arith.mulf %53, %57 : vector<8x8xf32>
    %59 = arith.truncf %58 : vector<8x8xf32> to vector<8x8xbf16>
    %cst_27 = arith.constant dense<0.000000e+00> : vector<8x8xf32>
    %60 = tpu.matmul %59, %43, %cst_27 {dimension_numbers = #tpu.dot_dimension_numbers<[1], [0], [0], [1], [0, 0, 1, 1], [], []>} : vector<8x8xbf16>, vector<8x8xbf16>, vector<8x8xf32> -> vector<8x8xf32>
    %61 = arith.truncf %60 : vector<8x8xf32> to vector<8x8xbf16>
    %62 = vector.extract_strided_slice %39 {offsets = [0, 0], sizes = [8, 32], strides = [1, 1]} : vector<32x32xbf16> to vector<8x32xbf16>
    %cst_28 = arith.constant dense<0.000000e+00> : vector<8x32xf32>
    %63 = tpu.matmul %61, %62, %cst_28 {dimension_numbers = #tpu.dot_dimension_numbers<[1], [0], [0], [1], [0, 0, 1, 1], [], []>} : vector<8x8xbf16>, vector<8x32xbf16>, vector<8x32xf32> -> vector<8x32xf32>
    %64 = arith.addf %40, %63 : vector<8x32xf32>
    %65 = vector.extract_strided_slice %37 {offsets = [0, 8], sizes = [8, 8], strides = [1, 1]} : vector<8x96xbf16> to vector<8x8xbf16>
    %66 = vector.extract_strided_slice %37 {offsets = [0, 40], sizes = [8, 8], strides = [1, 1]} : vector<8x96xbf16> to vector<8x8xbf16>
    %67 = vector.extract_strided_slice %37 {offsets = [0, 72], sizes = [8, 8], strides = [1, 1]} : vector<8x96xbf16> to vector<8x8xbf16>
    %cst_29 = arith.constant dense<0.000000e+00> : vector<8x8xf32>
    %68 = tpu.matmul %65, %66, %cst_29 {dimension_numbers = #tpu.dot_dimension_numbers<[1], [1], [0], [0], [0, 0, 1, 0], [], []>} : vector<8x8xbf16>, vector<8x8xbf16>, vector<8x8xf32> -> vector<8x8xf32>
    %cst_30 = arith.constant 0.353553385 : f32
    %69 = vector.broadcast %cst_30 : f32 to vector<8x8xf32>
    %70 = arith.mulf %68, %69 : vector<8x8xf32>
    %cst_31 = arith.constant 0xFF800000 : f32
    %71 = vector.broadcast %cst_31 : f32 to vector<8x8xf32>
    %72 = arith.select %4, %70, %71 : vector<8x8xi1>, vector<8x8xf32>
    %cst_32 = arith.constant dense<0xFF800000> : vector<8xf32>
    %73 = vector.multi_reduction <maximumf>, %72, %cst_32 [1] : vector<8x8xf32> to vector<8xf32>
    %74 = vector.shape_cast %73 : vector<8xf32> to vector<8x1xf32>
    %75 = vector.broadcast %74 : vector<8x1xf32> to vector<8x8xf32>
    %76 = arith.subf %72, %75 : vector<8x8xf32>
    %77 = math.exp %76 : vector<8x8xf32>
    %cst_33 = arith.constant dense<0.000000e+00> : vector<8xf32>
    %78 = vector.multi_reduction <add>, %77, %cst_33 [1] : vector<8x8xf32> to vector<8xf32>
    %79 = vector.shape_cast %78 : vector<8xf32> to vector<8x1xf32>
    %80 = tpu.reciprocal %79 {approx = true} : vector<8x1xf32> -> vector<8x1xf32>
    %81 = vector.broadcast %80 : vector<8x1xf32> to vector<8x8xf32>
    %82 = arith.mulf %77, %81 : vector<8x8xf32>
    %83 = arith.truncf %82 : vector<8x8xf32> to vector<8x8xbf16>
    %cst_34 = arith.constant dense<0.000000e+00> : vector<8x8xf32>
    %84 = tpu.matmul %83, %67, %cst_34 {dimension_numbers = #tpu.dot_dimension_numbers<[1], [0], [0], [1], [0, 0, 1, 1], [], []>} : vector<8x8xbf16>, vector<8x8xbf16>, vector<8x8xf32> -> vector<8x8xf32>
    %85 = arith.truncf %84 : vector<8x8xf32> to vector<8x8xbf16>
    %86 = vector.extract_strided_slice %39 {offsets = [8, 0], sizes = [8, 32], strides = [1, 1]} : vector<32x32xbf16> to vector<8x32xbf16>
    %cst_35 = arith.constant dense<0.000000e+00> : vector<8x32xf32>
    %87 = tpu.matmul %85, %86, %cst_35 {dimension_numbers = #tpu.dot_dimension_numbers<[1], [0], [0], [1], [0, 0, 1, 1], [], []>} : vector<8x8xbf16>, vector<8x32xbf16>, vector<8x32xf32> -> vector<8x32xf32>
    %88 = arith.addf %64, %87 : vector<8x32xf32>
    %89 = vector.extract_strided_slice %37 {offsets = [0, 16], sizes = [8, 8], strides = [1, 1]} : vector<8x96xbf16> to vector<8x8xbf16>
    %90 = vector.extract_strided_slice %37 {offsets = [0, 48], sizes = [8, 8], strides = [1, 1]} : vector<8x96xbf16> to vector<8x8xbf16>
    %91 = vector.extract_strided_slice %37 {offsets = [0, 80], sizes = [8, 8], strides = [1, 1]} : vector<8x96xbf16> to vector<8x8xbf16>
    %cst_36 = arith.constant dense<0.000000e+00> : vector<8x8xf32>
    %92 = tpu.matmul %89, %90, %cst_36 {dimension_numbers = #tpu.dot_dimension_numbers<[1], [1], [0], [0], [0, 0, 1, 0], [], []>} : vector<8x8xbf16>, vector<8x8xbf16>, vector<8x8xf32> -> vector<8x8xf32>
    %cst_37 = arith.constant 0.353553385 : f32
    %93 = vector.broadcast %cst_37 : f32 to vector<8x8xf32>
    %94 = arith.mulf %92, %93 : vector<8x8xf32>
    %cst_38 = arith.constant 0xFF800000 : f32
    %95 = vector.broadcast %cst_38 : f32 to vector<8x8xf32>
    %96 = arith.select %4, %94, %95 : vector<8x8xi1>, vector<8x8xf32>
    %cst_39 = arith.constant dense<0xFF800000> : vector<8xf32>
    %97 = vector.multi_reduction <maximumf>, %96, %cst_39 [1] : vector<8x8xf32> to vector<8xf32>
    %98 = vector.shape_cast %97 : vector<8xf32> to vector<8x1xf32>
    %99 = vector.broadcast %98 : vector<8x1xf32> to vector<8x8xf32>
    %100 = arith.subf %96, %99 : vector<8x8xf32>
    %101 = math.exp %100 : vector<8x8xf32>
    %cst_40 = arith.constant dense<0.000000e+00> : vector<8xf32>
    %102 = vector.multi_reduction <add>, %101, %cst_40 [1] : vector<8x8xf32> to vector<8xf32>
    %103 = vector.shape_cast %102 : vector<8xf32> to vector<8x1xf32>
    %104 = tpu.reciprocal %103 {approx = true} : vector<8x1xf32> -> vector<8x1xf32>
    %105 = vector.broadcast %104 : vector<8x1xf32> to vector<8x8xf32>
    %106 = arith.mulf %101, %105 : vector<8x8xf32>
    %107 = arith.truncf %106 : vector<8x8xf32> to vector<8x8xbf16>
    %cst_41 = arith.constant dense<0.000000e+00> : vector<8x8xf32>
    %108 = tpu.matmul %107, %91, %cst_41 {dimension_numbers = #tpu.dot_dimension_numbers<[1], [0], [0], [1], [0, 0, 1, 1], [], []>} : vector<8x8xbf16>, vector<8x8xbf16>, vector<8x8xf32> -> vector<8x8xf32>
    %109 = arith.truncf %108 : vector<8x8xf32> to vector<8x8xbf16>
    %110 = vector.extract_strided_slice %39 {offsets = [16, 0], sizes = [8, 32], strides = [1, 1]} : vector<32x32xbf16> to vector<8x32xbf16>
    %cst_42 = arith.constant dense<0.000000e+00> : vector<8x32xf32>
    %111 = tpu.matmul %109, %110, %cst_42 {dimension_numbers = #tpu.dot_dimension_numbers<[1], [0], [0], [1], [0, 0, 1, 1], [], []>} : vector<8x8xbf16>, vector<8x32xbf16>, vector<8x32xf32> -> vector<8x32xf32>
    %112 = arith.addf %88, %111 : vector<8x32xf32>
    %113 = vector.extract_strided_slice %37 {offsets = [0, 24], sizes = [8, 8], strides = [1, 1]} : vector<8x96xbf16> to vector<8x8xbf16>
    %114 = vector.extract_strided_slice %37 {offsets = [0, 56], sizes = [8, 8], strides = [1, 1]} : vector<8x96xbf16> to vector<8x8xbf16>
    %115 = vector.extract_strided_slice %37 {offsets = [0, 88], sizes = [8, 8], strides = [1, 1]} : vector<8x96xbf16> to vector<8x8xbf16>
    %cst_43 = arith.constant dense<0.000000e+00> : vector<8x8xf32>
    %116 = tpu.matmul %113, %114, %cst_43 {dimension_numbers = #tpu.dot_dimension_numbers<[1], [1], [0], [0], [0, 0, 1, 0], [], []>} : vector<8x8xbf16>, vector<8x8xbf16>, vector<8x8xf32> -> vector<8x8xf32>
    %cst_44 = arith.constant 0.353553385 : f32
    %117 = vector.broadcast %cst_44 : f32 to vector<8x8xf32>
    %118 = arith.mulf %116, %117 : vector<8x8xf32>
    %cst_45 = arith.constant 0xFF800000 : f32
    %119 = vector.broadcast %cst_45 : f32 to vector<8x8xf32>
    %120 = arith.select %4, %118, %119 : vector<8x8xi1>, vector<8x8xf32>
    %cst_46 = arith.constant dense<0xFF800000> : vector<8xf32>
    %121 = vector.multi_reduction <maximumf>, %120, %cst_46 [1] : vector<8x8xf32> to vector<8xf32>
    %122 = vector.shape_cast %121 : vector<8xf32> to vector<8x1xf32>
    %123 = vector.broadcast %122 : vector<8x1xf32> to vector<8x8xf32>
    %124 = arith.subf %120, %123 : vector<8x8xf32>
    %125 = math.exp %124 : vector<8x8xf32>
    %cst_47 = arith.constant dense<0.000000e+00> : vector<8xf32>
    %126 = vector.multi_reduction <add>, %125, %cst_47 [1] : vector<8x8xf32> to vector<8xf32>
    %127 = vector.shape_cast %126 : vector<8xf32> to vector<8x1xf32>
    %128 = tpu.reciprocal %127 {approx = true} : vector<8x1xf32> -> vector<8x1xf32>
    %129 = vector.broadcast %128 : vector<8x1xf32> to vector<8x8xf32>
    %130 = arith.mulf %125, %129 : vector<8x8xf32>
    %131 = arith.truncf %130 : vector<8x8xf32> to vector<8x8xbf16>
    %cst_48 = arith.constant dense<0.000000e+00> : vector<8x8xf32>
    %132 = tpu.matmul %131, %115, %cst_48 {dimension_numbers = #tpu.dot_dimension_numbers<[1], [0], [0], [1], [0, 0, 1, 1], [], []>} : vector<8x8xbf16>, vector<8x8xbf16>, vector<8x8xf32> -> vector<8x8xf32>
    %133 = arith.truncf %132 : vector<8x8xf32> to vector<8x8xbf16>
    %134 = vector.extract_strided_slice %39 {offsets = [24, 0], sizes = [8, 32], strides = [1, 1]} : vector<32x32xbf16> to vector<8x32xbf16>
    %cst_49 = arith.constant dense<0.000000e+00> : vector<8x32xf32>
    %135 = tpu.matmul %133, %134, %cst_49 {dimension_numbers = #tpu.dot_dimension_numbers<[1], [0], [0], [1], [0, 0, 1, 1], [], []>} : vector<8x8xbf16>, vector<8x32xbf16>, vector<8x32xf32> -> vector<8x32xf32>
    %136 = arith.addf %112, %135 : vector<8x32xf32>
    %137 = arith.addf %1, %136 : vector<8x32xf32>
    %c0_50 = arith.constant 0 : index
    %c0_51 = arith.constant 0 : index
    %c0_52 = arith.constant 0 : index
    %138 = vector.load %arg8[%c0_50, %c0_51, %c0_52] : memref<2x1x32xf32, #tpu.memory_space<vmem>>, vector<1x1x32xf32>
    %139 = vector.shape_cast %138 : vector<1x1x32xf32> to vector<1x32xf32>
    %140 = vector.broadcast %139 : vector<1x32xf32> to vector<8x32xf32>
    %141 = arith.addf %137, %140 : vector<8x32xf32>
    %c0_53 = arith.constant 0 : index
    %c0_54 = arith.constant 0 : index
    %c0_55 = arith.constant 0 : index
    %142 = vector.load %arg9[%c0_53, %c0_54, %c0_55] : memref<2x1x32xf32, #tpu.memory_space<vmem>>, vector<1x1x32xf32>
    %143 = vector.shape_cast %142 : vector<1x1x32xf32> to vector<1x32xf32>
    %c0_56 = arith.constant 0 : index
    %c0_57 = arith.constant 0 : index
    %c0_58 = arith.constant 0 : index
    %144 = vector.load %arg10[%c0_56, %c0_57, %c0_58] : memref<2x1x32xf32, #tpu.memory_space<vmem>>, vector<1x1x32xf32>
    %145 = vector.shape_cast %144 : vector<1x1x32xf32> to vector<1x32xf32>
    %cst_59 = arith.constant dense<0.000000e+00> : vector<8xf32>
    %146 = vector.multi_reduction <add>, %141, %cst_59 [1] : vector<8x32xf32> to vector<8xf32>
    %147 = vector.shape_cast %146 : vector<8xf32> to vector<8x1xf32>
    %cst_60 = arith.constant 3.200000e+01 : f32
    %148 = vector.broadcast %cst_60 : f32 to vector<8x1xf32>
    %149 = arith.divf %147, %148 : vector<8x1xf32>
    %150 = vector.broadcast %149 : vector<8x1xf32> to vector<8x32xf32>
    %151 = arith.subf %141, %150 : vector<8x32xf32>
    %152 = arith.mulf %151, %151 : vector<8x32xf32>
    %cst_61 = arith.constant dense<0.000000e+00> : vector<8xf32>
    %153 = vector.multi_reduction <add>, %152, %cst_61 [1] : vector<8x32xf32> to vector<8xf32>
    %154 = vector.shape_cast %153 : vector<8xf32> to vector<8x1xf32>
    %cst_62 = arith.constant 3.200000e+01 : f32
    %155 = vector.broadcast %cst_62 : f32 to vector<8x1xf32>
    %156 = arith.divf %154, %155 : vector<8x1xf32>
    %157 = vector.broadcast %149 : vector<8x1xf32> to vector<8x32xf32>
    %158 = arith.subf %141, %157 : vector<8x32xf32>
    %cst_63 = arith.constant 9.99999974E-6 : f32
    %159 = vector.broadcast %cst_63 : f32 to vector<8x1xf32>
    %160 = arith.addf %156, %159 : vector<8x1xf32>
    %161 = math.rsqrt %160 : vector<8x1xf32>
    %162 = vector.broadcast %161 : vector<8x1xf32> to vector<8x32xf32>
    %163 = arith.mulf %158, %162 : vector<8x32xf32>
    %164 = vector.broadcast %143 : vector<1x32xf32> to vector<8x32xf32>
    %165 = arith.mulf %163, %164 : vector<8x32xf32>
    %166 = vector.broadcast %145 : vector<1x32xf32> to vector<8x32xf32>
    %167 = arith.addf %165, %166 : vector<8x32xf32>
    %168 = arith.truncf %167 : vector<8x32xf32> to vector<8x32xbf16>
    %c0_64 = arith.constant 0 : index
    %c0_65 = arith.constant 0 : index
    %c0_66 = arith.constant 0 : index
    %169 = vector.load %arg11[%c0_64, %c0_65, %c0_66] : memref<2x32x520xbf16, #tpu.memory_space<vmem>>, vector<1x32x520xbf16>
    %170 = vector.shape_cast %169 : vector<1x32x520xbf16> to vector<32x520xbf16>
    %cst_67 = arith.constant dense<0.000000e+00> : vector<8x520xf32>
    %171 = tpu.matmul %168, %170, %cst_67 {dimension_numbers = #tpu.dot_dimension_numbers<[1], [0], [0], [1], [0, 0, 1, 1], [], []>} : vector<8x32xbf16>, vector<32x520xbf16>, vector<8x520xf32> -> vector<8x520xf32>
    %c0_68 = arith.constant 0 : index
    %c0_69 = arith.constant 0 : index
    %c0_70 = arith.constant 0 : index
    %172 = vector.load %arg12[%c0_68, %c0_69, %c0_70] : memref<2x1x520xf32, #tpu.memory_space<vmem>>, vector<1x1x520xf32>
    %173 = vector.shape_cast %172 : vector<1x1x520xf32> to vector<1x520xf32>
    %174 = vector.broadcast %173 : vector<1x520xf32> to vector<8x520xf32>
    %175 = arith.addf %171, %174 : vector<8x520xf32>
    %176 = vector.extract_strided_slice %175 {offsets = [0, 0], sizes = [8, 512], strides = [1, 1]} : vector<8x520xf32> to vector<8x512xf32>
    %cst_71 = arith.constant 0.000000e+00 : f32
    %177 = vector.broadcast %cst_71 : f32 to vector<8x512xf32>
    %178 = arith.maximumf %176, %177 : vector<8x512xf32>
    %179 = vector.extract_strided_slice %175 {offsets = [0, 512], sizes = [8, 4], strides = [1, 1]} : vector<8x520xf32> to vector<8x4xf32>
    %180 = vector.extract_strided_slice %175 {offsets = [0, 516], sizes = [8, 4], strides = [1, 1]} : vector<8x520xf32> to vector<8x4xf32>
    %cst_72 = arith.constant 2.000000e+01 : f32
    %181 = vector.broadcast %cst_72 : f32 to vector<8x4xf32>
    %182 = arith.cmpf ogt, %180, %181 : vector<8x4xf32>
    %cst_73 = arith.constant 2.000000e+01 : f32
    %183 = vector.broadcast %cst_73 : f32 to vector<8x4xf32>
    %184 = arith.minimumf %180, %183 : vector<8x4xf32>
    %185 = math.exp %184 : vector<8x4xf32>
    %cst_74 = arith.constant 1.000000e+00 : f32
    %186 = vector.broadcast %cst_74 : f32 to vector<8x4xf32>
    %187 = arith.addf %186, %185 : vector<8x4xf32>
    %188 = math.log %187 : vector<8x4xf32>
    %189 = arith.select %182, %180, %188 : vector<8x4xi1>, vector<8x4xf32>
    %c0_75 = arith.constant 0 : index
    %c0_76 = arith.constant 0 : index
    %c0_77 = arith.constant 0 : index
    %c0_78 = arith.constant 0 : index
    %190 = vector.load %arg2[%c0_75, %c0_76, %c0_77, %c0_78] : memref<1x2x8x4xf32, #tpu.memory_space<vmem>>, vector<1x1x8x4xf32>
    %191 = vector.shape_cast %190 : vector<1x1x8x4xf32> to vector<8x4xf32>
    %192 = arith.mulf %191, %189 : vector<8x4xf32>
    %193 = arith.addf %179, %192 : vector<8x4xf32>
    %false = arith.constant false
    %194 = vector.broadcast %false : i1 to vector<8x4xi1>
    %cst_79 = arith.constant dense<0xFF800000> : vector<8xf32>
    %195 = vector.multi_reduction <maximumf>, %193, %cst_79 [1] : vector<8x4xf32> to vector<8xf32>
    %196 = vector.shape_cast %195 : vector<8xf32> to vector<8x1xf32>
    %197 = vector.broadcast %196 : vector<8x1xf32> to vector<8x4xf32>
    %198 = arith.cmpf oeq, %193, %197 : vector<8x4xf32>
    %c4_i32 = arith.constant 4 : i32
    %199 = vector.broadcast %c4_i32 : i32 to vector<8x4xi32>
    %200 = arith.select %198, %5, %199 : vector<8x4xi1>, vector<8x4xi32>
    %cst_80 = arith.constant dense<2147483647> : vector<8xi32>
    %201 = vector.multi_reduction <minsi>, %200, %cst_80 [1] : vector<8x4xi32> to vector<8xi32>
    %202 = vector.shape_cast %201 : vector<8xi32> to vector<8x1xi32>
    %203 = vector.broadcast %202 : vector<8x1xi32> to vector<8x4xi32>
    %204 = arith.cmpi eq, %5, %203 : vector<8x4xi32>
    %205 = arith.andi %198, %204 : vector<8x4xi1>
    %206 = arith.ori %194, %205 : vector<8x4xi1>
    %cst_81 = arith.constant 0xFF800000 : f32
    %207 = vector.broadcast %cst_81 : f32 to vector<8x4xf32>
    %208 = arith.select %205, %207, %193 : vector<8x4xi1>, vector<8x4xf32>
    %cst_82 = arith.constant dense<0xFF800000> : vector<8xf32>
    %209 = vector.multi_reduction <maximumf>, %208, %cst_82 [1] : vector<8x4xf32> to vector<8xf32>
    %210 = vector.shape_cast %209 : vector<8xf32> to vector<8x1xf32>
    %211 = vector.broadcast %210 : vector<8x1xf32> to vector<8x4xf32>
    %212 = arith.cmpf oeq, %208, %211 : vector<8x4xf32>
    %c4_i32_83 = arith.constant 4 : i32
    %213 = vector.broadcast %c4_i32_83 : i32 to vector<8x4xi32>
    %214 = arith.select %212, %5, %213 : vector<8x4xi1>, vector<8x4xi32>
    %cst_84 = arith.constant dense<2147483647> : vector<8xi32>
    %215 = vector.multi_reduction <minsi>, %214, %cst_84 [1] : vector<8x4xi32> to vector<8xi32>
    %216 = vector.shape_cast %215 : vector<8xi32> to vector<8x1xi32>
    %217 = vector.broadcast %216 : vector<8x1xi32> to vector<8x4xi32>
    %218 = arith.cmpi eq, %5, %217 : vector<8x4xi32>
    %219 = arith.andi %212, %218 : vector<8x4xi1>
    %220 = arith.ori %206, %219 : vector<8x4xi1>
    %cst_85 = arith.constant 0xFF800000 : f32
    %221 = vector.broadcast %cst_85 : f32 to vector<8x4xf32>
    %222 = arith.select %220, %193, %221 : vector<8x4xi1>, vector<8x4xf32>
    %cst_86 = arith.constant dense<0xFF800000> : vector<8xf32>
    %223 = vector.multi_reduction <maximumf>, %222, %cst_86 [1] : vector<8x4xf32> to vector<8xf32>
    %224 = vector.shape_cast %223 : vector<8xf32> to vector<8x1xf32>
    %225 = vector.broadcast %224 : vector<8x1xf32> to vector<8x4xf32>
    %226 = arith.subf %222, %225 : vector<8x4xf32>
    %227 = math.exp %226 : vector<8x4xf32>
    %cst_87 = arith.constant dense<0.000000e+00> : vector<8xf32>
    %228 = vector.multi_reduction <add>, %227, %cst_87 [1] : vector<8x4xf32> to vector<8xf32>
    %229 = vector.shape_cast %228 : vector<8xf32> to vector<8x1xf32>
    %230 = tpu.reciprocal %229 {approx = true} : vector<8x1xf32> -> vector<8x1xf32>
    %231 = vector.broadcast %230 : vector<8x1xf32> to vector<8x4xf32>
    %232 = arith.mulf %227, %231 : vector<8x4xf32>
    %cst_88 = arith.constant dense<0.000000e+00> : vector<8x512xf32>
    %233 = tpu.matmul %232, %6, %cst_88 {dimension_numbers = #tpu.dot_dimension_numbers<[1], [0], [0], [1], [0, 0, 1, 1], [], []>} : vector<8x4xf32>, vector<4x512xf32>, vector<8x512xf32> -> vector<8x512xf32>
    %234 = arith.mulf %178, %233 : vector<8x512xf32>
    %235 = arith.truncf %234 : vector<8x512xf32> to vector<8x512xbf16>
    %c0_89 = arith.constant 0 : index
    %c0_90 = arith.constant 0 : index
    %c0_91 = arith.constant 0 : index
    %236 = vector.load %arg13[%c0_89, %c0_90, %c0_91] : memref<2x512x32xbf16, #tpu.memory_space<vmem>>, vector<1x512x32xbf16>
    %237 = vector.shape_cast %236 : vector<1x512x32xbf16> to vector<512x32xbf16>
    %cst_92 = arith.constant dense<0.000000e+00> : vector<8x32xf32>
    %238 = tpu.matmul %235, %237, %cst_92 {dimension_numbers = #tpu.dot_dimension_numbers<[1], [0], [0], [1], [0, 0, 1, 1], [], []>} : vector<8x512xbf16>, vector<512x32xbf16>, vector<8x32xf32> -> vector<8x32xf32>
    %c0_93 = arith.constant 0 : index
    %c0_94 = arith.constant 0 : index
    %c0_95 = arith.constant 0 : index
    %239 = vector.load %arg14[%c0_93, %c0_94, %c0_95] : memref<2x4x32xf32, #tpu.memory_space<vmem>>, vector<1x4x32xf32>
    %240 = vector.shape_cast %239 : vector<1x4x32xf32> to vector<4x32xf32>
    %cst_96 = arith.constant dense<0.000000e+00> : vector<8x32xf32>
    %241 = tpu.matmul %232, %240, %cst_96 {dimension_numbers = #tpu.dot_dimension_numbers<[1], [0], [0], [1], [0, 0, 1, 1], [], []>} : vector<8x4xf32>, vector<4x32xf32>, vector<8x32xf32> -> vector<8x32xf32>
    %242 = arith.addf %238, %241 : vector<8x32xf32>
    %243 = arith.addf %141, %242 : vector<8x32xf32>
    %c1 = arith.constant 1 : index
    %c0_97 = arith.constant 0 : index
    %c0_98 = arith.constant 0 : index
    %244 = vector.load %arg4[%c1, %c0_97, %c0_98] : memref<2x1x32xf32, #tpu.memory_space<vmem>>, vector<1x1x32xf32>
    %245 = vector.shape_cast %244 : vector<1x1x32xf32> to vector<1x32xf32>
    %c1_99 = arith.constant 1 : index
    %c0_100 = arith.constant 0 : index
    %c0_101 = arith.constant 0 : index
    %246 = vector.load %arg5[%c1_99, %c0_100, %c0_101] : memref<2x1x32xf32, #tpu.memory_space<vmem>>, vector<1x1x32xf32>
    %247 = vector.shape_cast %246 : vector<1x1x32xf32> to vector<1x32xf32>
    %cst_102 = arith.constant dense<0.000000e+00> : vector<8xf32>
    %248 = vector.multi_reduction <add>, %243, %cst_102 [1] : vector<8x32xf32> to vector<8xf32>
    %249 = vector.shape_cast %248 : vector<8xf32> to vector<8x1xf32>
    %cst_103 = arith.constant 3.200000e+01 : f32
    %250 = vector.broadcast %cst_103 : f32 to vector<8x1xf32>
    %251 = arith.divf %249, %250 : vector<8x1xf32>
    %252 = vector.broadcast %251 : vector<8x1xf32> to vector<8x32xf32>
    %253 = arith.subf %243, %252 : vector<8x32xf32>
    %254 = arith.mulf %253, %253 : vector<8x32xf32>
    %cst_104 = arith.constant dense<0.000000e+00> : vector<8xf32>
    %255 = vector.multi_reduction <add>, %254, %cst_104 [1] : vector<8x32xf32> to vector<8xf32>
    %256 = vector.shape_cast %255 : vector<8xf32> to vector<8x1xf32>
    %cst_105 = arith.constant 3.200000e+01 : f32
    %257 = vector.broadcast %cst_105 : f32 to vector<8x1xf32>
    %258 = arith.divf %256, %257 : vector<8x1xf32>
    %259 = vector.broadcast %251 : vector<8x1xf32> to vector<8x32xf32>
    %260 = arith.subf %243, %259 : vector<8x32xf32>
    %cst_106 = arith.constant 9.99999974E-6 : f32
    %261 = vector.broadcast %cst_106 : f32 to vector<8x1xf32>
    %262 = arith.addf %258, %261 : vector<8x1xf32>
    %263 = math.rsqrt %262 : vector<8x1xf32>
    %264 = vector.broadcast %263 : vector<8x1xf32> to vector<8x32xf32>
    %265 = arith.mulf %260, %264 : vector<8x32xf32>
    %266 = vector.broadcast %245 : vector<1x32xf32> to vector<8x32xf32>
    %267 = arith.mulf %265, %266 : vector<8x32xf32>
    %268 = vector.broadcast %247 : vector<1x32xf32> to vector<8x32xf32>
    %269 = arith.addf %267, %268 : vector<8x32xf32>
    %270 = arith.truncf %269 : vector<8x32xf32> to vector<8x32xbf16>
    %c1_107 = arith.constant 1 : index
    %c0_108 = arith.constant 0 : index
    %c0_109 = arith.constant 0 : index
    %271 = vector.load %arg6[%c1_107, %c0_108, %c0_109] : memref<2x32x96xbf16, #tpu.memory_space<vmem>>, vector<1x32x96xbf16>
    %272 = vector.shape_cast %271 : vector<1x32x96xbf16> to vector<32x96xbf16>
    %cst_110 = arith.constant dense<0.000000e+00> : vector<8x96xf32>
    %273 = tpu.matmul %270, %272, %cst_110 {dimension_numbers = #tpu.dot_dimension_numbers<[1], [0], [0], [1], [0, 0, 1, 1], [], []>} : vector<8x32xbf16>, vector<32x96xbf16>, vector<8x96xf32> -> vector<8x96xf32>
    %274 = arith.truncf %273 : vector<8x96xf32> to vector<8x96xbf16>
    %c1_111 = arith.constant 1 : index
    %c0_112 = arith.constant 0 : index
    %c0_113 = arith.constant 0 : index
    %275 = vector.load %arg7[%c1_111, %c0_112, %c0_113] : memref<2x32x32xbf16, #tpu.memory_space<vmem>>, vector<1x32x32xbf16>
    %276 = vector.shape_cast %275 : vector<1x32x32xbf16> to vector<32x32xbf16>
    %cst_114 = arith.constant 0.000000e+00 : f32
    %277 = vector.broadcast %cst_114 : f32 to vector<8x32xf32>
    %278 = vector.extract_strided_slice %274 {offsets = [0, 0], sizes = [8, 8], strides = [1, 1]} : vector<8x96xbf16> to vector<8x8xbf16>
    %279 = vector.extract_strided_slice %274 {offsets = [0, 32], sizes = [8, 8], strides = [1, 1]} : vector<8x96xbf16> to vector<8x8xbf16>
    %280 = vector.extract_strided_slice %274 {offsets = [0, 64], sizes = [8, 8], strides = [1, 1]} : vector<8x96xbf16> to vector<8x8xbf16>
    %cst_115 = arith.constant dense<0.000000e+00> : vector<8x8xf32>
    %281 = tpu.matmul %278, %279, %cst_115 {dimension_numbers = #tpu.dot_dimension_numbers<[1], [1], [0], [0], [0, 0, 1, 0], [], []>} : vector<8x8xbf16>, vector<8x8xbf16>, vector<8x8xf32> -> vector<8x8xf32>
    %cst_116 = arith.constant 0.353553385 : f32
    %282 = vector.broadcast %cst_116 : f32 to vector<8x8xf32>
    %283 = arith.mulf %281, %282 : vector<8x8xf32>
    %cst_117 = arith.constant 0xFF800000 : f32
    %284 = vector.broadcast %cst_117 : f32 to vector<8x8xf32>
    %285 = arith.select %4, %283, %284 : vector<8x8xi1>, vector<8x8xf32>
    %cst_118 = arith.constant dense<0xFF800000> : vector<8xf32>
    %286 = vector.multi_reduction <maximumf>, %285, %cst_118 [1] : vector<8x8xf32> to vector<8xf32>
    %287 = vector.shape_cast %286 : vector<8xf32> to vector<8x1xf32>
    %288 = vector.broadcast %287 : vector<8x1xf32> to vector<8x8xf32>
    %289 = arith.subf %285, %288 : vector<8x8xf32>
    %290 = math.exp %289 : vector<8x8xf32>
    %cst_119 = arith.constant dense<0.000000e+00> : vector<8xf32>
    %291 = vector.multi_reduction <add>, %290, %cst_119 [1] : vector<8x8xf32> to vector<8xf32>
    %292 = vector.shape_cast %291 : vector<8xf32> to vector<8x1xf32>
    %293 = tpu.reciprocal %292 {approx = true} : vector<8x1xf32> -> vector<8x1xf32>
    %294 = vector.broadcast %293 : vector<8x1xf32> to vector<8x8xf32>
    %295 = arith.mulf %290, %294 : vector<8x8xf32>
    %296 = arith.truncf %295 : vector<8x8xf32> to vector<8x8xbf16>
    %cst_120 = arith.constant dense<0.000000e+00> : vector<8x8xf32>
    %297 = tpu.matmul %296, %280, %cst_120 {dimension_numbers = #tpu.dot_dimension_numbers<[1], [0], [0], [1], [0, 0, 1, 1], [], []>} : vector<8x8xbf16>, vector<8x8xbf16>, vector<8x8xf32> -> vector<8x8xf32>
    %298 = arith.truncf %297 : vector<8x8xf32> to vector<8x8xbf16>
    %299 = vector.extract_strided_slice %276 {offsets = [0, 0], sizes = [8, 32], strides = [1, 1]} : vector<32x32xbf16> to vector<8x32xbf16>
    %cst_121 = arith.constant dense<0.000000e+00> : vector<8x32xf32>
    %300 = tpu.matmul %298, %299, %cst_121 {dimension_numbers = #tpu.dot_dimension_numbers<[1], [0], [0], [1], [0, 0, 1, 1], [], []>} : vector<8x8xbf16>, vector<8x32xbf16>, vector<8x32xf32> -> vector<8x32xf32>
    %301 = arith.addf %277, %300 : vector<8x32xf32>
    %302 = vector.extract_strided_slice %274 {offsets = [0, 8], sizes = [8, 8], strides = [1, 1]} : vector<8x96xbf16> to vector<8x8xbf16>
    %303 = vector.extract_strided_slice %274 {offsets = [0, 40], sizes = [8, 8], strides = [1, 1]} : vector<8x96xbf16> to vector<8x8xbf16>
    %304 = vector.extract_strided_slice %274 {offsets = [0, 72], sizes = [8, 8], strides = [1, 1]} : vector<8x96xbf16> to vector<8x8xbf16>
    %cst_122 = arith.constant dense<0.000000e+00> : vector<8x8xf32>
    %305 = tpu.matmul %302, %303, %cst_122 {dimension_numbers = #tpu.dot_dimension_numbers<[1], [1], [0], [0], [0, 0, 1, 0], [], []>} : vector<8x8xbf16>, vector<8x8xbf16>, vector<8x8xf32> -> vector<8x8xf32>
    %cst_123 = arith.constant 0.353553385 : f32
    %306 = vector.broadcast %cst_123 : f32 to vector<8x8xf32>
    %307 = arith.mulf %305, %306 : vector<8x8xf32>
    %cst_124 = arith.constant 0xFF800000 : f32
    %308 = vector.broadcast %cst_124 : f32 to vector<8x8xf32>
    %309 = arith.select %4, %307, %308 : vector<8x8xi1>, vector<8x8xf32>
    %cst_125 = arith.constant dense<0xFF800000> : vector<8xf32>
    %310 = vector.multi_reduction <maximumf>, %309, %cst_125 [1] : vector<8x8xf32> to vector<8xf32>
    %311 = vector.shape_cast %310 : vector<8xf32> to vector<8x1xf32>
    %312 = vector.broadcast %311 : vector<8x1xf32> to vector<8x8xf32>
    %313 = arith.subf %309, %312 : vector<8x8xf32>
    %314 = math.exp %313 : vector<8x8xf32>
    %cst_126 = arith.constant dense<0.000000e+00> : vector<8xf32>
    %315 = vector.multi_reduction <add>, %314, %cst_126 [1] : vector<8x8xf32> to vector<8xf32>
    %316 = vector.shape_cast %315 : vector<8xf32> to vector<8x1xf32>
    %317 = tpu.reciprocal %316 {approx = true} : vector<8x1xf32> -> vector<8x1xf32>
    %318 = vector.broadcast %317 : vector<8x1xf32> to vector<8x8xf32>
    %319 = arith.mulf %314, %318 : vector<8x8xf32>
    %320 = arith.truncf %319 : vector<8x8xf32> to vector<8x8xbf16>
    %cst_127 = arith.constant dense<0.000000e+00> : vector<8x8xf32>
    %321 = tpu.matmul %320, %304, %cst_127 {dimension_numbers = #tpu.dot_dimension_numbers<[1], [0], [0], [1], [0, 0, 1, 1], [], []>} : vector<8x8xbf16>, vector<8x8xbf16>, vector<8x8xf32> -> vector<8x8xf32>
    %322 = arith.truncf %321 : vector<8x8xf32> to vector<8x8xbf16>
    %323 = vector.extract_strided_slice %276 {offsets = [8, 0], sizes = [8, 32], strides = [1, 1]} : vector<32x32xbf16> to vector<8x32xbf16>
    %cst_128 = arith.constant dense<0.000000e+00> : vector<8x32xf32>
    %324 = tpu.matmul %322, %323, %cst_128 {dimension_numbers = #tpu.dot_dimension_numbers<[1], [0], [0], [1], [0, 0, 1, 1], [], []>} : vector<8x8xbf16>, vector<8x32xbf16>, vector<8x32xf32> -> vector<8x32xf32>
    %325 = arith.addf %301, %324 : vector<8x32xf32>
    %326 = vector.extract_strided_slice %274 {offsets = [0, 16], sizes = [8, 8], strides = [1, 1]} : vector<8x96xbf16> to vector<8x8xbf16>
    %327 = vector.extract_strided_slice %274 {offsets = [0, 48], sizes = [8, 8], strides = [1, 1]} : vector<8x96xbf16> to vector<8x8xbf16>
    %328 = vector.extract_strided_slice %274 {offsets = [0, 80], sizes = [8, 8], strides = [1, 1]} : vector<8x96xbf16> to vector<8x8xbf16>
    %cst_129 = arith.constant dense<0.000000e+00> : vector<8x8xf32>
    %329 = tpu.matmul %326, %327, %cst_129 {dimension_numbers = #tpu.dot_dimension_numbers<[1], [1], [0], [0], [0, 0, 1, 0], [], []>} : vector<8x8xbf16>, vector<8x8xbf16>, vector<8x8xf32> -> vector<8x8xf32>
    %cst_130 = arith.constant 0.353553385 : f32
    %330 = vector.broadcast %cst_130 : f32 to vector<8x8xf32>
    %331 = arith.mulf %329, %330 : vector<8x8xf32>
    %cst_131 = arith.constant 0xFF800000 : f32
    %332 = vector.broadcast %cst_131 : f32 to vector<8x8xf32>
    %333 = arith.select %4, %331, %332 : vector<8x8xi1>, vector<8x8xf32>
    %cst_132 = arith.constant dense<0xFF800000> : vector<8xf32>
    %334 = vector.multi_reduction <maximumf>, %333, %cst_132 [1] : vector<8x8xf32> to vector<8xf32>
    %335 = vector.shape_cast %334 : vector<8xf32> to vector<8x1xf32>
    %336 = vector.broadcast %335 : vector<8x1xf32> to vector<8x8xf32>
    %337 = arith.subf %333, %336 : vector<8x8xf32>
    %338 = math.exp %337 : vector<8x8xf32>
    %cst_133 = arith.constant dense<0.000000e+00> : vector<8xf32>
    %339 = vector.multi_reduction <add>, %338, %cst_133 [1] : vector<8x8xf32> to vector<8xf32>
    %340 = vector.shape_cast %339 : vector<8xf32> to vector<8x1xf32>
    %341 = tpu.reciprocal %340 {approx = true} : vector<8x1xf32> -> vector<8x1xf32>
    %342 = vector.broadcast %341 : vector<8x1xf32> to vector<8x8xf32>
    %343 = arith.mulf %338, %342 : vector<8x8xf32>
    %344 = arith.truncf %343 : vector<8x8xf32> to vector<8x8xbf16>
    %cst_134 = arith.constant dense<0.000000e+00> : vector<8x8xf32>
    %345 = tpu.matmul %344, %328, %cst_134 {dimension_numbers = #tpu.dot_dimension_numbers<[1], [0], [0], [1], [0, 0, 1, 1], [], []>} : vector<8x8xbf16>, vector<8x8xbf16>, vector<8x8xf32> -> vector<8x8xf32>
    %346 = arith.truncf %345 : vector<8x8xf32> to vector<8x8xbf16>
    %347 = vector.extract_strided_slice %276 {offsets = [16, 0], sizes = [8, 32], strides = [1, 1]} : vector<32x32xbf16> to vector<8x32xbf16>
    %cst_135 = arith.constant dense<0.000000e+00> : vector<8x32xf32>
    %348 = tpu.matmul %346, %347, %cst_135 {dimension_numbers = #tpu.dot_dimension_numbers<[1], [0], [0], [1], [0, 0, 1, 1], [], []>} : vector<8x8xbf16>, vector<8x32xbf16>, vector<8x32xf32> -> vector<8x32xf32>
    %349 = arith.addf %325, %348 : vector<8x32xf32>
    %350 = vector.extract_strided_slice %274 {offsets = [0, 24], sizes = [8, 8], strides = [1, 1]} : vector<8x96xbf16> to vector<8x8xbf16>
    %351 = vector.extract_strided_slice %274 {offsets = [0, 56], sizes = [8, 8], strides = [1, 1]} : vector<8x96xbf16> to vector<8x8xbf16>
    %352 = vector.extract_strided_slice %274 {offsets = [0, 88], sizes = [8, 8], strides = [1, 1]} : vector<8x96xbf16> to vector<8x8xbf16>
    %cst_136 = arith.constant dense<0.000000e+00> : vector<8x8xf32>
    %353 = tpu.matmul %350, %351, %cst_136 {dimension_numbers = #tpu.dot_dimension_numbers<[1], [1], [0], [0], [0, 0, 1, 0], [], []>} : vector<8x8xbf16>, vector<8x8xbf16>, vector<8x8xf32> -> vector<8x8xf32>
    %cst_137 = arith.constant 0.353553385 : f32
    %354 = vector.broadcast %cst_137 : f32 to vector<8x8xf32>
    %355 = arith.mulf %353, %354 : vector<8x8xf32>
    %cst_138 = arith.constant 0xFF800000 : f32
    %356 = vector.broadcast %cst_138 : f32 to vector<8x8xf32>
    %357 = arith.select %4, %355, %356 : vector<8x8xi1>, vector<8x8xf32>
    %cst_139 = arith.constant dense<0xFF800000> : vector<8xf32>
    %358 = vector.multi_reduction <maximumf>, %357, %cst_139 [1] : vector<8x8xf32> to vector<8xf32>
    %359 = vector.shape_cast %358 : vector<8xf32> to vector<8x1xf32>
    %360 = vector.broadcast %359 : vector<8x1xf32> to vector<8x8xf32>
    %361 = arith.subf %357, %360 : vector<8x8xf32>
    %362 = math.exp %361 : vector<8x8xf32>
    %cst_140 = arith.constant dense<0.000000e+00> : vector<8xf32>
    %363 = vector.multi_reduction <add>, %362, %cst_140 [1] : vector<8x8xf32> to vector<8xf32>
    %364 = vector.shape_cast %363 : vector<8xf32> to vector<8x1xf32>
    %365 = tpu.reciprocal %364 {approx = true} : vector<8x1xf32> -> vector<8x1xf32>
    %366 = vector.broadcast %365 : vector<8x1xf32> to vector<8x8xf32>
    %367 = arith.mulf %362, %366 : vector<8x8xf32>
    %368 = arith.truncf %367 : vector<8x8xf32> to vector<8x8xbf16>
    %cst_141 = arith.constant dense<0.000000e+00> : vector<8x8xf32>
    %369 = tpu.matmul %368, %352, %cst_141 {dimension_numbers = #tpu.dot_dimension_numbers<[1], [0], [0], [1], [0, 0, 1, 1], [], []>} : vector<8x8xbf16>, vector<8x8xbf16>, vector<8x8xf32> -> vector<8x8xf32>
    %370 = arith.truncf %369 : vector<8x8xf32> to vector<8x8xbf16>
    %371 = vector.extract_strided_slice %276 {offsets = [24, 0], sizes = [8, 32], strides = [1, 1]} : vector<32x32xbf16> to vector<8x32xbf16>
    %cst_142 = arith.constant dense<0.000000e+00> : vector<8x32xf32>
    %372 = tpu.matmul %370, %371, %cst_142 {dimension_numbers = #tpu.dot_dimension_numbers<[1], [0], [0], [1], [0, 0, 1, 1], [], []>} : vector<8x8xbf16>, vector<8x32xbf16>, vector<8x32xf32> -> vector<8x32xf32>
    %373 = arith.addf %349, %372 : vector<8x32xf32>
    %374 = arith.addf %243, %373 : vector<8x32xf32>
    %c1_143 = arith.constant 1 : index
    %c0_144 = arith.constant 0 : index
    %c0_145 = arith.constant 0 : index
    %375 = vector.load %arg8[%c1_143, %c0_144, %c0_145] : memref<2x1x32xf32, #tpu.memory_space<vmem>>, vector<1x1x32xf32>
    %376 = vector.shape_cast %375 : vector<1x1x32xf32> to vector<1x32xf32>
    %377 = vector.broadcast %376 : vector<1x32xf32> to vector<8x32xf32>
    %378 = arith.addf %374, %377 : vector<8x32xf32>
    %c1_146 = arith.constant 1 : index
    %c0_147 = arith.constant 0 : index
    %c0_148 = arith.constant 0 : index
    %379 = vector.load %arg9[%c1_146, %c0_147, %c0_148] : memref<2x1x32xf32, #tpu.memory_space<vmem>>, vector<1x1x32xf32>
    %380 = vector.shape_cast %379 : vector<1x1x32xf32> to vector<1x32xf32>
    %c1_149 = arith.constant 1 : index
    %c0_150 = arith.constant 0 : index
    %c0_151 = arith.constant 0 : index
    %381 = vector.load %arg10[%c1_149, %c0_150, %c0_151] : memref<2x1x32xf32, #tpu.memory_space<vmem>>, vector<1x1x32xf32>
    %382 = vector.shape_cast %381 : vector<1x1x32xf32> to vector<1x32xf32>
    %cst_152 = arith.constant dense<0.000000e+00> : vector<8xf32>
    %383 = vector.multi_reduction <add>, %378, %cst_152 [1] : vector<8x32xf32> to vector<8xf32>
    %384 = vector.shape_cast %383 : vector<8xf32> to vector<8x1xf32>
    %cst_153 = arith.constant 3.200000e+01 : f32
    %385 = vector.broadcast %cst_153 : f32 to vector<8x1xf32>
    %386 = arith.divf %384, %385 : vector<8x1xf32>
    %387 = vector.broadcast %386 : vector<8x1xf32> to vector<8x32xf32>
    %388 = arith.subf %378, %387 : vector<8x32xf32>
    %389 = arith.mulf %388, %388 : vector<8x32xf32>
    %cst_154 = arith.constant dense<0.000000e+00> : vector<8xf32>
    %390 = vector.multi_reduction <add>, %389, %cst_154 [1] : vector<8x32xf32> to vector<8xf32>
    %391 = vector.shape_cast %390 : vector<8xf32> to vector<8x1xf32>
    %cst_155 = arith.constant 3.200000e+01 : f32
    %392 = vector.broadcast %cst_155 : f32 to vector<8x1xf32>
    %393 = arith.divf %391, %392 : vector<8x1xf32>
    %394 = vector.broadcast %386 : vector<8x1xf32> to vector<8x32xf32>
    %395 = arith.subf %378, %394 : vector<8x32xf32>
    %cst_156 = arith.constant 9.99999974E-6 : f32
    %396 = vector.broadcast %cst_156 : f32 to vector<8x1xf32>
    %397 = arith.addf %393, %396 : vector<8x1xf32>
    %398 = math.rsqrt %397 : vector<8x1xf32>
    %399 = vector.broadcast %398 : vector<8x1xf32> to vector<8x32xf32>
    %400 = arith.mulf %395, %399 : vector<8x32xf32>
    %401 = vector.broadcast %380 : vector<1x32xf32> to vector<8x32xf32>
    %402 = arith.mulf %400, %401 : vector<8x32xf32>
    %403 = vector.broadcast %382 : vector<1x32xf32> to vector<8x32xf32>
    %404 = arith.addf %402, %403 : vector<8x32xf32>
    %405 = arith.truncf %404 : vector<8x32xf32> to vector<8x32xbf16>
    %c1_157 = arith.constant 1 : index
    %c0_158 = arith.constant 0 : index
    %c0_159 = arith.constant 0 : index
    %406 = vector.load %arg11[%c1_157, %c0_158, %c0_159] : memref<2x32x520xbf16, #tpu.memory_space<vmem>>, vector<1x32x520xbf16>
    %407 = vector.shape_cast %406 : vector<1x32x520xbf16> to vector<32x520xbf16>
    %cst_160 = arith.constant dense<0.000000e+00> : vector<8x520xf32>
    %408 = tpu.matmul %405, %407, %cst_160 {dimension_numbers = #tpu.dot_dimension_numbers<[1], [0], [0], [1], [0, 0, 1, 1], [], []>} : vector<8x32xbf16>, vector<32x520xbf16>, vector<8x520xf32> -> vector<8x520xf32>
    %c1_161 = arith.constant 1 : index
    %c0_162 = arith.constant 0 : index
    %c0_163 = arith.constant 0 : index
    %409 = vector.load %arg12[%c1_161, %c0_162, %c0_163] : memref<2x1x520xf32, #tpu.memory_space<vmem>>, vector<1x1x520xf32>
    %410 = vector.shape_cast %409 : vector<1x1x520xf32> to vector<1x520xf32>
    %411 = vector.broadcast %410 : vector<1x520xf32> to vector<8x520xf32>
    %412 = arith.addf %408, %411 : vector<8x520xf32>
    %413 = vector.extract_strided_slice %412 {offsets = [0, 0], sizes = [8, 512], strides = [1, 1]} : vector<8x520xf32> to vector<8x512xf32>
    %cst_164 = arith.constant 0.000000e+00 : f32
    %414 = vector.broadcast %cst_164 : f32 to vector<8x512xf32>
    %415 = arith.maximumf %413, %414 : vector<8x512xf32>
    %416 = vector.extract_strided_slice %412 {offsets = [0, 512], sizes = [8, 4], strides = [1, 1]} : vector<8x520xf32> to vector<8x4xf32>
    %417 = vector.extract_strided_slice %412 {offsets = [0, 516], sizes = [8, 4], strides = [1, 1]} : vector<8x520xf32> to vector<8x4xf32>
    %cst_165 = arith.constant 2.000000e+01 : f32
    %418 = vector.broadcast %cst_165 : f32 to vector<8x4xf32>
    %419 = arith.cmpf ogt, %417, %418 : vector<8x4xf32>
    %cst_166 = arith.constant 2.000000e+01 : f32
    %420 = vector.broadcast %cst_166 : f32 to vector<8x4xf32>
    %421 = arith.minimumf %417, %420 : vector<8x4xf32>
    %422 = math.exp %421 : vector<8x4xf32>
    %cst_167 = arith.constant 1.000000e+00 : f32
    %423 = vector.broadcast %cst_167 : f32 to vector<8x4xf32>
    %424 = arith.addf %423, %422 : vector<8x4xf32>
    %425 = math.log %424 : vector<8x4xf32>
    %426 = arith.select %419, %417, %425 : vector<8x4xi1>, vector<8x4xf32>
    %c0_168 = arith.constant 0 : index
    %c1_169 = arith.constant 1 : index
    %c0_170 = arith.constant 0 : index
    %c0_171 = arith.constant 0 : index
    %427 = vector.load %arg2[%c0_168, %c1_169, %c0_170, %c0_171] : memref<1x2x8x4xf32, #tpu.memory_space<vmem>>, vector<1x1x8x4xf32>
    %428 = vector.shape_cast %427 : vector<1x1x8x4xf32> to vector<8x4xf32>
    %429 = arith.mulf %428, %426 : vector<8x4xf32>
    %430 = arith.addf %416, %429 : vector<8x4xf32>
    %false_172 = arith.constant false
    %431 = vector.broadcast %false_172 : i1 to vector<8x4xi1>
    %cst_173 = arith.constant dense<0xFF800000> : vector<8xf32>
    %432 = vector.multi_reduction <maximumf>, %430, %cst_173 [1] : vector<8x4xf32> to vector<8xf32>
    %433 = vector.shape_cast %432 : vector<8xf32> to vector<8x1xf32>
    %434 = vector.broadcast %433 : vector<8x1xf32> to vector<8x4xf32>
    %435 = arith.cmpf oeq, %430, %434 : vector<8x4xf32>
    %c4_i32_174 = arith.constant 4 : i32
    %436 = vector.broadcast %c4_i32_174 : i32 to vector<8x4xi32>
    %437 = arith.select %435, %5, %436 : vector<8x4xi1>, vector<8x4xi32>
    %cst_175 = arith.constant dense<2147483647> : vector<8xi32>
    %438 = vector.multi_reduction <minsi>, %437, %cst_175 [1] : vector<8x4xi32> to vector<8xi32>
    %439 = vector.shape_cast %438 : vector<8xi32> to vector<8x1xi32>
    %440 = vector.broadcast %439 : vector<8x1xi32> to vector<8x4xi32>
    %441 = arith.cmpi eq, %5, %440 : vector<8x4xi32>
    %442 = arith.andi %435, %441 : vector<8x4xi1>
    %443 = arith.ori %431, %442 : vector<8x4xi1>
    %cst_176 = arith.constant 0xFF800000 : f32
    %444 = vector.broadcast %cst_176 : f32 to vector<8x4xf32>
    %445 = arith.select %442, %444, %430 : vector<8x4xi1>, vector<8x4xf32>
    %cst_177 = arith.constant dense<0xFF800000> : vector<8xf32>
    %446 = vector.multi_reduction <maximumf>, %445, %cst_177 [1] : vector<8x4xf32> to vector<8xf32>
    %447 = vector.shape_cast %446 : vector<8xf32> to vector<8x1xf32>
    %448 = vector.broadcast %447 : vector<8x1xf32> to vector<8x4xf32>
    %449 = arith.cmpf oeq, %445, %448 : vector<8x4xf32>
    %c4_i32_178 = arith.constant 4 : i32
    %450 = vector.broadcast %c4_i32_178 : i32 to vector<8x4xi32>
    %451 = arith.select %449, %5, %450 : vector<8x4xi1>, vector<8x4xi32>
    %cst_179 = arith.constant dense<2147483647> : vector<8xi32>
    %452 = vector.multi_reduction <minsi>, %451, %cst_179 [1] : vector<8x4xi32> to vector<8xi32>
    %453 = vector.shape_cast %452 : vector<8xi32> to vector<8x1xi32>
    %454 = vector.broadcast %453 : vector<8x1xi32> to vector<8x4xi32>
    %455 = arith.cmpi eq, %5, %454 : vector<8x4xi32>
    %456 = arith.andi %449, %455 : vector<8x4xi1>
    %457 = arith.ori %443, %456 : vector<8x4xi1>
    %cst_180 = arith.constant 0xFF800000 : f32
    %458 = vector.broadcast %cst_180 : f32 to vector<8x4xf32>
    %459 = arith.select %457, %430, %458 : vector<8x4xi1>, vector<8x4xf32>
    %cst_181 = arith.constant dense<0xFF800000> : vector<8xf32>
    %460 = vector.multi_reduction <maximumf>, %459, %cst_181 [1] : vector<8x4xf32> to vector<8xf32>
    %461 = vector.shape_cast %460 : vector<8xf32> to vector<8x1xf32>
    %462 = vector.broadcast %461 : vector<8x1xf32> to vector<8x4xf32>
    %463 = arith.subf %459, %462 : vector<8x4xf32>
    %464 = math.exp %463 : vector<8x4xf32>
    %cst_182 = arith.constant dense<0.000000e+00> : vector<8xf32>
    %465 = vector.multi_reduction <add>, %464, %cst_182 [1] : vector<8x4xf32> to vector<8xf32>
    %466 = vector.shape_cast %465 : vector<8xf32> to vector<8x1xf32>
    %467 = tpu.reciprocal %466 {approx = true} : vector<8x1xf32> -> vector<8x1xf32>
    %468 = vector.broadcast %467 : vector<8x1xf32> to vector<8x4xf32>
    %469 = arith.mulf %464, %468 : vector<8x4xf32>
    %cst_183 = arith.constant dense<0.000000e+00> : vector<8x512xf32>
    %470 = tpu.matmul %469, %6, %cst_183 {dimension_numbers = #tpu.dot_dimension_numbers<[1], [0], [0], [1], [0, 0, 1, 1], [], []>} : vector<8x4xf32>, vector<4x512xf32>, vector<8x512xf32> -> vector<8x512xf32>
    %471 = arith.mulf %415, %470 : vector<8x512xf32>
    %472 = arith.truncf %471 : vector<8x512xf32> to vector<8x512xbf16>
    %c1_184 = arith.constant 1 : index
    %c0_185 = arith.constant 0 : index
    %c0_186 = arith.constant 0 : index
    %473 = vector.load %arg13[%c1_184, %c0_185, %c0_186] : memref<2x512x32xbf16, #tpu.memory_space<vmem>>, vector<1x512x32xbf16>
    %474 = vector.shape_cast %473 : vector<1x512x32xbf16> to vector<512x32xbf16>
    %cst_187 = arith.constant dense<0.000000e+00> : vector<8x32xf32>
    %475 = tpu.matmul %472, %474, %cst_187 {dimension_numbers = #tpu.dot_dimension_numbers<[1], [0], [0], [1], [0, 0, 1, 1], [], []>} : vector<8x512xbf16>, vector<512x32xbf16>, vector<8x32xf32> -> vector<8x32xf32>
    %c1_188 = arith.constant 1 : index
    %c0_189 = arith.constant 0 : index
    %c0_190 = arith.constant 0 : index
    %476 = vector.load %arg14[%c1_188, %c0_189, %c0_190] : memref<2x4x32xf32, #tpu.memory_space<vmem>>, vector<1x4x32xf32>
    %477 = vector.shape_cast %476 : vector<1x4x32xf32> to vector<4x32xf32>
    %cst_191 = arith.constant dense<0.000000e+00> : vector<8x32xf32>
    %478 = tpu.matmul %469, %477, %cst_191 {dimension_numbers = #tpu.dot_dimension_numbers<[1], [0], [0], [1], [0, 0, 1, 1], [], []>} : vector<8x4xf32>, vector<4x32xf32>, vector<8x32xf32> -> vector<8x32xf32>
    %479 = arith.addf %475, %478 : vector<8x32xf32>
    %480 = arith.addf %378, %479 : vector<8x32xf32>
    %c0_192 = arith.constant 0 : index
    %c0_193 = arith.constant 0 : index
    %481 = vector.load %arg15[%c0_192, %c0_193] : memref<1x32xf32, #tpu.memory_space<vmem>>, vector<1x32xf32>
    %c0_194 = arith.constant 0 : index
    %c0_195 = arith.constant 0 : index
    %482 = vector.load %arg16[%c0_194, %c0_195] : memref<1x32xf32, #tpu.memory_space<vmem>>, vector<1x32xf32>
    %cst_196 = arith.constant dense<0.000000e+00> : vector<8xf32>
    %483 = vector.multi_reduction <add>, %480, %cst_196 [1] : vector<8x32xf32> to vector<8xf32>
    %484 = vector.shape_cast %483 : vector<8xf32> to vector<8x1xf32>
    %cst_197 = arith.constant 3.200000e+01 : f32
    %485 = vector.broadcast %cst_197 : f32 to vector<8x1xf32>
    %486 = arith.divf %484, %485 : vector<8x1xf32>
    %487 = vector.broadcast %486 : vector<8x1xf32> to vector<8x32xf32>
    %488 = arith.subf %480, %487 : vector<8x32xf32>
    %489 = arith.mulf %488, %488 : vector<8x32xf32>
    %cst_198 = arith.constant dense<0.000000e+00> : vector<8xf32>
    %490 = vector.multi_reduction <add>, %489, %cst_198 [1] : vector<8x32xf32> to vector<8xf32>
    %491 = vector.shape_cast %490 : vector<8xf32> to vector<8x1xf32>
    %cst_199 = arith.constant 3.200000e+01 : f32
    %492 = vector.broadcast %cst_199 : f32 to vector<8x1xf32>
    %493 = arith.divf %491, %492 : vector<8x1xf32>
    %494 = vector.broadcast %486 : vector<8x1xf32> to vector<8x32xf32>
    %495 = arith.subf %480, %494 : vector<8x32xf32>
    %cst_200 = arith.constant 9.99999974E-6 : f32
    %496 = vector.broadcast %cst_200 : f32 to vector<8x1xf32>
    %497 = arith.addf %493, %496 : vector<8x1xf32>
    %498 = math.rsqrt %497 : vector<8x1xf32>
    %499 = vector.broadcast %498 : vector<8x1xf32> to vector<8x32xf32>
    %500 = arith.mulf %495, %499 : vector<8x32xf32>
    %501 = vector.broadcast %481 : vector<1x32xf32> to vector<8x32xf32>
    %502 = arith.mulf %500, %501 : vector<8x32xf32>
    %503 = vector.broadcast %482 : vector<1x32xf32> to vector<8x32xf32>
    %504 = arith.addf %502, %503 : vector<8x32xf32>
    %505 = arith.truncf %504 : vector<8x32xf32> to vector<8x32xbf16>
    %c0_201 = arith.constant 0 : index
    %c0_202 = arith.constant 0 : index
    %506 = vector.load %arg17[%c0_201, %c0_202] : memref<32x128xbf16, #tpu.memory_space<vmem>>, vector<32x128xbf16>
    %cst_203 = arith.constant dense<0.000000e+00> : vector<8x128xf32>
    %507 = tpu.matmul %505, %506, %cst_203 {dimension_numbers = #tpu.dot_dimension_numbers<[1], [0], [0], [1], [0, 0, 1, 1], [], []>} : vector<8x32xbf16>, vector<32x128xbf16>, vector<8x128xf32> -> vector<8x128xf32>
    %c0_204 = arith.constant 0 : index
    %c0_205 = arith.constant 0 : index
    %508 = vector.load %arg18[%c0_204, %c0_205] : memref<1x128xf32, #tpu.memory_space<vmem>>, vector<1x128xf32>
    %509 = vector.broadcast %508 : vector<1x128xf32> to vector<8x128xf32>
    %510 = arith.addf %507, %509 : vector<8x128xf32>
    %c0_206 = arith.constant 0 : index
    %c0_207 = arith.constant 0 : index
    %c0_208 = arith.constant 0 : index
    %511 = vector.load %arg19[%c0_206, %c0_207, %c0_208] : memref<1x8x128xf32, #tpu.memory_space<vmem>>, vector<1x8x128xf32>
    %512 = vector.shape_cast %511 : vector<1x8x128xf32> to vector<8x128xf32>
    %513 = vector.shape_cast %510 : vector<8x128xf32> to vector<1x8x128xf32>
    tpu.vector_store %arg19[%c0_206, %c0_207, %c0_208], %513 {strides = array<i32>} : memref<1x8x128xf32, #tpu.memory_space<vmem>>, vector<1x8x128xf32>,
    return
  }
  func.func @transform_0(%arg0: i32) -> (i32, i32, i32) {
    %c0_i32 = arith.constant 0 : i32
    %c0_i32_0 = arith.constant 0 : i32
    %c0_i32_1 = arith.constant 0 : i32
    return %arg0, %c0_i32, %c0_i32_0 : i32, i32, i32
  }
  func.func @transform_1(%arg0: i32) -> (i32, i32, i32, i32) {
    %c0_i32 = arith.constant 0 : i32
    %c0_i32_0 = arith.constant 0 : i32
    %c0_i32_1 = arith.constant 0 : i32
    %c0_i32_2 = arith.constant 0 : i32
    return %arg0, %c0_i32, %c0_i32_0, %c0_i32_1 : i32, i32, i32, i32
  }
  func.func @transform_2(%arg0: i32) -> (i32, i32) {
    %c0_i32 = arith.constant 0 : i32
    %c0_i32_0 = arith.constant 0 : i32
    %c0_i32_1 = arith.constant 0 : i32
    return %c0_i32, %c0_i32_0 : i32, i32
  }
  func.func @transform_3(%arg0: i32) -> (i32, i32, i32) {
    %c0_i32 = arith.constant 0 : i32
    %c0_i32_0 = arith.constant 0 : i32
    %c0_i32_1 = arith.constant 0 : i32
    %c0_i32_2 = arith.constant 0 : i32
    return %c0_i32, %c0_i32_0, %c0_i32_1 : i32, i32, i32
  }
  func.func @transform_4(%arg0: i32) -> (i32, i32, i32) {
    %c0_i32 = arith.constant 0 : i32
    %c0_i32_0 = arith.constant 0 : i32
    %c0_i32_1 = arith.constant 0 : i32
    %c0_i32_2 = arith.constant 0 : i32
    return %c0_i32, %c0_i32_0, %c0_i32_1 : i32, i32, i32
  }
  func.func @transform_5(%arg0: i32) -> (i32, i32, i32) {
    %c0_i32 = arith.constant 0 : i32
    %c0_i32_0 = arith.constant 0 : i32
    %c0_i32_1 = arith.constant 0 : i32
    %c0_i32_2 = arith.constant 0 : i32
    return %c0_i32, %c0_i32_0, %c0_i32_1 : i32, i32, i32
  }
  func.func @transform_6(%arg0: i32) -> (i32, i32, i32) {
    %c0_i32 = arith.constant 0 : i32
    %c0_i32_0 = arith.constant 0 : i32
    %c0_i32_1 = arith.constant 0 : i32
    %c0_i32_2 = arith.constant 0 : i32
    return %c0_i32, %c0_i32_0, %c0_i32_1 : i32, i32, i32
  }
  func.func @transform_7(%arg0: i32) -> (i32, i32, i32) {
    %c0_i32 = arith.constant 0 : i32
    %c0_i32_0 = arith.constant 0 : i32
    %c0_i32_1 = arith.constant 0 : i32
    %c0_i32_2 = arith.constant 0 : i32
    return %c0_i32, %c0_i32_0, %c0_i32_1 : i32, i32, i32
  }
  func.func @transform_8(%arg0: i32) -> (i32, i32, i32) {
    %c0_i32 = arith.constant 0 : i32
    %c0_i32_0 = arith.constant 0 : i32
    %c0_i32_1 = arith.constant 0 : i32
    %c0_i32_2 = arith.constant 0 : i32
    return %c0_i32, %c0_i32_0, %c0_i32_1 : i32, i32, i32
  }
  func.func @transform_9(%arg0: i32) -> (i32, i32, i32) {
    %c0_i32 = arith.constant 0 : i32
    %c0_i32_0 = arith.constant 0 : i32
    %c0_i32_1 = arith.constant 0 : i32
    %c0_i32_2 = arith.constant 0 : i32
    return %c0_i32, %c0_i32_0, %c0_i32_1 : i32, i32, i32
  }
  func.func @transform_10(%arg0: i32) -> (i32, i32, i32) {
    %c0_i32 = arith.constant 0 : i32
    %c0_i32_0 = arith.constant 0 : i32
    %c0_i32_1 = arith.constant 0 : i32
    %c0_i32_2 = arith.constant 0 : i32
    return %c0_i32, %c0_i32_0, %c0_i32_1 : i32, i32, i32
  }
  func.func @transform_11(%arg0: i32) -> (i32, i32, i32) {
    %c0_i32 = arith.constant 0 : i32
    %c0_i32_0 = arith.constant 0 : i32
    %c0_i32_1 = arith.constant 0 : i32
    %c0_i32_2 = arith.constant 0 : i32
    return %c0_i32, %c0_i32_0, %c0_i32_1 : i32, i32, i32
  }
  func.func @transform_12(%arg0: i32) -> (i32, i32, i32) {
    %c0_i32 = arith.constant 0 : i32
    %c0_i32_0 = arith.constant 0 : i32
    %c0_i32_1 = arith.constant 0 : i32
    %c0_i32_2 = arith.constant 0 : i32
    return %c0_i32, %c0_i32_0, %c0_i32_1 : i32, i32, i32
  }
  func.func @transform_13(%arg0: i32) -> (i32, i32, i32) {
    %c0_i32 = arith.constant 0 : i32
    %c0_i32_0 = arith.constant 0 : i32
    %c0_i32_1 = arith.constant 0 : i32
    %c0_i32_2 = arith.constant 0 : i32
    return %c0_i32, %c0_i32_0, %c0_i32_1 : i32, i32, i32
  }
  func.func @transform_14(%arg0: i32) -> (i32, i32) {
    %c0_i32 = arith.constant 0 : i32
    %c0_i32_0 = arith.constant 0 : i32
    %c0_i32_1 = arith.constant 0 : i32
    return %c0_i32, %c0_i32_0 : i32, i32
  }
  func.func @transform_15(%arg0: i32) -> (i32, i32) {
    %c0_i32 = arith.constant 0 : i32
    %c0_i32_0 = arith.constant 0 : i32
    %c0_i32_1 = arith.constant 0 : i32
    return %c0_i32, %c0_i32_0 : i32, i32
  }
  func.func @transform_16(%arg0: i32) -> (i32, i32) {
    %c0_i32 = arith.constant 0 : i32
    %c0_i32_0 = arith.constant 0 : i32
    %c0_i32_1 = arith.constant 0 : i32
    return %c0_i32, %c0_i32_0 : i32, i32
  }
  func.func @transform_17(%arg0: i32) -> (i32, i32) {
    %c0_i32 = arith.constant 0 : i32
    %c0_i32_0 = arith.constant 0 : i32
    %c0_i32_1 = arith.constant 0 : i32
    return %c0_i32, %c0_i32_0 : i32, i32
  }
  func.func @transform_18(%arg0: i32) -> (i32, i32, i32) {
    %c0_i32 = arith.constant 0 : i32
    %c0_i32_0 = arith.constant 0 : i32
    %c0_i32_1 = arith.constant 0 : i32
    return %arg0, %c0_i32, %c0_i32_0 : i32, i32, i32
  }
}

</mosaic_0001>

<bundles_post_ra>
// kernel: tpu_custom_call.1
= control target key start
LH: loop header
LB: loop body
LE: loop exit
PB: predicated region body
PF: predicated region fallthrough
CT: control target
= control target key end

     0   :  { %s4666_s0 = inlined_call_operand.vmem [shape: f32[2,8,32], index: 0, kind: input, shape index: {}]   ;;  %s4667_s1 = inlined_call_operand.vmem [shape: f32[2,2,8,4], index: 1, kind: input, shape index: {}]   ;;  %s4668_s2 = inlined_call_operand.vmem [shape: f32[4,512], index: 2, kind: input, shape index: {}]   ;;  %s4669_s3 = inlined_call_operand.vmem [shape: f32[2,1,32], index: 3, kind: input, shape index: {}]   ;;  %s4670_s4 = inlined_call_operand.vmem [shape: f32[2,1,32], index: 4, kind: input, shape index: {}]   ;;  %s4671_s5 = inlined_call_operand.vmem [shape: bf16[2,32,96], index: 5, kind: input, shape index: {}]   ;;  %s4672_s6 = inlined_call_operand.vmem [shape: bf16[2,32,32], index: 6, kind: input, shape index: {}]   ;;  %s4673_s7 = inlined_call_operand.vmem [shape: f32[2,1,32], index: 7, kind: input, shape index: {}]   ;;  %s4674_s8 = inlined_call_operand.vmem [shape: f32[2,1,32], index: 8, kind: input, shape index: {}]   ;;  %s4675_s9 = inlined_call_operand.vmem [shape: f32[2,1,32], index: 9, kind: input, shape index: {}]   ;;  %s4676_s10 = inlined_call_operand.vmem [shape: bf16[2,32,520], index: 10, kind: input, shape index: {}]   ;;  %s4677_s11 = inlined_call_operand.vmem [shape: f32[2,1,520], index: 11, kind: input, shape index: {}]   ;;  %s4678_s12 = inlined_call_operand.vmem [shape: bf16[2,512,32], index: 12, kind: input, shape index: {}]   ;;  %s4679_s13 = inlined_call_operand.vmem [shape: f32[2,4,32], index: 13, kind: input, shape index: {}]   ;;  %s4680_s14 = inlined_call_operand.vmem [shape: f32[1,32], index: 14, kind: input, shape index: {}]   ;;  %s4681_s15 = inlined_call_operand.vmem [shape: f32[1,32], index: 15, kind: input, shape index: {}]   ;;  %s4682_s16 = inlined_call_operand.vmem [shape: bf16[32,128], index: 16, kind: input, shape index: {}]   ;;  %s4683_s17 = inlined_call_operand.vmem [shape: f32[1,128], index: 17, kind: input, shape index: {}]   ;;  %s4684_s18 = inlined_call_operand.hbm [shape: f32[2,8,128], index: 18, kind: output, shape index: {}]  }
   0x1   :  { %4704 = sst [smem:[#allocation11_spill]] %s4666_s0 }
   0x2   :  { %4705 = sst [smem:[#allocation12_spill]] %s4667_s1 }
   0x3   :  { %4706 = sst [smem:[#allocation13_spill]] %s4668_s2 }
   0x4   :  { %4707 = sst [smem:[#allocation14_spill]] %s4669_s3 }
   0x5   :  { %4708 = sst [smem:[#allocation15_spill]] %s4670_s4 }
   0x6   :  { %23 = vsyncpa [#allocation3], 0 }
   0x7   :  { %25 = vsyncpa [#allocation3 + $0x1], 0  ;;  %s3859_s27 = smov 0   ;;  %s3861_s28 = smov 0  }
   0x8   :  { %s3863_s29 = smov 0   ;;  %s3865_s30 = smov 0  }
   0x9 LB: > { %4709 = sst [smem:[#allocation5_spill]] %s3737_s27  ;;  %s3880_s0 = sadd.s32 4294967295, %s3749_s30   ;;  %s3749_s30 = sphi %s3865_s30, %s4743_s30   ;;  %s3745_s29 = sphi %s3863_s29, %s4745_s29   ;;  %s3741_s28 = sphi %s3861_s28, %s4747_s28   ;;  %s3737_s27 = sphi %s3859_s27, %s4746_s27  }
   0xa   : > { %4710 = sst [smem:[#allocation6_spill]] %s3745_s29  ;;  %s2950_s19 = sadd.s32 4294967294, %s3749_s30  }
   0xb   : > { %4711 = sst [smem:[#allocation7_spill]] %s3749_s30  ;;  %s3884_s1 = sadd.s32 1, %s3749_s30  }
   0xc   : > { %4712 = sst [smem:[#allocation8_spill]] %s3884_s1  ;;  %s426_s20 = sadd.s32 1, %s3745_s29 }
   0xd   : > { %s423_s21 = ssub.s32 %s3749_s30, %s3884_s1  ;;  %p436_p0 = scmp.ne.s32.totalorder %s3745_s29, %s3741_s28 }
   0xe   : > { %p424_p1 = scmp.eq.s32.totalorder %s423_s21, 0  ;;  %p437_p2 = scmp.eq.s32.totalorder %s3880_s0, 1 }
   0xf   : > { %p442_p3 = scmp.ne.s32.totalorder %s3741_s28, %s3737_s27  ;;  %p443_p4 = scmp.eq.s32.totalorder %s2950_s19, 1 }
  0x10   : > { %s3895_s22 = scalar_select %p424_p1, %s3745_s29, %s426_s20  }
  0x11   : > { %p3897_p5 = por %p437_p2, %p436_p0  ;;  %p3901_p6 = por %p443_p4, %p442_p3 }
  0x12   : > { %4713 = sst [smem:[#allocation9_spill]] %s3895_s22  ;;  %p2953_p7 = scmp.ge.s32.totalorder %s3749_s30, 1 }
  0x13   : > { %s4715_s23 = scalar_select %p3901_p6, 1, 0 }
  0x14   : > { %p524_p8 = scmp.lt.s32.totalorder %s3749_s30, 3 }
  0x15   : > { %4716 = sst [smem:[#allocation10_spill]] %s4715_s23 }
  0x16   : > { %p525_p9 = pnand %p2953_p7, %p524_p8 }
  0x17   : > { %p582_p10 = scmp.lt.s32.totalorder (!%p525_p9), %s3880_s0, 1  ;;  %s4717_s20 = sld [smem:[#allocation11_spill]] (!%p525_p9) }
  0x18   : > { %528 = sbr.rel (%p525_p9) target bundleno = 7516 (0x1d5c), region = 92  ;;  %s4718_s3 = sld [smem:[#allocation14_spill]] (!%p525_p9) }
  0x19   : > { %s4719_s4 = sld [smem:[#allocation15_spill]] (!%p525_p9)  ;;  %s4686_s26 = smov (!%p525_p9), 112  }
  0x1a   : > { %s4694_s19 = smov (!%p525_p9), 64   ;;  %s4690_s22 = smov (!%p525_p9), 40  }
  0x1b   : > { %s4722_s29 = sld [smem:[#allocation12_spill]] (!%p525_p9)  ;;  %s4728_s1 = smov (!%p525_p9), 72  }
  0x1c   : > { %s4725_s23 = sld [smem:[#allocation13_spill]] (!%p525_p9)  ;;  %s3707_s27 = scalar_lea.hbm (!%p525_p9), %s4684_s18, 16 }
  0x1d   : > { %s3909_s24 = scalar_select %p582_p10, %s3880_s0, 1  ;;  %vm602_vm0 = vcmask 261120   ;;  %v3751_v2 = vmov 32.0   ;;  %v3473_v14 = vld [vmem:[%s4671_s5 + $0x8] sm:$0xff]  ;;  %v3472_v15 = vld [vmem:[%s4671_s5] sm:$0xff]  ;;  %vm683_vm5 = vcmask 64512   ;;  %v593_v43 = vlaneseq }
  0x1e   : > { %3627 = vrcp.f32 %v3751_v2  ;;  %666 = vmatpush.bf16.msra.mxu0 %v3473_v14  ;;  %v3614_v25 = vld [vmem:[%s4718_s3] ss:$0 sm:$0xff]  ;;  %vm722_vm7 = vcmask 1043456   ;;  %vm1197_vm12 = vcmask 31744  }
  0x1f   : > { %s2955_s25 = sshll.u32 %s3909_s24, 3  ;;  %v3615_v28 = vld [vmem:[%s4719_s4] ss:$0 sm:$0xff]  ;;  %v594_v44 = vshrl.u32 %v593_v43, 7  ;;  %v3952_v45 = vand.u32 127, %v593_v43 }
  0x20   : > { %s585_s21 = scalar_lea.vmem %s4717_s20, %s2955_s25  ;;  %s4687_s20 = smov 88   ;;  %v674_v57 = vld [vmem:[%s4672_s6] sm:$0xf] }
  0x21   : > { %v3915_v0 = vld [vmem:[%s585_s21] sm:$0xff]  ;;  %s4689_s21 = smov 96   ;;  %s4688_s25 = smov 80   ;;  %vm3955_vm6 = vcmp.ge.s32.totalorder %v594_v44, %v3952_v45  ;;  %v822_v58 = vsel %vm722_vm7, %v674_v57, 0 }
  0x22   : > { %v603_v1 = vsel %vm602_vm0, %v3915_v0, 0.0  ;;  %667 = vmatpush.bf16.msra.mxu0 %v3472_v15 }
  0x23   : > { %604 = vadd.xlane.f32.xlu0 %v603_v1 }
  0x24   : > { %v3628_v3 = vpop.eup %3627 }
  0x25   : > { %v607_v4 = vmul.f32 32.0, %v3628_v3  ;;  %vm611_vm1 = vweird.f32 %v3628_v3 }
  0x27   : > { %v608_v5 = vsub.f32 1.0, %v607_v4 }
  0x29   : > { %v609_v6 = vmul.f32 %v3628_v3, %v608_v5 }
  0x2b   : > { %v610_v7 = vadd.f32 %v3628_v3, %v609_v6 }
  0x2d   : > { %v3919_v8 = vsel %vm611_vm1, %v3628_v3, %v610_v7 }
  0x96   : > { %v605_v9 = vpop.xlane.xlu0 %604 }
  0x97   : > { %v613_v10 = vmul.f32 %v3919_v8, %v605_v9 }
  0x99   : > { %v614_v11 = vsub.f32 %v3915_v0, %v613_v10 }
  0x9b   : > { %v615_v12 = vmul.f32 %v614_v11, %v614_v11 }
  0x9d   : > { %v616_v13 = vsel %vm602_vm0, %v615_v12, 0.0 }
  0x9e   : > { %617 = vadd.xlane.f32.xlu0 %v616_v13 }
 0x111   : > { %v618_v16 = vpop.xlane.xlu0 %617 }
 0x112   : > { %v619_v17 = vmul.f32 %v618_v16, %v3919_v8 }
 0x114   : > { %v620_v18 = vadd.f32 1e-05, %v619_v17 }
 0x116   : > { %3629 = vrsqrt.f32 %v620_v18  ;;  %vm627_vm3 = vweird.f32 %v620_v18 }
 0x11c   : > { %v3630_v19 = vpop.eup %3629 }
 0x11d   : > { %v622_v20 = vmul.f32 %v3630_v19, %v620_v18  ;;  %vm628_vm2 = vweird.f32 %v3630_v19 }
 0x11e   : > { %vm629_vm4 = vmor %vm627_vm3, %vm628_vm2 }
 0x11f   : > { %v623_v21 = vmul.f32 %v3630_v19, %v622_v20 }
 0x121   : > { %v624_v22 = vmul.f32 0.5, %v623_v21 }
 0x123   : > { %v625_v23 = vsub.f32 1.5, %v624_v22 }
 0x125   : > { %v626_v24 = vmul.f32 %v3630_v19, %v625_v23 }
 0x127   : > { %v630_v26 = vsel %vm629_vm4, %v3630_v19, %v626_v24 }
 0x128   : > { %v631_v27 = vmul.f32 %v630_v26, %v614_v11 }
 0x12a   : > { %v635_v29 = vmul.f32 %v3614_v25, %v631_v27 }
 0x12c   : > { %v639_v30 = vadd.f32 %v3615_v28, %v635_v29 }
 0x12e   : > { %v640_v31 = vpack.c.bf16 %v639_v30, %v639_v30 }
 0x130   : > { %2966 = vmatmul.msk.bf16.vlgmr.msra.gmra.mxu0 %vm602_vm0, %v640_v31 }
 0x1ad   : > { %v669_v32 = vpop.f32.mrf.mxu0 }
 0x1ae   : > { %v673_v33 = vpack.c.bf16 %v669_v32, %v669_v32 }
 0x1b0   : > { %v679_v34 = vunpack.c.l.b16 %v673_v33 }
 0x1b2   : > { %v3938_v35 = vpack.c.b16 %v679_v34, %v679_v34 }
 0x1b4   : > { %742 = vrot.lane.b32.xlu0 %v3938_v35, %s4687_s20  ;;  %681 = vrot.lane.b32.xlu1 %v3938_v35, %s4689_s21  ;;  %s4695_s20 = smov 72   ;;  %s4691_s21 = smov 56  }
 0x1b5   : > { %v671_v36 = vpop.f32.mrf.mxu0 }
 0x1bc   : > { %839 = vrot.lane.b32.xlu0 %v3938_v35, %s4688_s25  ;;  %s4693_s25 = smov 104  }
 0x1c4   : > { %837 = vrot.lane.b32.xlu0 %v3938_v35, %s4686_s26  ;;  %s4696_s26 = smov 120  }
 0x226   : > { %v743_v37 = vpop.permute.xlu0 %742  ;;  %v682_v38 = vpop.permute.xlu1 %681 }
 0x227   : > { %v688_v39 = vsel %vm683_vm5, %v682_v38, 0  ;;  %v748_v40 = vsel %vm683_vm5, %v743_v37, 0 }
 0x228   : > { %697 = vmatpush.bf16.xpose.msra.mxu1 %v688_v39  ;;  %757 = vmatpush.bf16.xpose.msra.mxu3 %v748_v40 }
 0x22e   : > { %v840_v41 = vpop.permute.xlu0 %839 }
 0x22f   : > { %2967 = vmatmul.msk.bf16.vlgmr.msra.gmra.mxu1 %vm683_vm5, %v673_v33  ;;  %v845_v42 = vsel %vm683_vm5, %v840_v41, 0 }
 0x230   : > { %854 = vmatpush.bf16.xpose.msrb.mxu3 %v845_v42  ;;  %831 = vmatpush.bf16.msrb.mxu1 %v822_v58 }
 0x236   : > { %v838_v5 = vpop.permute.xlu0 %837 }
 0x2ac   : > { %v699_v46 = vpop.f32.mrf.mxu1 }
 0x2ad   : > { %v703_v48 = vmul.f32 0.35355338, %v699_v46 }
 0x2af   : > { %v704_v49 = vsel %vm3955_vm6, %v703_v48, -inf }
 0x2b0   : > { %v705_v50 = vsel %vm683_vm5, %v704_v49, -inf }
 0x2b1   : > { %706 = vmax.xlane.f32.xlu1 %v705_v50 }
 0x2b4   : > { %v701_v51 = vpop.f32.mrf.mxu1 }
 0x324   : > { %v707_v52 = vpop.xlane.xlu1 %706 }
 0x325   : > { %v708_v53 = vsub.f32 %v704_v49, %v707_v52 }
 0x327   : > { %v709_v54 = vmul.f32 1.442695, %v708_v53 }
 0x329   : > { %3631 = vpow2.f32 %v709_v54 }
 0x32f   : > { %v3632_v55 = vpop.eup %3631 }
 0x330   : > { %v711_v56 = vsel %vm683_vm5, %v3632_v55, 0.0 }
 0x331   : > { %712 = vadd.xlane.f32.xlu2 %v711_v56 }
 0x349   : > { %717 = vrot.lane.b32.xlu2 %v3938_v35, %s4694_s19  ;;  %s4732_s19 = smov 88  }
 0x351   : > { %740 = vrot.lane.b32.xlu2 %v3938_v35, %s4696_s26 }
 0x359   : > { %918 = vrot.lane.b32.xlu2 %v3938_v35, %s4695_s20  ;;  %s3471_s20 = sshll.u32 %s3909_s24, 4  ;;  %s4727_s24 = smov 120  }
 0x35a   : > { %s4126_s30 = scalar_lea.vmem %s4722_s29, %s3471_s20  ;;  %s4726_s29 = smov 96  }
 0x35b   : > { %s4733_s20 = smov 112  }
 0x361   : > { %916 = vrot.lane.b32.xlu2 %v3938_v35, %s4693_s25  ;;  %s4731_s25 = smov 104  }
 0x3a4   : > { %v713_v59 = vpop.xlane.xlu2 %712 }
 0x3a5   : > { %3633 = vrcp.f32 %v713_v59  ;;  %v675_v59 = vld [vmem:[%s4672_s6 + $0x4] sm:$0xf] }
 0x3ab   : > { %v3634_v60 = vpop.eup %3633 }
 0x3ac   : > { %v718_v61 = vpop.permute.xlu2 %717  ;;  %v715_v62 = vmul.f32 %v3634_v60, %v3632_v55  ;;  %v803_v60 = vsel %vm722_vm7, %v675_v59, 0 }
 0x3ad   : > { %v724_v63 = vsel %vm722_vm7, %v718_v61, 0  ;;  %812 = vmatpush.bf16.msrb.mxu0 %v803_v60  ;;  %v3017_v60 = vld [vmem:[%s4676_s10 + $0x38] sm:$0xf] }
 0x3ae   : > { %733 = vmatpush.bf16.msra.mxu2 %v724_v63  ;;  %v716_v1 = vpack.c.bf16 %v715_v62, %v715_v62  ;;  %v676_v62 = vld [vmem:[%s4672_s6 + $0x8] sm:$0xf] }
 0x3af   : > { %v900_v63 = vsel %vm722_vm7, %v676_v62, 0  ;;  %v2997_v62 = vld [vmem:[%s4676_s10 + $0x10] sm:$0xf] }
 0x3b1   : > { %2968 = vmatmul.msk.bf16.vlgmr.msra.gmra.mxu2 %vm683_vm5, %v716_v1  ;;  %909 = vmatpush.bf16.msra.mxu0 %v900_v63 }
 0x3b4   : > { %v741_v2 = vpop.permute.xlu2 %740 }
 0x3b5   : > { %2969 = vmatmul.msk.bf16.vlgmr.msra.gmra.mxu3 %vm683_vm5, %v741_v2 }
 0x3bc   : > { %v919_v3 = vpop.permute.xlu2 %918 }
 0x3bd   : > { %v924_v4 = vsel %vm683_vm5, %v919_v3, 0 }
 0x3be   : > { %933 = vmatpush.bf16.xpose.msra.mxu1 %v924_v4 }
 0x3c4   : > { %v917_v15 = vpop.permute.xlu2 %916 }
 0x3c5   : > { %2973 = vmatmul.msk.bf16.vlgmr.msrb.gmra.mxu3 %vm683_vm5, %v838_v5 }
 0x434   : > { %v735_v6 = vpop.f32.mrf.mxu2 }
 0x435   : > { %v739_v7 = vpack.c.bf16 %v735_v6, %v735_v6 }
 0x437   : > { %2972 = vmatmul.msk.bf16.vlgmr.msrb.gmra.mxu1 %vm683_vm5, %v739_v7 }
 0x438   : > { %v759_v9 = vpop.f32.mrf.mxu3 }
 0x439   : > { %v763_v10 = vmul.f32 0.35355338, %v759_v9 }
 0x43b   : > { %v764_v11 = vsel %vm3955_vm6, %v763_v10, -inf }
 0x43c   : > { %v737_v12 = vpop.f32.mrf.mxu2  ;;  %v765_v13 = vsel %vm683_vm5, %v764_v11, -inf }
 0x43d   : > { %766 = vmax.xlane.f32.xlu1 %v765_v13 }
 0x440   : > { %v761_v14 = vpop.f32.mrf.mxu3 }
 0x447   : > { %2976 = vmatmul.msk.bf16.vlgmr.msra.gmra.mxu1 %vm683_vm5, %v917_v15 }
 0x448   : > { %v856_v16 = vpop.f32.mrf.mxu3 }
 0x449   : > { %v860_v17 = vmul.f32 0.35355338, %v856_v16 }
 0x44b   : > { %v861_v18 = vsel %vm3955_vm6, %v860_v17, -inf }
 0x44c   : > { %v862_v19 = vsel %vm683_vm5, %v861_v18, -inf }
 0x44d   : > { %863 = vmax.xlane.f32.xlu2 %v862_v19 }
 0x450   : > { %v858_v20 = vpop.f32.mrf.mxu3 }
 0x465   : > { %953 = vrot.lane.b32.xlu2 %v3938_v35, %s4690_s22  ;;  %s4692_s22 = smov 48  }
 0x4b0   : > { %v767_v21 = vpop.xlane.xlu1 %766 }
 0x4b1   : > { %v768_v22 = vsub.f32 %v764_v11, %v767_v21  ;;  %v677_v11 = vld [vmem:[%s4672_s6 + $0xc] sm:$0xf] }
 0x4b2   : > { %v979_v12 = vsel %vm722_vm7, %v677_v11, 0 }
 0x4b3   : > { %v769_v23 = vmul.f32 1.442695, %v768_v22 }
 0x4b4   : > { %v3990_v24 = vpop.f32.mrf.mxu1 }
 0x4b5   : > { %3635 = vpow2.f32 %v769_v23 }
 0x4bb   : > { %v3636_v25 = vpop.eup %3635 }
 0x4bc   : > { %v835_v26 = vpop.f32.mrf.mxu1  ;;  %v771_v27 = vsel %vm683_vm5, %v3636_v25, 0.0 }
 0x4bd   : > { %772 = vadd.xlane.f32.xlu1 %v771_v27 }
 0x4c0   : > { %v864_v28 = vpop.xlane.xlu2 %863 }
 0x4c1   : > { %v865_v29 = vsub.f32 %v861_v18, %v864_v28 }
 0x4c3   : > { %v866_v30 = vmul.f32 1.442695, %v865_v29 }
 0x4c4   : > { %v935_v31 = vpop.f32.mrf.mxu1 }
 0x4c5   : > { %v939_v32 = vmul.f32 0.35355338, %v935_v31  ;;  %3637 = vpow2.f32 %v866_v30 }
 0x4c7   : > { %v940_v33 = vsel %vm3955_vm6, %v939_v32, -inf }
 0x4c8   : > { %v954_v34 = vpop.permute.xlu2 %953  ;;  %v941_v36 = vsel %vm683_vm5, %v940_v33, -inf }
 0x4c9   : > { %v959_v37 = vsel %vm722_vm7, %v954_v34, 0  ;;  %942 = vmax.xlane.f32.xlu0 %v941_v36  ;;  %v3481_v34 = vld [vmem:[%s4676_s10 + $0x38] sm:$0xf0]  ;;  %v3479_v36 = vld [vmem:[%s4676_s10 + $0x2c] sm:$0xf] }
 0x4ca   : > { %968 = vmatpush.bf16.msra.mxu3 %v959_v37 }
 0x4cb   : > { %v3638_v39 = vpop.eup %3637 }
 0x4cc   : > { %v937_v38 = vpop.f32.mrf.mxu1  ;;  %v868_v40 = vsel %vm683_vm5, %v3638_v39, 0.0 }
 0x4cd   : > { %v3003_v38 = vld [vmem:[%s4676_s10 + $0x3c] sm:$0xf0] }
 0x4d1   : > { %869 = vadd.xlane.f32.xlu0 %v868_v40  ;;  %v3482_v40 = vld [vmem:[%s4676_s10 + $0x40] sm:$0xf0] }
 0x4d6   : > { %777 = vrot.lane.b32.xlu1 %v3938_v35, %s4691_s21  ;;  %s4729_s21 = smov 80  }
 0x4e5   : > { %874 = vrot.lane.b32.xlu0 %v3938_v35, %s4692_s22  ;;  %s4703_s22 = smov 124  }
 0x530   : > { %v773_v41 = vpop.xlane.xlu1 %772 }
 0x531   : > { %3639 = vrcp.f32 %v773_v41  ;;  %v3006_v41 = vor.u32 %v3479_v36, %v3003_v38 }
 0x533   : > { %1132 = vmatpush.bf16.msrb.mxu1 %v3006_v41 }
 0x537   : > { %v3640_v46 = vpop.eup %3639 }
 0x538   : > { %v775_v49 = vmul.f32 %v3640_v46, %v3636_v25  ;;  %v3616_v25 = vld [vmem:[%s4673_s7] ss:$0 sm:$0xff] }
 0x53a   : > { %v776_v54 = vpack.c.bf16 %v775_v49, %v775_v49  ;;  %v3476_v49 = vld [vmem:[%s4676_s10 + $0x10] sm:$0xf0] }
 0x53c   : > { %v943_v42 = vpop.xlane.xlu0 %942 }
 0x53d   : > { %v944_v43 = vsub.f32 %v940_v33, %v943_v42 }
 0x53f   : > { %v945_v44 = vmul.f32 1.442695, %v944_v43  ;;  %v3480_v43 = vld [vmem:[%s4676_s10 + $0x34] sm:$0xf] }
 0x541   : > { %3641 = vpow2.f32 %v945_v44  ;;  %v3011_v44 = vld [vmem:[%s4676_s10 + $0x44] sm:$0xf0] }
 0x542   : > { %v3014_v46 = vor.u32 %v3480_v43, %v3011_v44 }
 0x544   : > { %v870_v53 = vpop.xlane.xlu0 %869 }
 0x545   : > { %3643 = vrcp.f32 %v870_v53  ;;  %v2989_v53 = vld [vmem:[%s4676_s10 + $0x8] sm:$0xf] }
 0x547   : > { %v3642_v48 = vpop.eup %3641 }
 0x548   : > { %v778_v50 = vpop.permute.xlu1 %777  ;;  %v947_v51 = vsel %vm683_vm5, %v3642_v48, 0.0 }
 0x549   : > { %948 = vadd.xlane.f32.xlu1 %v947_v51  ;;  %v783_v52 = vsel %vm722_vm7, %v778_v50, 0  ;;  %v3474_v50 = vld [vmem:[%s4676_s10 + $0x4] sm:$0xf] }
 0x54a   : > { %792 = vmatpush.bf16.msrb.mxu2 %v783_v52  ;;  %v2983_v52 = vld [vmem:[%s4676_s10 + $0x14] sm:$0xf0] }
 0x54b   : > { %v3644_v35 = vpop.eup %3643 }
 0x54c   : > { %v872_v55 = vmul.f32 %v3644_v35, %v3638_v39  ;;  %v3009_v39 = vld [vmem:[%s4676_s10 + $0x30] sm:$0xf]  ;;  %v2986_v35 = vor.u32 %v3474_v50, %v2983_v52 }
 0x54d   : > { %2970 = vmatmul.msk.bf16.vlgmr.msrb.gmra.mxu2 %vm683_vm5, %v776_v54  ;;  %v3010_v42 = vor.u32 %v3482_v40, %v3009_v39  ;;  %v3477_v54 = vld [vmem:[%s4676_s10 + $0x18] sm:$0xf0]  ;;  %v1190_v40 = vld [vmem:[%s4126_s30] sm:$0xff] }
 0x54e   : > { %v873_v58 = vpack.c.bf16 %v872_v55, %v872_v55  ;;  %v2990_v55 = vor.u32 %v3477_v54, %v2989_v53  ;;  %1133 = vmatpush.bf16.msrb.mxu1 %v2986_v35 }
 0x54f   : > { %1145 = vmatpush.bf16.msrb.mxu3 %v3010_v42 }
 0x553   : > { %1146 = vmatpush.bf16.msrb.mxu3 %v2990_v55 }
 0x557   : > { %v875_v56 = vpop.permute.xlu0 %874 }
 0x558   : > { %v880_v57 = vsel %vm722_vm7, %v875_v56, 0  ;;  %v3475_v56 = vld [vmem:[%s4676_s10 + $0xc] sm:$0xf] }
 0x559   : > { %889 = vmatpush.bf16.msra.mxu2 %v880_v57  ;;  %v2991_v57 = vld [vmem:[%s4676_s10 + $0x1c] sm:$0xf0] }
 0x55d   : > { %2974 = vmatmul.msk.bf16.vlgmr.msra.gmra.mxu2 %vm683_vm5, %v873_v58  ;;  %v2994_v58 = vor.u32 %v3475_v56, %v2991_v57 }
 0x55e   : > { %988 = vmatpush.bf16.msrb.mxu2 %v979_v12  ;;  %v3617_v12 = vld [vmem:[%s4674_s8] ss:$0 sm:$0xff] }
 0x562   : > { %1158 = vmatpush.bf16.msra.mxu2 %v3014_v46 }
 0x566   : > { %1159 = vmatpush.bf16.msra.mxu2 %v2994_v58 }
 0x5bc   : > { %v949_v61 = vpop.xlane.xlu1 %948 }
 0x5bd   : > { %3645 = vrcp.f32 %v949_v61  ;;  %v3483_v61 = vld [vmem:[%s4676_s10 + $0x48] sm:$0xf0] }
 0x5c3   : > { %v3646_v1 = vpop.eup %3645 }
 0x5c4   : > { %v951_v2 = vmul.f32 %v3646_v1, %v3642_v48  ;;  %v2981_v48 = vld [vmem:[%s4676_s10] sm:$0xf]  ;;  %v3018_v1 = vor.u32 %v3483_v61, %v3017_v60 }
 0x5c5   : > { %v2982_v51 = vor.u32 %v3476_v49, %v2981_v48  ;;  %v3512_v60 = vld [vmem:[%s4678_s12 + $0xe0] sm:$0xff] }
 0x5c6   : > { %v952_v3 = vpack.c.bf16 %v951_v2, %v951_v2  ;;  %v3478_v2 = vld [vmem:[%s4676_s10 + $0x20] sm:$0xf0] }
 0x5c8   : > { %2977 = vmatmul.msk.bf16.vlgmr.msra.gmra.mxu3 %vm683_vm5, %v952_v3 }
 0x5d0   : > { %v794_v4 = vpop.f32.mrf.mxu2 }
 0x5d1   : > { %v798_v5 = vpack.c.bf16 %v794_v4, %v794_v4  ;;  %v2998_v4 = vor.u32 %v3478_v2, %v2997_v62 }
 0x5d3   : > { %2971 = vmatmul.msk.bf16.vlgmr.msrb.gmra.mxu0 %vm683_vm5, %v798_v5 }
 0x5d8   : > { %v796_v6 = vpop.f32.mrf.mxu2 }
 0x5e0   : > { %v891_v7 = vpop.f32.mrf.mxu2 }
 0x5e1   : > { %v895_v9 = vpack.c.bf16 %v891_v7, %v891_v7 }
 0x5e3   : > { %2975 = vmatmul.msk.bf16.vlgmr.msra.gmra.mxu0 %vm683_vm5, %v895_v9 }
 0x5e8   : > { %v893_v10 = vpop.f32.mrf.mxu2 }
 0x64b   : > { %v970_v13 = vpop.f32.mrf.mxu3 }
 0x64c   : > { %v974_v14 = vpack.c.bf16 %v970_v13, %v970_v13 }
 0x64e   : > { %2978 = vmatmul.msk.bf16.vlgmr.msrb.gmra.mxu2 %vm683_vm5, %v974_v14 }
 0x650   : > { %v814_v15 = vpop.f32.mrf.mxu0 }
 0x651   : > { %v834_v18 = vadd.f32 %v3990_v24, %v814_v15  ;;  %v3618_v15 = vld [vmem:[%s4675_s9] ss:$0 sm:$0xff] }
 0x653   : > { %v972_v16 = vpop.f32.mrf.mxu3 }
 0x658   : > { %v816_v17 = vpop.f32.mrf.mxu0 }
 0x660   : > { %v911_v19 = vpop.f32.mrf.mxu0 }
 0x661   : > { %v915_v20 = vadd.f32 %v911_v19, %v834_v18 }
 0x668   : > { %v913_v21 = vpop.f32.mrf.mxu0 }
 0x6d1   : > { %v990_v22 = vpop.f32.mrf.mxu2 }
 0x6d2   : > { %v994_v23 = vadd.f32 %v990_v22, %v915_v20 }
 0x6d4   : > { %v995_v26 = vadd.f32 %v994_v23, %v3915_v0  ;;  %v3001_v0 = vld [vmem:[%s4676_s10 + $0x28] sm:$0xf] }
 0x6d5   : > { %v3002_v37 = vor.u32 %v3481_v34, %v3001_v0 }
 0x6d6   : > { %v4028_v27 = vadd.f32 %v3616_v25, %v995_v26  ;;  %v4118_v26 = vld [vmem:[%s4677_s11] sm:$0x1f] }
 0x6d7   : > { %1119 = vmatpush.bf16.msrb.mxu0 %v3002_v37 }
 0x6d8   : > { %v1003_v28 = vsel %vm602_vm0, %v4028_v27, 0.0 }
 0x6d9   : > { %v992_v29 = vpop.f32.mrf.mxu2  ;;  %1004 = vadd.xlane.f32.xlu2 %v1003_v28  ;;  %v1052_v28 = vperm.slane %v4118_v26, 4 }
 0x6db   : > { %1120 = vmatpush.bf16.msrb.mxu0 %v2982_v51 }
 0x6df   : > { %1171 = vmatpush.bf16.msra.mxu0 %v3018_v1 }
 0x6e3   : > { %1172 = vmatpush.bf16.msra.mxu0 %v2998_v4 }
 0x74c   : > { %v1005_v30 = vpop.xlane.xlu2 %1004 }
 0x74d   : > { %v1006_v24 = vmul.f32 %v1005_v30, %v3919_v8 }
 0x74f   : > { %v1007_v31 = vsub.f32 %v4028_v27, %v1006_v24 }
 0x751   : > { %v1008_v32 = vmul.f32 %v1007_v31, %v1007_v31 }
 0x753   : > { %v1009_v33 = vsel %vm602_vm0, %v1008_v32, 0.0 }
 0x754   : > { %1010 = vadd.xlane.f32.xlu0 %v1009_v33 }
 0x7c7   : > { %v1011_v59 = vpop.xlane.xlu0 %1010 }
 0x7c8   : > { %v1012_v63 = vmul.f32 %v1011_v59, %v3919_v8 }
 0x7ca   : > { %v1013_v3 = vadd.f32 1e-05, %v1012_v63 }
 0x7cc   : > { %3647 = vrsqrt.f32 %v1013_v3  ;;  %vm1020_vm9 = vweird.f32 %v1013_v3 }
 0x7d2   : > { %v3648_v5 = vpop.eup %3647 }
 0x7d3   : > { %v1015_v6 = vmul.f32 %v3648_v5, %v1013_v3  ;;  %vm1021_vm8 = vweird.f32 %v3648_v5 }
 0x7d4   : > { %vm1022_vm10 = vmor %vm1020_vm9, %vm1021_vm8 }
 0x7d5   : > { %v1016_v7 = vmul.f32 %v3648_v5, %v1015_v6 }
 0x7d7   : > { %v1017_v9 = vmul.f32 0.5, %v1016_v7 }
 0x7d9   : > { %v1018_v10 = vsub.f32 1.5, %v1017_v9 }
 0x7db   : > { %v1019_v11 = vmul.f32 %v3648_v5, %v1018_v10 }
 0x7dd   : > { %v1023_v13 = vsel %vm1022_vm10, %v3648_v5, %v1019_v11 }
 0x7de   : > { %v1024_v14 = vmul.f32 %v1023_v13, %v1007_v31 }
 0x7e0   : > { %v1028_v16 = vmul.f32 %v3617_v12, %v1024_v14 }
 0x7e2   : > { %v1032_v17 = vadd.f32 %v3618_v15, %v1028_v16 }
 0x7e4   : > { %v1033_v18 = vpack.c.bf16 %v1032_v17, %v1032_v17 }
 0x7e6   : > { %3019 = vmatmul.msk.bf16.vlgmr.msrb.gmra.mxu0 %vm602_vm0, %v1033_v18  ;;  %3020 = vmatmul.msk.bf16.vlgmr.msrb.gmra.mxu1 %vm602_vm0, %v1033_v18 }
 0x7e7   : > { %3021 = vmatmul.msk.bf16.vlgmr.msrb.gmra.mxu3 %vm602_vm0, %v1033_v18  ;;  %3022 = vmatmul.msk.bf16.vlgmr.msra.gmra.mxu2 %vm602_vm0, %v1033_v18 }
 0x7f6   : > { %3023 = vmatmul.msk.bf16.vlgmr.msra.gmra.mxu0 %vm602_vm0, %v1033_v18 }
 0x863   : > { %v4107_v19 = vpop.f32.mrf.mxu0  ;;  %v4109_v20 = vpop.f32.mrf.mxu1 }
 0x86a   : > { %v4111_v21 = vpop.f32.mrf.mxu3  ;;  %v4113_v22 = vpop.f32.mrf.mxu2 }
 0x86b   : > { %v1124_v23 = vpop.f32.mrf.mxu0  ;;  %v1137_v25 = vpop.f32.mrf.mxu1 }
 0x872   : > { %v1150_v29 = vpop.f32.mrf.mxu3  ;;  %v1163_v30 = vpop.f32.mrf.mxu2 }
 0x873   : > { %v1174_v24 = vpop.f32.mrf.mxu0  ;;  %v598_v29 = vld [vmem:[%s4725_s23] sm:$0xff] }
 0x874   : > { %v1175_v31 = vadd.f32 %v1174_v24, %v1052_v28  ;;  %1258 = vst [vmem:[#allocation1] ss:$2 sm:$0xff] %v598_v29  ;;  %v1428_v30 = vld [vmem:[%s4679_s13] sm:$0xf] }
 0x875   : > { %3032 = vmatpush.msk.msrb.mxu2 %vm722_vm7, %v1428_v30 }
 0x876   : > { %v1183_v32 = vmin.f32 %v1175_v31, 20.0  ;;  %vm1182_vm11 = vcmp.gt.f32.partialorder %v1175_v31, 20.0 }
 0x878   : > { %v1184_v33 = vmul.f32 1.442695, %v1183_v32  ;;  %v599_v32 = vld [vmem:[%s4725_s23 + $0x8] sm:$0xff] }
 0x879   : > { %1260 = vst [vmem:[#allocation1 + $0x10] ss:$2 sm:$0xff] %v599_v32 }
 0x87a   : > { %3649 = vpow2.f32 %v1184_v33 }
 0x87b   : > { %v1176_v0 = vpop.f32.mrf.mxu0  ;;  %v1262_v24 = vld.sshfl [vmem:[#allocation1 + $0x8] sm:$0xff pattern:$0x75316420] }
 0x87c   : > { %3026 = vmatpush.msk.msra.mxu3 %vm722_vm7, %v1262_v24 }
 0x880   : > { %v3650_v34 = vpop.eup %3649  ;;  %v1263_v33 = vld.sshfl [vmem:[#allocation1 + $0x10] sm:$0xff pattern:$0x75316420]  ;;  %v1264_v0 = vld.sshfl [vmem:[#allocation1 + $0x18] sm:$0xff pattern:$0x75316420] }
 0x881   : > { %v1186_v36 = vadd.f32 1.0, %v3650_v34  ;;  %3030 = vmatpush.msk.msrb.mxu3 %vm722_vm7, %v1264_v0  ;;  %2354 = vst [vmem:[#allocation1 + $0x10] ss:$2 sm:$0xff] %v599_v32  ;;  %v3491_v34 = vld [vmem:[%s4678_s12 + $0x38] sm:$0xff] }
 0x882   : > { %1644 = vmatpush.bf16.msrb.mxu0 %v3491_v34 }
 0x883   : > { %3651 = vlog2.f32 %v1186_v36  ;;  %v3490_v36 = vld [vmem:[%s4678_s12 + $0x30] sm:$0xff] }
 0x886   : > { %1645 = vmatpush.bf16.msrb.mxu0 %v3490_v36 }
 0x889   : > { %v3652_v37 = vpop.eup %3651 }
 0x88a   : > { %v1188_v38 = vmul.f32 0.6931472, %v3652_v37  ;;  %v3515_v37 = vld [vmem:[%s4678_s12 + $0xf8] sm:$0xff] }
 0x88b   : > { %1683 = vmatpush.bf16.msra.mxu2 %v3515_v37 }
 0x88c   : > { %v1189_v39 = vsel %vm1182_vm11, %v1175_v31, %v1188_v38  ;;  %v3514_v38 = vld [vmem:[%s4678_s12 + $0xf0] sm:$0xff] }
 0x88d   : > { %1192 = vrot.lane.b32.xlu1 %v1189_v39, %s4703_s22  ;;  %v3489_v39 = vld [vmem:[%s4678_s12 + $0x28] sm:$0xff]  ;;  %s4730_s22 = smov 64  }
 0x88e   : > { %1646 = vmatpush.bf16.msrb.mxu0 %v3489_v39 }
 0x88f   : > { %1684 = vmatpush.bf16.msra.mxu2 %v3514_v38 }
 0x8ff   : > { %v1193_v41 = vpop.permute.xlu1 %1192 }
 0x900   : > { %v1195_v42 = vmul.f32 %v1193_v41, %v1190_v40  ;;  %v3513_v40 = vld [vmem:[%s4678_s12 + $0xe8] sm:$0xff]  ;;  %v3488_v41 = vld [vmem:[%s4678_s12 + $0x20] sm:$0xff] }
 0x901   : > { %1685 = vmatpush.bf16.msra.mxu2 %v3513_v40  ;;  %1647 = vmatpush.bf16.msrb.mxu0 %v3488_v41 }
 0x902   : > { %v1196_v43 = vadd.f32 %v1195_v42, %v1175_v31  ;;  %v1261_v31 = vld.sshfl [vmem:[#allocation1] sm:$0xff pattern:$0x75316420] }
 0x903   : > { %3024 = vmatpush.msk.msra.mxu1 %vm722_vm7, %v1261_v31  ;;  %2352 = vst [vmem:[#allocation1] ss:$2 sm:$0xff] %v598_v29 }
 0x904   : > { %v1198_v44 = vsel %vm1197_vm12, %v1196_v43, -inf }
 0x905   : > { %1199 = vmax.xlane.f32.xlu1 %v1198_v44  ;;  %3028 = vmatpush.msk.msrb.mxu1 %vm722_vm7, %v1263_v33  ;;  %v3486_v44 = vld [vmem:[%s4678_s12 + $0x10] sm:$0xff] }
 0x906   : > { %1686 = vmatpush.bf16.msra.mxu2 %v3512_v60 }
 0x978   : > { %v1200_v46 = vpop.xlane.xlu1 %1199 }
 0x979   : > { %vm1201_vm13 = vcmp.eq.f32.partialorder %v1196_v43, %v1200_v46 }
 0x97a   : > { %v1202_v48 = vsel %vm1201_vm13, %v3952_v45, 4 }
 0x97b   : > { %v1203_v49 = vsel %vm1197_vm12, %v1202_v48, 2147483647  ;;  %v3499_v48 = vld [vmem:[%s4678_s12 + $0x78] sm:$0xff] }
 0x97c   : > { %v1205_v50 = vshra.s32 %v1203_v49, 16  ;;  %v1204_v52 = vand.u32 65535, %v1203_v49 }
 0x97e   : > { %v1207_v51 = vcvt.s32.f32 %v1205_v50  ;;  %v1206_v54 = vcvt.s32.f32 %v1204_v52  ;;  %v3507_v50 = vld [vmem:[%s4678_s12 + $0xb8] sm:$0xff]  ;;  %v3498_v52 = vld [vmem:[%s4678_s12 + $0x70] sm:$0xff] }
 0x980   : > { %1208 = vmin.xlane.f32.xlu2 %v1207_v51 }
 0x9f3   : > { %v1209_v53 = vpop.xlane.xlu2 %1208 }
 0x9f4   : > { %vm1210_vm14 = vcmp.eq.f32.partialorder %v1207_v51, %v1209_v53  ;;  %v1215_v55 = vcvt.f32.s32 %v1209_v53  ;;  %v3485_v51 = vld [vmem:[%s4678_s12 + $0x8] sm:$0xff]  ;;  %v3506_v53 = vld [vmem:[%s4678_s12 + $0xb0] sm:$0xff] }
 0x9f5   : > { %v1211_v35 = vsel %vm1210_vm14, %v1206_v54, inf  ;;  %v3497_v54 = vld [vmem:[%s4678_s12 + $0x68] sm:$0xff] }
 0x9f6   : > { %1212 = vmin.xlane.f32.xlu0 %v1211_v35  ;;  %v1216_v57 = vshll.u32 %v1215_v55, 16  ;;  %v3505_v35 = vld [vmem:[%s4678_s12 + $0xa8] sm:$0xff]  ;;  %v3496_v55 = vld [vmem:[%s4678_s12 + $0x60] sm:$0xff] }
 0xa69   : > { %v1213_v56 = vpop.xlane.xlu0 %1212 }
 0xa6a   : > { %v1214_v58 = vcvt.f32.s32 %v1213_v56  ;;  %v3504_v56 = vld [vmem:[%s4678_s12 + $0xa0] sm:$0xff] }
 0xa6c   : > { %v1217_v59 = vadd.s32 %v1216_v57, %v1214_v58  ;;  %v3495_v57 = vld [vmem:[%s4678_s12 + $0x58] sm:$0xff] }
 0xa6d   : > { %v3503_v58 = vld [vmem:[%s4678_s12 + $0x98] sm:$0xff] }
 0xa6e   : > { %vm1218_vm15 = vcmp.eq.s32.totalorder %v3952_v45, %v1217_v59  ;;  %v3494_v59 = vld [vmem:[%s4678_s12 + $0x50] sm:$0xff] }
 0xa6f   : > { %vm4135_vm1 = vmand %vm1201_vm13, %vm1218_vm15 }
 0xa70   : > { %v1220_v61 = vsel %vm4135_vm1, -inf, %v1196_v43 }
 0xa71   : > { %v1221_v62 = vsel %vm1197_vm12, %v1220_v61, -inf }
 0xa72   : > { %1222 = vmax.xlane.f32.xlu2 %v1221_v62  ;;  %v3502_v62 = vld [vmem:[%s4678_s12 + $0x90] sm:$0xff] }
 0xae5   : > { %v1223_v63 = vpop.xlane.xlu2 %1222 }
 0xae6   : > { %vm1224_vm2 = vcmp.eq.f32.partialorder %v1220_v61, %v1223_v63  ;;  %v3484_v61 = vld [vmem:[%s4678_s12] sm:$0xff]  ;;  %v3493_v63 = vld [vmem:[%s4678_s12 + $0x48] sm:$0xff] }
 0xae7   : > { %v1225_v1 = vsel %vm1224_vm2, %v3952_v45, 4 }
 0xae8   : > { %v1226_v2 = vsel %vm1197_vm12, %v1225_v1, 2147483647  ;;  %v3511_v1 = vld [vmem:[%s4678_s12 + $0xd8] sm:$0xff] }
 0xae9   : > { %v1228_v3 = vshra.s32 %v1226_v2, 16  ;;  %v1227_v5 = vand.u32 65535, %v1226_v2  ;;  %1687 = vmatpush.bf16.msra.mxu2 %v3511_v1  ;;  %v3501_v2 = vld [vmem:[%s4678_s12 + $0x88] sm:$0xff] }
 0xaeb   : > { %v1230_v4 = vcvt.s32.f32 %v1228_v3  ;;  %v1229_v7 = vcvt.s32.f32 %v1227_v5  ;;  %v3492_v3 = vld [vmem:[%s4678_s12 + $0x40] sm:$0xff] }
 0xaec   : > { %v3500_v5 = vld [vmem:[%s4678_s12 + $0x80] sm:$0xff] }
 0xaed   : > { %1231 = vmin.xlane.f32.xlu0 %v1230_v4 }
 0xb60   : > { %v1232_v6 = vpop.xlane.xlu0 %1231 }
 0xb61   : > { %vm1233_vm3 = vcmp.eq.f32.partialorder %v1230_v4, %v1232_v6  ;;  %v1238_v10 = vcvt.f32.s32 %v1232_v6  ;;  %v3510_v4 = vld [vmem:[%s4678_s12 + $0xd0] sm:$0xff]  ;;  %v3509_v6 = vld [vmem:[%s4678_s12 + $0xc8] sm:$0xff] }
 0xb62   : > { %v1234_v9 = vsel %vm1233_vm3, %v1229_v7, inf  ;;  %1688 = vmatpush.bf16.msra.mxu2 %v3510_v4  ;;  %v3508_v7 = vld [vmem:[%s4678_s12 + $0xc0] sm:$0xff] }
 0xb63   : > { %1235 = vmin.xlane.f32.xlu2 %v1234_v9  ;;  %v1239_v12 = vshll.u32 %v1238_v10, 16  ;;  %v1048_v9 = vperm.slane %v4118_v26, 0 }
 0xb65   : > { %v1123_v10 = vadd.f32 %v4107_v19, %v1048_v9 }
 0xb66   : > { %1689 = vmatpush.bf16.msra.mxu2 %v3509_v6 }
 0xb6a   : > { %1690 = vmatpush.bf16.msra.mxu2 %v3508_v7 }
 0xbd6   : > { %v1236_v11 = vpop.xlane.xlu2 %1235 }
 0xbd7   : > { %v1237_v13 = vcvt.f32.s32 %v1236_v11  ;;  %v1049_v11 = vperm.slane %v4118_v26, 1 }
 0xbd9   : > { %v1240_v14 = vadd.s32 %v1239_v12, %v1237_v13  ;;  %v1178_v12 = vmax.f32 %v1123_v10, 0.0  ;;  %v1050_v13 = vperm.slane %v4118_v26, 2 }
 0xbdb   : > { %vm1241_vm4 = vcmp.eq.s32.totalorder %v3952_v45, %v1240_v14 }
 0xbdc   : > { %vm1242_vm8 = vmand %vm1224_vm2, %vm1241_vm4 }
 0xbdd   : > { %vm1243_vm9 = vmor %vm4135_vm1, %vm1242_vm8 }
 0xbde   : > { %v1244_v15 = vsel %vm1243_vm9, %v1196_v43, -inf  ;;  %v3487_v43 = vld [vmem:[%s4678_s12 + $0x18] sm:$0xff] }
 0xbdf   : > { %v1245_v16 = vsel %vm1197_vm12, %v1244_v15, -inf  ;;  %1648 = vmatpush.bf16.msrb.mxu0 %v3487_v43 }
 0xbe0   : > { %1246 = vmax.xlane.f32.xlu0 %v1245_v16 }
 0xbe3   : > { %1649 = vmatpush.bf16.msrb.mxu0 %v3486_v44 }
 0xbe7   : > { %1650 = vmatpush.bf16.msrb.mxu0 %v3485_v51 }
 0xbeb   : > { %1651 = vmatpush.bf16.msrb.mxu0 %v3484_v61 }
 0xc53   : > { %v1247_v17 = vpop.xlane.xlu0 %1246 }
 0xc54   : > { %v1248_v18 = vsub.f32 %v1244_v15, %v1247_v17  ;;  %v1136_v15 = vadd.f32 %v4109_v20, %v1049_v11  ;;  %v1149_v17 = vadd.f32 %v4111_v21, %v1050_v13 }
 0xc56   : > { %v1249_v23 = vmul.f32 1.442695, %v1248_v18  ;;  %v1180_v29 = vmax.f32 %v1149_v17, 0.0 }
 0xc58   : > { %3653 = vpow2.f32 %v1249_v23  ;;  %v1179_v23 = vmax.f32 %v1136_v15, 0.0 }
 0xc5e   : > { %v3654_v25 = vpop.eup %3653 }
 0xc5f   : > { %v1251_v28 = vsel %vm1197_vm12, %v3654_v25, 0.0 }
 0xc60   : > { %1252 = vadd.xlane.f32.xlu2 %v1251_v28 }
 0xcd3   : > { %v1253_v42 = vpop.xlane.xlu2 %1252 }
 0xcd4   : > { %3655 = vrcp.f32 %v1253_v42 }
 0xcda   : > { %v3656_v46 = vpop.eup %3655 }
 0xcdb   : > { %v1255_v49 = vmul.f32 %v3656_v46, %v3654_v25  ;;  %v1051_v25 = vperm.slane %v4118_v26, 3 }
 0xcdd   : > { %3025 = vmatmul.msk.f32.vlgmr.msra.gmra.mxu1 %vm1197_vm12, %v1255_v49  ;;  %3027 = vmatmul.msk.f32.vlgmr.msra.gmra.mxu3 %vm1197_vm12, %v1255_v49  ;;  %v1162_v24 = vadd.f32 %v4113_v22, %v1051_v25 }
 0xcde   : > { %3033 = vmatmul.msk.f32.vlgmr.msrb.gmra.mxu2 %vm1197_vm12, %v1255_v49  ;;  %1657 = vmatpush.bf16.msra.mxu1 %v3499_v48 }
 0xcdf   : > { %1670 = vmatpush.bf16.msra.mxu3 %v3507_v50  ;;  %v1181_v0 = vmax.f32 %v1162_v24, 0.0 }
 0xce2   : > { %1658 = vmatpush.bf16.msra.mxu1 %v3498_v52 }
 0xce3   : > { %1671 = vmatpush.bf16.msra.mxu3 %v3506_v53 }
 0xce5   : > { %3029 = vmatmul.msk.f32.vlgmr.msrb.gmra.mxu1 %vm1197_vm12, %v1255_v49  ;;  %3031 = vmatmul.msk.f32.vlgmr.msrb.gmra.mxu3 %vm1197_vm12, %v1255_v49 }
 0xce6   : > { %1659 = vmatpush.bf16.msra.mxu1 %v3497_v54 }
 0xce7   : > { %1672 = vmatpush.bf16.msra.mxu3 %v3505_v35 }
 0xcea   : > { %1660 = vmatpush.bf16.msra.mxu1 %v3496_v55  ;;  %v3517_v55 = vld [vmem:[%s4671_s5 + $0x18] sm:$0xff] }
 0xceb   : > { %1673 = vmatpush.bf16.msra.mxu3 %v3504_v56  ;;  %1758 = vmatpush.bf16.msra.mxu0 %v3517_v55 }
 0xcee   : > { %1661 = vmatpush.bf16.msra.mxu1 %v3495_v57 }
 0xcef   : > { %1674 = vmatpush.bf16.msra.mxu3 %v3503_v58 }
 0xcf2   : > { %1662 = vmatpush.bf16.msra.mxu1 %v3494_v59 }
 0xcf3   : > { %1675 = vmatpush.bf16.msra.mxu3 %v3502_v62 }
 0xcf6   : > { %1663 = vmatpush.bf16.msra.mxu1 %v3493_v63 }
 0xcf7   : > { %1676 = vmatpush.bf16.msra.mxu3 %v3501_v2  ;;  %v3619_v2 = vld [vmem:[%s4718_s3 + $0x1] ss:$0 sm:$0xff] }
 0xcfa   : > { %1664 = vmatpush.bf16.msra.mxu1 %v3492_v3 }
 0xcfb   : > { %1677 = vmatpush.bf16.msra.mxu3 %v3500_v5  ;;  %v3620_v5 = vld [vmem:[%s4719_s4 + $0x1] ss:$0 sm:$0xff] }
 0xd5a   : > { %v1293_v14 = vpop.f32.mrf.mxu1 }
 0xd5b   : > { %v1356_v16 = vmul.f32 %v1293_v14, %v1178_v12 }
 0xd5d   : > { %v1360_v18 = vpack.c.bf16 %v1356_v16, %v1356_v16 }
 0xd5f   : > { %1652 = vmatmul.bf16.vlgmr.msrb.gmra.mxu0 %v1360_v18 }
 0xd60   : > { %v1313_v28 = vpop.f32.mrf.mxu3 }
 0xd61   : > { %v1357_v30 = vmul.f32 %v1313_v28, %v1179_v23  ;;  %v1449_v38 = vpop.f32.mrf.mxu2 }
 0xd62   : > { %v1333_v19 = vpop.f32.mrf.mxu1 }
 0xd63   : > { %v1361_v31 = vpack.c.bf16 %v1357_v30, %v1357_v30  ;;  %v1358_v32 = vmul.f32 %v1333_v19, %v1180_v29 }
 0xd65   : > { %v1362_v33 = vpack.c.bf16 %v1358_v32, %v1358_v32  ;;  %1665 = vmatmul.bf16.vlgmr.msra.gmra.mxu1 %v1361_v31 }
 0xd67   : > { %1678 = vmatmul.bf16.vlgmr.msra.gmra.mxu3 %v1362_v33 }
 0xd68   : > { %v1353_v20 = vpop.f32.mrf.mxu3 }
 0xd69   : > { %v1359_v34 = vmul.f32 %v1353_v20, %v1181_v0  ;;  %v3177_v0 = vld [vmem:[%s4672_s6 + $0x10] sm:$0xf] }
 0xd6a   : > { %v1913_v20 = vsel %vm722_vm7, %v3177_v0, 0 }
 0xd6b   : > { %v1363_v21 = vpack.c.bf16 %v1359_v34, %v1359_v34 }
 0xd6d   : > { %1691 = vmatmul.bf16.vlgmr.msra.gmra.mxu2 %v1363_v21 }
 0xddc   : > { %v1653_v36 = vpop.f32.mrf.mxu0 }
 0xddd   : > { %v1654_v41 = vadd.f32 %v1653_v36, %v1449_v38 }
 0xde2   : > { %v1666_v37 = vpop.f32.mrf.mxu1 }
 0xde3   : > { %v1667_v42 = vadd.f32 %v1666_v37, %v1654_v41 }
 0xde4   : > { %v1655_v26 = vpop.f32.mrf.mxu0 }
 0xdea   : > { %v1668_v39 = vpop.f32.mrf.mxu1  ;;  %v1679_v40 = vpop.f32.mrf.mxu3 }
 0xdeb   : > { %v1680_v43 = vadd.f32 %v1679_v40, %v1667_v42 }
 0xdf0   : > { %v1692_v22 = vpop.f32.mrf.mxu2 }
 0xdf1   : > { %v1693_v44 = vadd.f32 %v1692_v22, %v1680_v43 }
 0xdf2   : > { %v1681_v46 = vpop.f32.mrf.mxu3 }
 0xdf3   : > { %v4275_v48 = vadd.f32 %v1693_v44, %v4028_v27  ;;  %v3516_v27 = vld [vmem:[%s4671_s5 + $0x10] sm:$0xff] }
 0xdf4   : > { %1759 = vmatpush.bf16.msra.mxu0 %v3516_v27 }
 0xdf5   : > { %v1701_v49 = vsel %vm602_vm0, %v4275_v48, 0.0 }
 0xdf6   : > { %1702 = vadd.xlane.f32.xlu0 %v1701_v49 }
 0xdf8   : > { %v1694_v50 = vpop.f32.mrf.mxu2 }
 0xe69   : > { %v1703_v51 = vpop.xlane.xlu0 %1702 }
 0xe6a   : > { %v1704_v52 = vmul.f32 %v1703_v51, %v3919_v8 }
 0xe6c   : > { %v1705_v53 = vsub.f32 %v4275_v48, %v1704_v52 }
 0xe6e   : > { %v1706_v54 = vmul.f32 %v1705_v53, %v1705_v53 }
 0xe70   : > { %v1707_v35 = vsel %vm602_vm0, %v1706_v54, 0.0 }
 0xe71   : > { %1708 = vadd.xlane.f32.xlu2 %v1707_v35 }
 0xee4   : > { %v1709_v56 = vpop.xlane.xlu2 %1708 }
 0xee5   : > { %v1710_v57 = vmul.f32 %v1709_v56, %v3919_v8 }
 0xee7   : > { %v1711_v58 = vadd.f32 1e-05, %v1710_v57 }
 0xee9   : > { %3657 = vrsqrt.f32 %v1711_v58  ;;  %vm1718_vm11 = vweird.f32 %v1711_v58 }
 0xeef   : > { %v3658_v59 = vpop.eup %3657 }
 0xef0   : > { %v1713_v60 = vmul.f32 %v3658_v59, %v1711_v58  ;;  %vm1719_vm10 = vweird.f32 %v3658_v59 }
 0xef1   : > { %vm1720_vm13 = vmor %vm1718_vm11, %vm1719_vm10 }
 0xef2   : > { %v1714_v61 = vmul.f32 %v3658_v59, %v1713_v60 }
 0xef4   : > { %v1715_v62 = vmul.f32 0.5, %v1714_v61 }
 0xef6   : > { %v1716_v63 = vsub.f32 1.5, %v1715_v62 }
 0xef8   : > { %v1717_v1 = vmul.f32 %v3658_v59, %v1716_v63 }
 0xefa   : > { %v1721_v3 = vsel %vm1720_vm13, %v3658_v59, %v1717_v1 }
 0xefb   : > { %v1722_v4 = vmul.f32 %v1721_v3, %v1705_v53 }
 0xefd   : > { %v1726_v6 = vmul.f32 %v3619_v2, %v1722_v4 }
 0xeff   : > { %v1730_v7 = vadd.f32 %v3620_v5, %v1726_v6 }
 0xf01   : > { %v1731_v9 = vpack.c.bf16 %v1730_v7, %v1730_v7 }
 0xf03   : > { %3176 = vmatmul.msk.bf16.vlgmr.msra.gmra.mxu0 %vm602_vm0, %v1731_v9 }
 0xf80   : > { %v1761_v10 = vpop.f32.mrf.mxu0 }
 0xf81   : > { %v1765_v11 = vpack.c.bf16 %v1761_v10, %v1761_v10 }
 0xf83   : > { %v1772_v12 = vunpack.c.l.b16 %v1765_v11 }
 0xf85   : > { %v4296_v13 = vpack.c.b16 %v1772_v12, %v1772_v12 }
 0xf87   : > { %1774 = vrot.lane.b32.xlu0 %v4296_v13, %s4726_s29  ;;  %s4734_s29 = smov 48  }
 0xf88   : > { %v1763_v14 = vpop.f32.mrf.mxu0 }
 0xf8f   : > { %1831 = vrot.lane.b32.xlu0 %v4296_v13, %s4727_s24  ;;  %s4735_s24 = smov 56  }
 0xf97   : > { %2009 = vrot.lane.b32.xlu0 %v4296_v13, %s4728_s1  ;;  %s4736_s1 = smov 40  }
 0xf9f   : > { %1930 = vrot.lane.b32.xlu0 %v4296_v13, %s4729_s21  ;;  %s4737_s21 = smov 124  }
 0xff9   : > { %v1775_v15 = vpop.permute.xlu0 %1774 }
 0xffa   : > { %v1780_v16 = vsel %vm683_vm5, %v1775_v15, 0 }
 0xffb   : > { %1789 = vmatpush.bf16.xpose.msrb.mxu1 %v1780_v16 }
0x1001   : > { %v1832_v34 = vpop.permute.xlu0 %1831 }
0x1002   : > { %3181 = vmatmul.msk.bf16.vlgmr.msrb.gmra.mxu1 %vm683_vm5, %v1765_v11 }
0x1009   : > { %v2010_v21 = vpop.permute.xlu0 %2009 }
0x100a   : > { %v2015_v43 = vsel %vm683_vm5, %v2010_v21, 0 }
0x1011   : > { %v1931_v26 = vpop.permute.xlu0 %1930 }
0x1012   : > { %v1936_v41 = vsel %vm683_vm5, %v1931_v26, 0 }
0x107f   : > { %v1791_v17 = vpop.f32.mrf.mxu1 }
0x1080   : > { %v1795_v18 = vmul.f32 0.35355338, %v1791_v17 }
0x1082   : > { %v1796_v23 = vsel %vm3955_vm6, %v1795_v18, -inf }
0x1083   : > { %v1797_v25 = vsel %vm683_vm5, %v1796_v23, -inf }
0x1084   : > { %1798 = vmax.xlane.f32.xlu1 %v1797_v25 }
0x1087   : > { %v1793_v28 = vpop.f32.mrf.mxu1 }
0x109d   : > { %1809 = vrot.lane.b32.xlu1 %v4296_v13, %s4730_s22 }
0x10a5   : > { %2007 = vrot.lane.b32.xlu1 %v4296_v13, %s4731_s25  ;;  %s579_s25 = sand.u32 1, %s3741_s28  }
0x10a6   : > { %s2864_s22 = scalar_lea.sflag [#allocation3], %s579_s25 }
0x10f7   : > { %v1799_v29 = vpop.xlane.xlu1 %1798 }
0x10f8   : > { %v1800_v30 = vsub.f32 %v1796_v23, %v1799_v29 }
0x10fa   : > { %v1801_v19 = vmul.f32 1.442695, %v1800_v30 }
0x10fc   : > { %3659 = vpow2.f32 %v1801_v19 }
0x1102   : > { %v3660_v24 = vpop.eup %3659 }
0x1103   : > { %v1803_v31 = vsel %vm683_vm5, %v3660_v24, 0.0 }
0x1104   : > { %1804 = vadd.xlane.f32.xlu2 %v1803_v31 }
0x110f   : > { %v1810_v32 = vpop.permute.xlu1 %1809 }
0x1110   : > { %v1815_v33 = vsel %vm722_vm7, %v1810_v32, 0 }
0x1111   : > { %1824 = vmatpush.bf16.msrb.mxu3 %v1815_v33 }
0x1115   : > { %1922 = vmatpush.bf16.msra.mxu3 %v1913_v20 }
0x1117   : > { %v2008_v35 = vpop.permute.xlu1 %2007 }
0x111c   : > { %1833 = vrot.lane.b32.xlu2 %v4296_v13, %s4732_s19  ;;  %s3468_s19 = sshll.u32 %s3880_s0, 3 }
0x111d   : > { %s2874_s3 = scalar_lea.hbm %s4684_s18, %s3468_s19 }
0x1124   : > { %1928 = vrot.lane.b32.xlu2 %v4296_v13, %s4733_s20  ;;  %s2954_s20 = sshll.u32 %s579_s25, 3 }
0x1177   : > { %v1805_v36 = vpop.xlane.xlu2 %1804 }
0x1178   : > { %3661 = vrcp.f32 %v1805_v36 }
0x117e   : > { %v3662_v37 = vpop.eup %3661 }
0x117f   : > { %v1807_v38 = vmul.f32 %v3662_v37, %v3660_v24  ;;  %v1834_v39 = vpop.permute.xlu2 %1833 }
0x1180   : > { %v1839_v40 = vsel %vm683_vm5, %v1834_v39, 0 }
0x1181   : > { %v1808_v42 = vpack.c.bf16 %v1807_v38, %v1807_v38  ;;  %1848 = vmatpush.bf16.xpose.msrb.mxu2 %v1839_v40 }
0x1183   : > { %3182 = vmatmul.msk.bf16.vlgmr.msrb.gmra.mxu3 %vm683_vm5, %v1808_v42 }
0x1184   : > { %2024 = vmatpush.bf16.xpose.msrb.mxu3 %v2015_v43 }
0x1187   : > { %v1929_v22 = vpop.permute.xlu2 %1928 }
0x1188   : > { %3183 = vmatmul.msk.bf16.vlgmr.msrb.gmra.mxu2 %vm683_vm5, %v1832_v34  ;;  %v3178_v34 = vld [vmem:[%s4672_s6 + $0x14] sm:$0xf] }
0x1189   : > { %1945 = vmatpush.bf16.xpose.msra.mxu2 %v1936_v41  ;;  %v1894_v21 = vsel %vm722_vm7, %v3178_v34, 0 }
0x118a   : > { %1903 = vmatpush.bf16.msra.mxu1 %v1894_v21 }
0x1198   : > { %3187 = vmatmul.msk.bf16.vlgmr.msra.gmra.mxu2 %vm683_vm5, %v1929_v22 }
0x1206   : > { %v1826_v44 = vpop.f32.mrf.mxu3 }
0x1207   : > { %v1830_v46 = vpack.c.bf16 %v1826_v44, %v1826_v44 }
0x1209   : > { %3186 = vmatmul.msk.bf16.vlgmr.msra.gmra.mxu3 %vm683_vm5, %v1830_v46 }
0x120b   : > { %v1850_v49 = vpop.f32.mrf.mxu2 }
0x120c   : > { %v1854_v50 = vmul.f32 0.35355338, %v1850_v49 }
0x120e   : > { %v1828_v51 = vpop.f32.mrf.mxu3  ;;  %v1855_v52 = vsel %vm3955_vm6, %v1854_v50, -inf  ;;  %v3180_v50 = vld [vmem:[%s4672_s6 + $0x1c] sm:$0xf] }
0x120f   : > { %v1856_v53 = vsel %vm683_vm5, %v1855_v52, -inf  ;;  %v2070_v51 = vsel %vm722_vm7, %v3180_v50, 0  ;;  %v3622_v50 = vld [vmem:[%s4674_s8 + $0x1] ss:$0 sm:$0xff] }
0x1210   : > { %1857 = vmax.xlane.f32.xlu0 %v1856_v53 }
0x1213   : > { %v1852_v54 = vpop.f32.mrf.mxu2 }
0x1219   : > { %3190 = vmatmul.msk.bf16.vlgmr.msrb.gmra.mxu3 %vm683_vm5, %v2008_v35 }
0x121b   : > { %v1947_v55 = vpop.f32.mrf.mxu2 }
0x121c   : > { %v1951_v27 = vmul.f32 0.35355338, %v1947_v55 }
0x121e   : > { %v1952_v56 = vsel %vm3955_vm6, %v1951_v27, -inf }
0x121f   : > { %v1953_v57 = vsel %vm683_vm5, %v1952_v56, -inf }
0x1220   : > { %1954 = vmax.xlane.f32.xlu2 %v1953_v57 }
0x1223   : > { %v1949_v58 = vpop.f32.mrf.mxu2 }
0x1283   : > { %v1858_v59 = vpop.xlane.xlu0 %1857 }
0x1284   : > { %v1859_v60 = vsub.f32 %v1855_v52, %v1858_v59 }
0x1286   : > { %v1860_v61 = vmul.f32 1.442695, %v1859_v60 }
0x1288   : > { %3663 = vpow2.f32 %v1860_v61  ;;  %v3621_v61 = vld [vmem:[%s4673_s7 + $0x1] ss:$0 sm:$0xff] }
0x128c   : > { %v4339_v62 = vpop.f32.mrf.mxu3 }
0x128e   : > { %v3664_v63 = vpop.eup %3663 }
0x128f   : > { %v1862_v1 = vsel %vm683_vm5, %v3664_v63, 0.0 }
0x1290   : > { %1863 = vadd.xlane.f32.xlu0 %v1862_v1 }
0x1293   : > { %v1955_v2 = vpop.xlane.xlu2 %1954 }
0x1294   : > { %v1956_v3 = vsub.f32 %v1952_v56, %v1955_v2  ;;  %v1926_v4 = vpop.f32.mrf.mxu3 }
0x1296   : > { %v1957_v5 = vmul.f32 1.442695, %v1956_v3 }
0x1298   : > { %3665 = vpow2.f32 %v1957_v5 }
0x129c   : > { %v2026_v6 = vpop.f32.mrf.mxu3 }
0x129d   : > { %v2030_v7 = vmul.f32 0.35355338, %v2026_v6 }
0x129e   : > { %v3666_v9 = vpop.eup %3665 }
0x129f   : > { %v1959_v10 = vsel %vm683_vm5, %v3666_v9, 0.0  ;;  %v2031_v11 = vsel %vm3955_vm6, %v2030_v7, -inf }
0x12a0   : > { %1960 = vadd.xlane.f32.xlu0 %v1959_v10  ;;  %v2032_v12 = vsel %vm683_vm5, %v2031_v11, -inf  ;;  %v3523_v10 = vld [vmem:[%s4676_s10 + $0x7c] sm:$0xf] }
0x12a1   : > { %2033 = vmax.xlane.f32.xlu1 %v2032_v12  ;;  %v3233_v12 = vld [vmem:[%s4676_s10 + $0x8c] sm:$0xf0] }
0x12a4   : > { %v2028_v14 = vpop.f32.mrf.mxu3 }
0x12a5   : > { %v3239_v14 = vld [vmem:[%s4676_s10 + $0x80] sm:$0xf] }
0x12b4   : > { %1965 = vrot.lane.b32.xlu0 %v4296_v13, %s4734_s29 }
0x12ba   : > { %1868 = vrot.lane.b32.xlu1 %v4296_v13, %s4735_s24 }
0x1303   : > { %v1864_v18 = vpop.xlane.xlu0 %1863 }
0x1313   : > { %v1961_v25 = vpop.xlane.xlu0 %1960 }
0x1314   : > { %v2034_v15 = vpop.xlane.xlu1 %2033 }
0x1315   : > { %v2035_v16 = vsub.f32 %v2031_v11, %v2034_v15  ;;  %v3526_v15 = vld [vmem:[%s4676_s10 + $0x90] sm:$0xf0] }
0x1317   : > { %v2036_v17 = vmul.f32 1.442695, %v2035_v16  ;;  %v3236_v16 = vor.u32 %v3523_v10, %v3233_v12 }
0x1319   : > { %3667 = vpow2.f32 %v2036_v17  ;;  %v3240_v17 = vor.u32 %v3526_v15, %v3239_v14  ;;  %2228 = vmatpush.bf16.msra.mxu3 %v3236_v16  ;;  %v3254_v14 = vld [vmem:[%s4126_s30 + $0x8] sm:$0xff]  ;;  %s2878_s30 = sshll.u32 %s2874_s3, 4  ;;  %s2879_s30 = int_to_ptr.hbm [resolvable:$true] %s2878_s30 }
0x131a   : > { %3669 = vrcp.f32 %v1864_v18  ;;  %v3524_v18 = vld [vmem:[%s4676_s10 + $0x84] sm:$0xf]  ;;  %s3701_s0 = sshra.s32 %s2879_s30, 4  ;;  %s3702_s0 = int_to_ptr.hbm [resolvable:$true] %s3701_s0 }
0x131b   : > { %3671 = vrcp.f32 %v1961_v25  ;;  %v3211_v25 = vld [vmem:[%s4676_s10 + $0x50] sm:$0xf]  ;;  %s3703_s4 = scalar_lea.hbm %s3702_s0, 8  ;;  %p3708_p0 = scmp.lt.s32.totalorder %s3702_s0, %s4684_s18 }
0x131c   : > { %p3704_p11 = scmp.ne.s32.totalorder %s3702_s0, %s3703_s4  ;;  %p3709_p1 = scmp.lt.s32.totalorder %s3707_s27, %s3703_s4 }
0x131e   : > { %p3705_p12 = pnand %p3704_p11, %p3897_p5  ;;  %p3710_p2 = por %p3709_p1, %p3708_p0 }
0x131f   : > { %v3668_v23 = vpop.eup %3667 }
0x1320   : > { %v2038_v47 = vsel %vm683_vm5, %v3668_v23, 0.0  ;;  %v3670_v28 = vpop.eup %3669  ;;  %p3706_p13 = pneg %p3705_p12 }
0x1321   : > { %2039 = vadd.xlane.f32.xlu2 %v2038_v47  ;;  %v1866_v29 = vmul.f32 %v3670_v28, %v3664_v63  ;;  %v3672_v33 = vpop.eup %3671  ;;  %v3520_v28 = vld [vmem:[%s4676_s10 + $0x60] sm:$0xf0] }
0x1322   : > { %v1963_v0 = vmul.f32 %v3672_v33, %v3666_v9  ;;  %v3525_v9 = vld [vmem:[%s4676_s10 + $0x88] sm:$0xf0]  ;;  %p3711_p3 = pnand %p3710_p2, %p3706_p13 }
0x1323   : > { %v1867_v32 = vpack.c.bf16 %v1866_v29, %v1866_v29  ;;  %v3518_v29 = vld [vmem:[%s4676_s10 + $0x54] sm:$0xf] }
0x1324   : > { %v1964_v20 = vpack.c.bf16 %v1963_v0, %v1963_v0  ;;  %v3519_v0 = vld [vmem:[%s4676_s10 + $0x5c] sm:$0xf] }
0x1326   : > { %v1966_v30 = vpop.permute.xlu0 %1965 }
0x1327   : > { %v1971_v31 = vsel %vm722_vm7, %v1966_v30, 0  ;;  %v3212_v30 = vor.u32 %v3520_v28, %v3211_v25 }
0x132c   : > { %v1869_v19 = vpop.permute.xlu1 %1868 }
0x132d   : > { %v1874_v24 = vsel %vm722_vm7, %v1869_v19, 0  ;;  %v3213_v19 = vld [vmem:[%s4676_s10 + $0x64] sm:$0xf0] }
0x132e   : > { %1883 = vmatpush.bf16.msrb.mxu0 %v1874_v24  ;;  %v3219_v24 = vld [vmem:[%s4676_s10 + $0x58] sm:$0xf] }
0x1331   : > { %3184 = vmatmul.msk.bf16.vlgmr.msrb.gmra.mxu0 %vm683_vm5, %v1867_v32  ;;  %v3216_v32 = vor.u32 %v3518_v29, %v3213_v19 }
0x1332   : > { %1980 = vmatpush.bf16.msra.mxu0 %v1971_v31  ;;  %v3521_v31 = vld [vmem:[%s4676_s10 + $0x68] sm:$0xf0] }
0x1333   : > { %v3220_v33 = vor.u32 %v3521_v31, %v3219_v24  ;;  %2229 = vmatpush.bf16.msra.mxu3 %v3216_v32 }
0x1336   : > { %2079 = vmatpush.bf16.msrb.mxu0 %v2070_v51 }
0x1339   : > { %2044 = vrot.lane.b32.xlu2 %v4296_v13, %s4736_s1  ;;  %v3179_v13 = vld [vmem:[%s4672_s6 + $0x18] sm:$0xf]  ;;  %s581_s1 = scalar_lea.vmem [#allocation2], %s2954_s20 }
0x133a   : > { %v1991_v41 = vsel %vm722_vm7, %v3179_v13, 0  ;;  %v3522_v13 = vld [vmem:[%s4676_s10 + $0x70] sm:$0xf0] }
0x133b   : > { %2000 = vmatpush.bf16.msrb.mxu1 %v1991_v41 }
0x1341   : > { %3188 = vmatmul.msk.bf16.vlgmr.msra.gmra.mxu0 %vm683_vm5, %v1964_v20  ;;  %v3221_v20 = vld [vmem:[%s4676_s10 + $0x6c] sm:$0xf0] }
0x1342   : > { %v3224_v34 = vor.u32 %v3519_v0, %v3221_v20 }
0x1394   : > { %v2040_v36 = vpop.xlane.xlu2 %2039 }
0x1395   : > { %3673 = vrcp.f32 %v2040_v36  ;;  %v3247_v36 = vld [vmem:[%s4676_s10 + $0x88] sm:$0xf] }
0x139b   : > { %v3674_v37 = vpop.eup %3673 }
0x139c   : > { %v2042_v26 = vmul.f32 %v3674_v37, %v3668_v23  ;;  %v2045_v38 = vpop.permute.xlu2 %2044  ;;  %v3241_v23 = vld [vmem:[%s4676_s10 + $0x94] sm:$0xf0]  ;;  %v3527_v37 = vld [vmem:[%s4676_s10 + $0x98] sm:$0xf0] }
0x139d   : > { %v2050_v39 = vsel %vm722_vm7, %v2045_v38, 0  ;;  %v3244_v47 = vor.u32 %v3524_v18, %v3241_v23 }
0x139e   : > { %v2043_v40 = vpack.c.bf16 %v2042_v26, %v2042_v26  ;;  %2059 = vmatpush.bf16.msrb.mxu2 %v2050_v39  ;;  %v3227_v26 = vld [vmem:[%s4676_s10 + $0x60] sm:$0xf]  ;;  %v3248_v39 = vor.u32 %v3527_v37, %v3247_v36 }
0x139f   : > { %2254 = vmatpush.bf16.msra.mxu0 %v3244_v47  ;;  %v3228_v41 = vor.u32 %v3522_v13, %v3227_v26 }
0x13a1   : > { %3191 = vmatmul.msk.bf16.vlgmr.msrb.gmra.mxu2 %vm683_vm5, %v2043_v40 }
0x13a2   : > { %2241 = vmatpush.bf16.msra.mxu2 %v3240_v17 }
0x13a3   : > { %2255 = vmatpush.bf16.msra.mxu0 %v3224_v34 }
0x13a6   : > { %2242 = vmatpush.bf16.msra.mxu2 %v3220_v33 }
0x13ae   : > { %v1885_v42 = vpop.f32.mrf.mxu0 }
0x13af   : > { %v1889_v43 = vpack.c.bf16 %v1885_v42, %v1885_v42 }
0x13b1   : > { %3185 = vmatmul.msk.bf16.vlgmr.msra.gmra.mxu1 %vm683_vm5, %v1889_v43 }
0x13b6   : > { %v1887_v22 = vpop.f32.mrf.mxu0 }
0x13be   : > { %v1982_v44 = vpop.f32.mrf.mxu0 }
0x13bf   : > { %v1986_v46 = vpack.c.bf16 %v1982_v44, %v1982_v44 }
0x13c1   : > { %3189 = vmatmul.msk.bf16.vlgmr.msrb.gmra.mxu1 %vm683_vm5, %v1986_v46 }
0x13c6   : > { %v1984_v49 = vpop.f32.mrf.mxu0 }
0x1424   : > { %v2061_v52 = vpop.f32.mrf.mxu2 }
0x1425   : > { %v2065_v53 = vpack.c.bf16 %v2061_v52, %v2061_v52 }
0x1427   : > { %3192 = vmatmul.msk.bf16.vlgmr.msrb.gmra.mxu0 %vm683_vm5, %v2065_v53  ;;  %v3623_v53 = vld [vmem:[%s4675_s9 + $0x1] ss:$0 sm:$0xff] }
0x142c   : > { %v2063_v54 = vpop.f32.mrf.mxu2 }
0x142e   : > { %v1905_v35 = vpop.f32.mrf.mxu1 }
0x142f   : > { %v1925_v27 = vadd.f32 %v4339_v62, %v1905_v35 }
0x1436   : > { %v1907_v55 = vpop.f32.mrf.mxu1 }
0x143e   : > { %v2002_v56 = vpop.f32.mrf.mxu1 }
0x143f   : > { %v2006_v57 = vadd.f32 %v2002_v56, %v1925_v27 }
0x1446   : > { %v2004_v58 = vpop.f32.mrf.mxu1 }
0x14a4   : > { %v2081_v59 = vpop.f32.mrf.mxu0 }
0x14a5   : > { %v2085_v60 = vadd.f32 %v2081_v59, %v2006_v57 }
0x14a7   : > { %v2086_v63 = vadd.f32 %v2085_v60, %v4275_v48  ;;  %v3231_v48 = vld [vmem:[%s4676_s10 + $0x78] sm:$0xf] }
0x14a8   : > { %v3232_v11 = vor.u32 %v3525_v9, %v3231_v48 }
0x14a9   : > { %v4379_v1 = vadd.f32 %v3621_v61, %v2086_v63  ;;  %v4469_v61 = vld [vmem:[%s4677_s11 + $0x5] sm:$0x1f] }
0x14aa   : > { %2215 = vmatpush.bf16.msra.mxu1 %v3232_v11  ;;  %v2148_v63 = vperm.slane %v4469_v61, 4 }
0x14ab   : > { %v2097_v2 = vsel %vm602_vm0, %v4379_v1, 0.0 }
0x14ac   : > { %2098 = vadd.xlane.f32.xlu1 %v2097_v2  ;;  %v2083_v3 = vpop.f32.mrf.mxu0 }
0x14ae   : > { %2216 = vmatpush.bf16.msra.mxu1 %v3212_v30 }
0x14b2   : > { %2267 = vmatpush.bf16.msrb.mxu1 %v3248_v39 }
0x14b6   : > { %2268 = vmatpush.bf16.msrb.mxu1 %v3228_v41 }
0x151f   : > { %v2099_v4 = vpop.xlane.xlu1 %2098 }
0x1520   : > { %v2100_v62 = vmul.f32 %v2099_v4, %v3919_v8 }
0x1522   : > { %v2101_v5 = vsub.f32 %v4379_v1, %v2100_v62 }
0x1524   : > { %v2102_v6 = vmul.f32 %v2101_v5, %v2101_v5 }
0x1526   : > { %v2103_v7 = vsel %vm602_vm0, %v2102_v6, 0.0 }
0x1527   : > { %2104 = vadd.xlane.f32.xlu2 %v2103_v7 }
0x159a   : > { %v2105_v21 = vpop.xlane.xlu2 %2104 }
0x159b   : > { %v2106_v38 = vmul.f32 %v2105_v21, %v3919_v8  ;;  %v3537_v21 = vld [vmem:[%s4678_s12 + $0x148] sm:$0xff] }
0x159d   : > { %v2107_v40 = vadd.f32 1e-05, %v2106_v38 }
0x159f   : > { %3675 = vrsqrt.f32 %v2107_v40  ;;  %vm2114_vm6 = vweird.f32 %v2107_v40 }
0x15a5   : > { %v3676_v42 = vpop.eup %3675 }
0x15a6   : > { %v2109_v43 = vmul.f32 %v3676_v42, %v2107_v40  ;;  %vm2115_vm5 = vweird.f32 %v3676_v42 }
0x15a7   : > { %vm2116_vm14 = vmor %vm2114_vm6, %vm2115_vm5 }
0x15a8   : > { %v2110_v22 = vmul.f32 %v3676_v42, %v2109_v43 }
0x15aa   : > { %v2111_v44 = vmul.f32 0.5, %v2110_v22 }
0x15ac   : > { %v2112_v46 = vsub.f32 1.5, %v2111_v44 }
0x15ae   : > { %v2113_v49 = vmul.f32 %v3676_v42, %v2112_v46 }
0x15b0   : > { %v2117_v51 = vsel %vm2116_vm14, %v3676_v42, %v2113_v49 }
0x15b1   : > { %v2118_v52 = vmul.f32 %v2117_v51, %v2101_v5 }
0x15b3   : > { %v2122_v54 = vmul.f32 %v3622_v50, %v2118_v52 }
0x15b5   : > { %v2126_v35 = vadd.f32 %v3623_v53, %v2122_v54 }
0x15b7   : > { %v2127_v55 = vpack.c.bf16 %v2126_v35, %v2126_v35 }
0x15b9   : > { %3249 = vmatmul.msk.bf16.vlgmr.msra.gmra.mxu1 %vm602_vm0, %v2127_v55  ;;  %3250 = vmatmul.msk.bf16.vlgmr.msra.gmra.mxu3 %vm602_vm0, %v2127_v55 }
0x15ba   : > { %3251 = vmatmul.msk.bf16.vlgmr.msra.gmra.mxu2 %vm602_vm0, %v2127_v55  ;;  %3252 = vmatmul.msk.bf16.vlgmr.msra.gmra.mxu0 %vm602_vm0, %v2127_v55 }
0x15c9   : > { %3253 = vmatmul.msk.bf16.vlgmr.msrb.gmra.mxu1 %vm602_vm0, %v2127_v55 }
0x1636   : > { %v4458_v27 = vpop.f32.mrf.mxu1 }
0x1637   : > { %v4460_v56 = vpop.f32.mrf.mxu0 }
0x163c   : > { %v4462_v57 = vpop.f32.mrf.mxu3 }
0x163d   : > { %v4464_v58 = vpop.f32.mrf.mxu2 }
0x163e   : > { %v2220_v59 = vpop.f32.mrf.mxu1 }
0x163f   : > { %v2259_v60 = vpop.f32.mrf.mxu0 }
0x1644   : > { %v2233_v2 = vpop.f32.mrf.mxu3 }
0x1645   : > { %v2246_v3 = vpop.f32.mrf.mxu2  ;;  %v2356_v2 = vld.sshfl [vmem:[#allocation1 + $0x8] sm:$0xff pattern:$0x75316420] }
0x1646   : > { %v2270_v4 = vpop.f32.mrf.mxu1  ;;  %3257 = vmatpush.msk.msrb.mxu2 %vm722_vm7, %v2356_v2  ;;  %v2358_v3 = vld.sshfl [vmem:[#allocation1 + $0x18] sm:$0xff pattern:$0x75316420] }
0x1647   : > { %v2271_v62 = vadd.f32 %v2270_v4, %v2148_v63  ;;  %v2355_v63 = vld.sshfl [vmem:[#allocation1] sm:$0xff pattern:$0x75316420] }
0x1648   : > { %3255 = vmatpush.msk.msrb.mxu3 %vm722_vm7, %v2355_v63  ;;  %v3327_v4 = vld [vmem:[%s4679_s13 + $0x4] sm:$0xf] }
0x1649   : > { %v2279_v5 = vmin.f32 %v2271_v62, 20.0  ;;  %vm2278_vm15 = vcmp.gt.f32.partialorder %v2271_v62, 20.0  ;;  %3328 = vmatpush.msk.msra.mxu2 %vm722_vm7, %v3327_v4 }
0x164a   : > { %3261 = vmatpush.msk.msra.mxu3 %vm722_vm7, %v2358_v3 }
0x164b   : > { %v2280_v6 = vmul.f32 1.442695, %v2279_v5  ;;  %v3543_v5 = vld [vmem:[%s4678_s12 + $0x178] sm:$0xff] }
0x164d   : > { %3677 = vpow2.f32 %v2280_v6  ;;  %v3534_v6 = vld [vmem:[%s4678_s12 + $0x130] sm:$0xff] }
0x164e   : > { %v2272_v7 = vpop.f32.mrf.mxu1 }
0x164f   : > { %v3542_v7 = vld [vmem:[%s4678_s12 + $0x170] sm:$0xff] }
0x1653   : > { %v3678_v48 = vpop.eup %3677 }
0x1654   : > { %v2282_v9 = vadd.f32 1.0, %v3678_v48  ;;  %v3533_v48 = vld [vmem:[%s4678_s12 + $0x128] sm:$0xff] }
0x1656   : > { %3679 = vlog2.f32 %v2282_v9  ;;  %v3541_v9 = vld [vmem:[%s4678_s12 + $0x168] sm:$0xff] }
0x165c   : > { %v3680_v10 = vpop.eup %3679 }
0x165d   : > { %v2284_v11 = vmul.f32 0.6931472, %v3680_v10  ;;  %v3532_v10 = vld [vmem:[%s4678_s12 + $0x120] sm:$0xff] }
0x165f   : > { %v2285_v12 = vsel %vm2278_vm15, %v2271_v62, %v2284_v11  ;;  %v3540_v11 = vld [vmem:[%s4678_s12 + $0x160] sm:$0xff] }
0x1660   : > { %2289 = vrot.lane.b32.xlu0 %v2285_v12, %s4737_s21  ;;  %s2876_s21 = sshll.u32 %s581_s1, 4  ;;  %s2877_s21 = int_to_ptr.vmem [resolvable:$true] %s2876_s21 }
0x16d2   : > { %v2290_v15 = vpop.permute.xlu0 %2289 }
0x16d3   : > { %v2292_v16 = vmul.f32 %v3254_v14, %v2290_v15  ;;  %v3531_v14 = vld [vmem:[%s4678_s12 + $0x118] sm:$0xff] }
0x16d4   : > { %v3539_v15 = vld [vmem:[%s4678_s12 + $0x158] sm:$0xff] }
0x16d5   : > { %v2293_v17 = vadd.f32 %v2292_v16, %v2271_v62  ;;  %v3535_v62 = vld [vmem:[%s4678_s12 + $0x138] sm:$0xff] }
0x16d6   : > { %2740 = vmatpush.bf16.msra.mxu1 %v3535_v62 }
0x16d7   : > { %v2294_v18 = vsel %vm1197_vm12, %v2293_v17, -inf }
0x16d8   : > { %2295 = vmax.xlane.f32.xlu0 %v2294_v18 }
0x16da   : > { %2741 = vmatpush.bf16.msra.mxu1 %v3534_v6 }
0x16de   : > { %2742 = vmatpush.bf16.msra.mxu1 %v3533_v48 }
0x16e2   : > { %2743 = vmatpush.bf16.msra.mxu1 %v3532_v10 }
0x16e6   : > { %2744 = vmatpush.bf16.msra.mxu1 %v3531_v14 }
0x174b   : > { %v2296_v23 = vpop.xlane.xlu0 %2295 }
0x174c   : > { %vm2297_vm1 = vcmp.eq.f32.partialorder %v2293_v17, %v2296_v23  ;;  %v3559_v23 = vld [vmem:[%s4678_s12 + $0x1f8] sm:$0xff] }
0x174d   : > { %v2298_v47 = vsel %vm2297_vm1, %v3952_v45, 4 }
0x174e   : > { %v2299_v25 = vsel %vm1197_vm12, %v2298_v47, 2147483647  ;;  %v3550_v47 = vld [vmem:[%s4678_s12 + $0x1b0] sm:$0xff] }
0x174f   : > { %v2301_v28 = vshra.s32 %v2299_v25, 16  ;;  %v2300_v30 = vand.u32 65535, %v2299_v25  ;;  %v3558_v25 = vld [vmem:[%s4678_s12 + $0x1f0] sm:$0xff] }
0x1751   : > { %v2303_v29 = vcvt.s32.f32 %v2301_v28  ;;  %v2302_v24 = vcvt.s32.f32 %v2300_v30  ;;  %v3549_v28 = vld [vmem:[%s4678_s12 + $0x1a8] sm:$0xff]  ;;  %v3548_v30 = vld [vmem:[%s4678_s12 + $0x1a0] sm:$0xff] }
0x1753   : > { %2304 = vmin.xlane.f32.xlu1 %v2303_v29 }
0x17c6   : > { %v2305_v19 = vpop.xlane.xlu1 %2304 }
0x17c7   : > { %vm2306_vm2 = vcmp.eq.f32.partialorder %v2303_v29, %v2305_v19  ;;  %v2311_v32 = vcvt.f32.s32 %v2305_v19  ;;  %v3557_v29 = vld [vmem:[%s4678_s12 + $0x1e8] sm:$0xff]  ;;  %v3547_v19 = vld [vmem:[%s4678_s12 + $0x198] sm:$0xff] }
0x17c8   : > { %v2307_v31 = vsel %vm2306_vm2, %v2302_v24, inf  ;;  %v3546_v24 = vld [vmem:[%s4678_s12 + $0x190] sm:$0xff] }
0x17c9   : > { %2308 = vmin.xlane.f32.xlu2 %v2307_v31  ;;  %v2312_v0 = vshll.u32 %v2311_v32, 16  ;;  %v3545_v31 = vld [vmem:[%s4678_s12 + $0x188] sm:$0xff]  ;;  %v3530_v32 = vld [vmem:[%s4678_s12 + $0x110] sm:$0xff] }
0x17ca   : > { %2745 = vmatpush.bf16.msra.mxu1 %v3530_v32 }
0x183c   : > { %v2309_v33 = vpop.xlane.xlu2 %2308 }
0x183d   : > { %v2310_v20 = vcvt.f32.s32 %v2309_v33  ;;  %v3538_v33 = vld [vmem:[%s4678_s12 + $0x150] sm:$0xff] }
0x183f   : > { %v2313_v34 = vadd.s32 %v2312_v0, %v2310_v20  ;;  %v3556_v0 = vld [vmem:[%s4678_s12 + $0x1e0] sm:$0xff] }
0x1840   : > { %v3544_v20 = vld [vmem:[%s4678_s12 + $0x180] sm:$0xff] }
0x1841   : > { %vm2314_vm3 = vcmp.eq.s32.totalorder %v3952_v45, %v2313_v34  ;;  %v3529_v34 = vld [vmem:[%s4678_s12 + $0x108] sm:$0xff] }
0x1842   : > { %vm4480_vm4 = vmand %vm2297_vm1, %vm2314_vm3  ;;  %2746 = vmatpush.bf16.msra.mxu1 %v3529_v34  ;;  %v3624_v34 = vld [vmem:[%s4680_s14] ss:$0 sm:$0xff] }
0x1843   : > { %v2316_v36 = vsel %vm4480_vm4, -inf, %v2293_v17 }
0x1844   : > { %v2317_v37 = vsel %vm1197_vm12, %v2316_v36, -inf }
0x1845   : > { %2318 = vmax.xlane.f32.xlu1 %v2317_v37  ;;  %v3528_v37 = vld [vmem:[%s4678_s12 + $0x100] sm:$0xff] }
0x1846   : > { %2747 = vmatpush.bf16.msra.mxu1 %v3528_v37 }
0x18b8   : > { %v2319_v26 = vpop.xlane.xlu1 %2318 }
0x18b9   : > { %vm2320_vm8 = vcmp.eq.f32.partialorder %v2316_v36, %v2319_v26  ;;  %v3555_v36 = vld [vmem:[%s4678_s12 + $0x1d8] sm:$0xff]  ;;  %v3536_v26 = vld [vmem:[%s4678_s12 + $0x140] sm:$0xff] }
0x18ba   : > { %v2321_v38 = vsel %vm2320_vm8, %v3952_v45, 4 }
0x18bb   : > { %v2322_v39 = vsel %vm1197_vm12, %v2321_v38, 2147483647  ;;  %v3554_v38 = vld [vmem:[%s4678_s12 + $0x1d0] sm:$0xff] }
0x18bc   : > { %v2324_v13 = vshra.s32 %v2322_v39, 16  ;;  %v2323_v41 = vand.u32 65535, %v2322_v39  ;;  %v3553_v39 = vld [vmem:[%s4678_s12 + $0x1c8] sm:$0xff] }
0x18be   : > { %v2326_v40 = vcvt.s32.f32 %v2324_v13  ;;  %v2325_v43 = vcvt.s32.f32 %v2323_v41  ;;  %v3552_v13 = vld [vmem:[%s4678_s12 + $0x1c0] sm:$0xff] }
0x18c0   : > { %2327 = vmin.xlane.f32.xlu2 %v2326_v40 }
0x1933   : > { %v2328_v42 = vpop.xlane.xlu2 %2327 }
0x1934   : > { %vm2329_vm9 = vcmp.eq.f32.partialorder %v2326_v40, %v2328_v42  ;;  %v2334_v44 = vcvt.f32.s32 %v2328_v42  ;;  %v2146_v40 = vperm.slane %v4469_v61, 2  ;;  %v2144_v42 = vperm.slane %v4469_v61, 0 }
0x1935   : > { %v2330_v22 = vsel %vm2329_vm9, %v2325_v43, inf  ;;  %v2145_v43 = vperm.slane %v4469_v61, 1 }
0x1936   : > { %2331 = vmin.xlane.f32.xlu1 %v2330_v22  ;;  %v2335_v49 = vshll.u32 %v2334_v44, 16  ;;  %v2245_v41 = vadd.f32 %v4464_v58, %v2146_v40  ;;  %v2219_v44 = vadd.f32 %v4458_v27, %v2144_v42 }
0x1938   : > { %v2276_v22 = vmax.f32 %v2245_v41, 0.0 }
0x19a9   : > { %v2332_v46 = vpop.xlane.xlu1 %2331 }
0x19aa   : > { %v2333_v50 = vcvt.f32.s32 %v2332_v46  ;;  %v2232_v46 = vadd.f32 %v4462_v57, %v2145_v43 }
0x19ac   : > { %v2336_v51 = vadd.s32 %v2335_v49, %v2333_v50 }
0x19ae   : > { %vm2337_vm10 = vcmp.eq.s32.totalorder %v3952_v45, %v2336_v51  ;;  %v2357_v45 = vld.sshfl [vmem:[#allocation1 + $0x10] sm:$0xff pattern:$0x75316420] }
0x19af   : > { %vm2338_vm11 = vmand %vm2320_vm8, %vm2337_vm10  ;;  %3259 = vmatpush.msk.msrb.mxu0 %vm722_vm7, %v2357_v45 }
0x19b0   : > { %vm2339_vm13 = vmor %vm4480_vm4, %vm2338_vm11 }
0x19b1   : > { %v2340_v52 = vsel %vm2339_vm13, %v2293_v17, -inf  ;;  %2753 = vmatpush.bf16.msra.mxu0 %v3543_v5  ;;  %v3551_v17 = vld [vmem:[%s4678_s12 + $0x1b8] sm:$0xff] }
0x19b2   : > { %v2341_v53 = vsel %vm1197_vm12, %v2340_v52, -inf }
0x19b3   : > { %2342 = vmax.xlane.f32.xlu0 %v2341_v53  ;;  %v2147_v53 = vperm.slane %v4469_v61, 3 }
0x19b5   : > { %2754 = vmatpush.bf16.msra.mxu0 %v3542_v7 }
0x19b9   : > { %2755 = vmatpush.bf16.msra.mxu0 %v3541_v9 }
0x19bd   : > { %2756 = vmatpush.bf16.msra.mxu0 %v3540_v11 }
0x19c1   : > { %2757 = vmatpush.bf16.msra.mxu0 %v3539_v15 }
0x19c5   : > { %2758 = vmatpush.bf16.msra.mxu0 %v3538_v33 }
0x19c9   : > { %2759 = vmatpush.bf16.msra.mxu0 %v3537_v21 }
0x19cd   : > { %2760 = vmatpush.bf16.msra.mxu0 %v3536_v26 }
0x1a26   : > { %v2343_v54 = vpop.xlane.xlu0 %2342 }
0x1a27   : > { %v2344_v35 = vsub.f32 %v2340_v52, %v2343_v54  ;;  %v2274_v52 = vmax.f32 %v2219_v44, 0.0  ;;  %v2275_v54 = vmax.f32 %v2232_v46, 0.0 }
0x1a29   : > { %v2345_v55 = vmul.f32 1.442695, %v2344_v35 }
0x1a2b   : > { %3681 = vpow2.f32 %v2345_v55 }
0x1a31   : > { %v3682_v59 = vpop.eup %3681 }
0x1a32   : > { %v2347_v60 = vsel %vm1197_vm12, %v3682_v59, 0.0 }
0x1a33   : > { %2348 = vadd.xlane.f32.xlu2 %v2347_v60  ;;  %v2258_v60 = vadd.f32 %v4460_v56, %v2147_v53 }
0x1a35   : > { %v2277_v27 = vmax.f32 %v2258_v60, 0.0 }
0x1aa6   : > { %v2349_v12 = vpop.xlane.xlu2 %2348 }
0x1aa7   : > { %3683 = vrcp.f32 %v2349_v12 }
0x1aad   : > { %v3684_v16 = vpop.eup %3683 }
0x1aae   : > { %v2351_v18 = vmul.f32 %v3684_v16, %v3682_v59 }
0x1ab0   : > { %3256 = vmatmul.msk.f32.vlgmr.msrb.gmra.mxu3 %vm1197_vm12, %v2351_v18  ;;  %3258 = vmatmul.msk.f32.vlgmr.msrb.gmra.mxu2 %vm1197_vm12, %v2351_v18 }
0x1ab1   : > { %3260 = vmatmul.msk.f32.vlgmr.msrb.gmra.mxu0 %vm1197_vm12, %v2351_v18  ;;  %2766 = vmatpush.bf16.msrb.mxu3 %v3551_v17 }
0x1ab2   : > { %2779 = vmatpush.bf16.msrb.mxu2 %v3559_v23 }
0x1ab5   : > { %2767 = vmatpush.bf16.msrb.mxu3 %v3550_v47 }
0x1ab6   : > { %2780 = vmatpush.bf16.msrb.mxu2 %v3558_v25 }
0x1ab8   : > { %3262 = vmatmul.msk.f32.vlgmr.msra.gmra.mxu3 %vm1197_vm12, %v2351_v18  ;;  %3329 = vmatmul.msk.f32.vlgmr.msra.gmra.mxu2 %vm1197_vm12, %v2351_v18 }
0x1ab9   : > { %2768 = vmatpush.bf16.msrb.mxu3 %v3549_v28  ;;  %v3561_v28 = vld [vmem:[%s4682_s16 + $0x8] sm:$0xff] }
0x1aba   : > { %2781 = vmatpush.bf16.msrb.mxu2 %v3557_v29  ;;  %2855 = vmatpush.bf16.msrb.mxu1 %v3561_v28 }
0x1abd   : > { %2769 = vmatpush.bf16.msrb.mxu3 %v3548_v30 }
0x1abe   : > { %2782 = vmatpush.bf16.msrb.mxu2 %v3556_v0 }
0x1ac1   : > { %2770 = vmatpush.bf16.msrb.mxu3 %v3547_v19 }
0x1ac2   : > { %2783 = vmatpush.bf16.msrb.mxu2 %v3555_v36 }
0x1ac5   : > { %2771 = vmatpush.bf16.msrb.mxu3 %v3546_v24 }
0x1ac6   : > { %2784 = vmatpush.bf16.msrb.mxu2 %v3554_v38 }
0x1ac9   : > { %2772 = vmatpush.bf16.msrb.mxu3 %v3545_v31 }
0x1aca   : > { %2785 = vmatpush.bf16.msrb.mxu2 %v3553_v39  ;;  %v3626_v39 = vld [vmem:[%s4683_s17] ss:$0 sm:$0xff] }
0x1acd   : > { %2773 = vmatpush.bf16.msrb.mxu3 %v3544_v20 }
0x1ace   : > { %2786 = vmatpush.bf16.msrb.mxu2 %v3552_v13 }
0x1b2e   : > { %v2427_v49 = vpop.f32.mrf.mxu0 }
0x1b2f   : > { %v2452_v50 = vmul.f32 %v2427_v49, %v2276_v22 }
0x1b31   : > { %v2456_v51 = vpack.c.bf16 %v2452_v50, %v2452_v50 }
0x1b33   : > { %2774 = vmatmul.bf16.vlgmr.msrb.gmra.mxu3 %v2456_v51  ;;  %v2387_v35 = vpop.f32.mrf.mxu3  ;;  %v2407_v55 = vpop.f32.mrf.mxu2 }
0x1b34   : > { %v2450_v58 = vmul.f32 %v2387_v35, %v2274_v52  ;;  %v2451_v59 = vmul.f32 %v2407_v55, %v2275_v54 }
0x1b36   : > { %v2454_v63 = vpack.c.bf16 %v2450_v58, %v2450_v58  ;;  %v2455_v2 = vpack.c.bf16 %v2451_v59, %v2451_v59 }
0x1b38   : > { %2748 = vmatmul.bf16.vlgmr.msra.gmra.mxu1 %v2454_v63  ;;  %2761 = vmatmul.bf16.vlgmr.msra.gmra.mxu0 %v2455_v2 }
0x1b3b   : > { %v2447_v57 = vpop.f32.mrf.mxu3  ;;  %v2545_v5 = vpop.f32.mrf.mxu2 }
0x1b3c   : > { %v2453_v45 = vmul.f32 %v2447_v57, %v2277_v27 }
0x1b3e   : > { %v2457_v3 = vpack.c.bf16 %v2453_v45, %v2453_v45 }
0x1b40   : > { %2787 = vmatmul.bf16.vlgmr.msrb.gmra.mxu2 %v2457_v3 }
0x1bb5   : > { %v2749_v4 = vpop.f32.mrf.mxu1  ;;  %v2762_v62 = vpop.f32.mrf.mxu0 }
0x1bb6   : > { %v2775_v61 = vpop.f32.mrf.mxu3  ;;  %v2750_v6 = vadd.f32 %v2749_v4, %v2545_v5 }
0x1bb8   : > { %v2763_v9 = vadd.f32 %v2762_v62, %v2750_v6 }
0x1bba   : > { %v2776_v11 = vadd.f32 %v2775_v61, %v2763_v9 }
0x1bbd   : > { %v2751_v7 = vpop.f32.mrf.mxu1  ;;  %v2764_v48 = vpop.f32.mrf.mxu0 }
0x1bbe   : > { %v2777_v10 = vpop.f32.mrf.mxu3 }
0x1bc3   : > { %v2788_v56 = vpop.f32.mrf.mxu2 }
0x1bc4   : > { %v2789_v12 = vadd.f32 %v2788_v56, %v2776_v11 }
0x1bc6   : > { %v2792_v14 = vadd.f32 %v2789_v12, %v4379_v1  ;;  %v3560_v1 = vld [vmem:[%s4682_s16] sm:$0xff] }
0x1bc7   : > { %2856 = vmatpush.bf16.msrb.mxu1 %v3560_v1 }
0x1bc8   : > { %v2795_v15 = vsel %vm602_vm0, %v2792_v14, 0.0 }
0x1bc9   : > { %2796 = vadd.xlane.f32.xlu1 %v2795_v15 }
0x1bcb   : > { %v2790_v16 = vpop.f32.mrf.mxu2 }
0x1c3c   : > { %v2797_v17 = vpop.xlane.xlu1 %2796 }
0x1c3d   : > { %v2798_v18 = vmul.f32 %v2797_v17, %v3919_v8 }
0x1c3f   : > { %v2799_v23 = vsub.f32 %v2792_v14, %v2798_v18 }
0x1c41   : > { %v2800_v47 = vmul.f32 %v2799_v23, %v2799_v23 }
0x1c43   : > { %v2801_v25 = vsel %vm602_vm0, %v2800_v47, 0.0 }
0x1c44   : > { %2802 = vadd.xlane.f32.xlu0 %v2801_v25 }
0x1cb7   : > { %v2803_v29 = vpop.xlane.xlu0 %2802 }
0x1cb8   : > { %v2804_v30 = vmul.f32 %v2803_v29, %v3919_v8  ;;  %v3625_v8 = vld [vmem:[%s4681_s15] ss:$0 sm:$0xff] }
0x1cba   : > { %v2805_v19 = vadd.f32 1e-05, %v2804_v30 }
0x1cbc   : > { %3685 = vrsqrt.f32 %v2805_v19  ;;  %vm2812_vm12 = vweird.f32 %v2805_v19 }
0x1cc2   : > { %v3686_v24 = vpop.eup %3685 }
0x1cc3   : > { %v2807_v31 = vmul.f32 %v3686_v24, %v2805_v19  ;;  %vm2813_vm7 = vweird.f32 %v3686_v24 }
0x1cc4   : > { %vm2814_vm5 = vmor %vm2812_vm12, %vm2813_vm7 }
0x1cc5   : > { %v2808_v32 = vmul.f32 %v3686_v24, %v2807_v31 }
0x1cc7   : > { %v2809_v33 = vmul.f32 0.5, %v2808_v32 }
0x1cc9   : > { %v2810_v0 = vsub.f32 1.5, %v2809_v33 }
0x1ccb   : > { %v2811_v20 = vmul.f32 %v3686_v24, %v2810_v0 }
0x1ccd   : > { %v2815_v21 = vsel %vm2814_vm5, %v3686_v24, %v2811_v20 }
0x1cce   : > { %v2816_v36 = vmul.f32 %v2815_v21, %v2799_v23 }
0x1cd0   : > { %v2820_v37 = vmul.f32 %v3624_v34, %v2816_v36 }
0x1cd2   : > { %v2824_v26 = vadd.f32 %v3625_v8, %v2820_v37 }
0x1cd4   : > { %v2825_v38 = vpack.c.bf16 %v2824_v26, %v2824_v26 }
0x1cd6   : > { %3466 = vmatmul.msk.bf16.vlgmr.msrb.gmra.mxu1 %vm602_vm0, %v2825_v38 }
0x1d53   : > { %v2858_v13 = vpop.f32.mrf.mxu1 }
0x1d54   : > { %v2859_v40 = vadd.f32 %v3626_v39, %v2858_v13 }
0x1d56   : > { %2862 = vst [vmem:[%s581_s1] sm:$0xff] %v2859_v40 }
0x1d57   : > { %3714 = shalt.err (!%p3711_p3)
}
0x1d58   : > { %3562 = dma.vmem_to_hbm [thread:$0]  (%p3897_p5), %s2877_s21, 128, %s2879_s30, %s2864_s22  }
0x1d5b   : > { %v2860_v41 = vpop.f32.mrf.mxu1 }
0x1d5c PF: > { %s4740_s25 = sld [smem:[#allocation7_spill]] }
0x1d5d   : > { %s4741_s3 = sld [smem:[#allocation5_spill]] }
0x1d62   : > { %p3568_p4 = scmp.ge.s32.totalorder %s4740_s25, 2 }
0x1d63   : > { %s2890_s1 = sand.u32 1, %s4741_s3  }
0x1d64   : > { %p3565_p7 = pnand %p3568_p4, %p3901_p6  ;;  %s2891_s19 = scalar_lea.sflag [#allocation3], %s2890_s1 }
0x1d66   : > { %p3566_p8 = pneg %p3565_p7 }
0x1d68   : > { %3732 = dma.done.wait (%p3566_p8), %s2891_s19, 128  }
0x1d69   : > { %3734 = vsyncadd (%p3566_p8), %s2891_s19, 4294967168  ;;  %s4743_s30 = sld [smem:[#allocation8_spill]]  ;;  %s4746_s27 = smov %s3741_s28 }
0x1d6a   : > { %s4744_s4 = sld [smem:[#allocation6_spill]] }
0x1d6b   : > { %s4745_s29 = sld [smem:[#allocation9_spill]] }
0x1d6f   : > { %p28_p9 = scmp.ge.s32.totalorder %s4743_s30, 4  }
0x1d70   : > { %s4747_s28 = smov %s4744_s4 }
0x1d71   :  { %30 = sbr.rel (!%p28_p9) target bundleno = 9 (0x9), region = 144 }
0x1d76   :  { %2897 = vsyncpa [#allocation3], 1 }
0x1d77   :  { %2899 = vsyncpa [#allocation3 + $0x1], 1 }

</bundles_post_ra>
